<compile_context>
chip_gen: v7x
topology: tpu7x:2x2x1
jax: 0.10.0
libtpu: 0.0.40
codegen_flags: <defaults>
</compile_context>

<pallas_src>
import functools

import jax
import jax.numpy as jnp
from jax import lax
from jax.experimental import pallas as pl
from jax.experimental.pallas import tpu as pltpu


def _round_up(x, m):
    return (x + m - 1) // m * m


def _lstm_kernel(L, T, Bp, Hp, O, Op, *refs):
    """L-layer LSTM over T steps + FC + log-softmax (padded / lane-aligned)."""
    x_ref = refs[0]                              # (T*Bp, Dp)      bf16
    wih_refs = refs[1:1 + L]                     # (D_l_pad, 4*Hp) bf16
    whh_refs = refs[1 + L:1 + 2 * L]             # (Hp, 4*Hp)      bf16
    b_refs = refs[1 + 2 * L:1 + 3 * L]           # (1, 4*Hp)       f32 (b_ih+b_hh)
    wfc_ref = refs[1 + 3 * L]                    # (Hp, Op)        bf16
    bfc_ref = refs[2 + 3 * L]                    # (1, Op)         f32
    out_ref = refs[3 + 3 * L]                    # (Bp, Op)        f32
    h_ref, c_ref, seq_ref, gx_ref = refs[4 + 3 * L:]
    # h_ref/c_ref: (Bp, Hp) f32; seq_ref: (T*Bp, Hp) f32; gx_ref: (T*Bp, 4*Hp) f32

    for l in range(L):
        w_hh = whh_refs[l][...]                  # (Hp, 4*Hp) bf16

        # Hoisted full-sequence input projection + fused bias: one big matmul.
        src = x_ref[...] if l == 0 else seq_ref[...].astype(jnp.bfloat16)
        gx_ref[...] = (
            jnp.dot(src, wih_refs[l][...], preferred_element_type=jnp.float32)
            + b_refs[l][...])

        # h0 = c0 = 0 (matches the torch.zeros init in forward()).
        h_ref[...] = jnp.zeros_like(h_ref)
        c_ref[...] = jnp.zeros_like(c_ref)

        def step(t, carry, w_hh=w_hh):
            row0 = pl.multiple_of(t * Bp, Bp)
            rows = pl.ds(row0, Bp)
            # Only the small recurrent matmul remains on the serial path.
            gates = gx_ref[rows, :] + jnp.dot(
                h_ref[...].astype(jnp.bfloat16), w_hh,
                preferred_element_type=jnp.float32)          # (Bp, 4*Hp) f32
            # PyTorch gate order i, f, g, o; every slice is a lane-aligned slab.
            i = jax.nn.sigmoid(gates[:, 0 * Hp:1 * Hp])
            f = jax.nn.sigmoid(gates[:, 1 * Hp:2 * Hp])
            g = jnp.tanh(gates[:, 2 * Hp:3 * Hp])
            o = jax.nn.sigmoid(gates[:, 3 * Hp:4 * Hp])
            c = f * c_ref[...] + i * g
            h_new = o * jnp.tanh(c)
            c_ref[...] = c
            h_ref[...] = h_new
            seq_ref[rows, :] = h_new             # aligned full-tile f32 store
            return carry

        lax.fori_loop(0, T, step, 0, unroll=True)
        # TODO(synk): nn.LSTM inter-layer dropout (training-mode only) is not
        # applied; this matches eval/inference semantics of the module.

    # fc on the last timestep of the last layer (h_ref holds exactly that).
    logits = (jnp.dot(h_ref[...].astype(jnp.bfloat16), wfc_ref[...],
                      preferred_element_type=jnp.float32)
              + bfc_ref[...])                    # (Bp, Op) f32, lane-dense
    # Mask padded output lanes so they do not contribute to the softmax sum.
    col = lax.broadcasted_iota(jnp.int32, (Bp, Op), 1)
    logits = jnp.where(col < O, logits, jnp.float32(-1e30))
    # LogSoftmax(dim=1)
    m = jnp.max(logits, axis=1, keepdims=True)
    z = logits - m
    lse = jnp.log(jnp.sum(jnp.exp(z), axis=1, keepdims=True))
    out_ref[...] = (z - lse).astype(out_ref.dtype)


def _spread_gate_cols(w_t, d_in_pad, H, Hp):
    """w_t: (d_in, 4H) -> (d_in_pad, 4*Hp), gate block k at lane offset k*Hp."""
    d_in = w_t.shape[0]
    out = jnp.zeros((d_in_pad, 4 * Hp), jnp.float32)
    for k in range(4):
        out = out.at[:d_in, k * Hp:k * Hp + H].set(w_t[:, k * H:(k + 1) * H])
    return out


def lstm_model_forward(x, params, hidden_dim, output_dim):
    """x: (B, T, D) float32, batch-first like the PyTorch module."""
    B, T, D = x.shape
    H, O = hidden_dim, output_dim
    L = len(params["w_ih"])

    Bp = _round_up(B, 8)
    Dp = _round_up(D, 128)
    Hp = _round_up(H, 128)
    Op = _round_up(O, 128)

    # (B, T, D) -> time-major, pad to (T, Bp, Dp), flatten to (T*Bp, Dp), bf16.
    x_tm = jnp.transpose(x, (1, 0, 2))
    x_tm = jnp.pad(x_tm, ((0, 0), (0, Bp - B), (0, Dp - D)))
    x_flat = x_tm.reshape(T * Bp, Dp).astype(jnp.bfloat16)

    inputs = [x_flat]
    # Input-to-hidden weights, gate blocks spread to Hp-aligned lane offsets.
    for l in range(L):
        d_in_pad = Dp if l == 0 else Hp
        w_t = jnp.transpose(params["w_ih"][l])                 # (d_in, 4H)
        inputs.append(
            _spread_gate_cols(w_t, d_in_pad, H, Hp).astype(jnp.bfloat16))
    # Hidden-to-hidden weights.
    for l in range(L):
        w_t = jnp.transpose(params["w_hh"][l])                 # (H, 4H)
        inputs.append(_spread_gate_cols(w_t, Hp, H, Hp).astype(jnp.bfloat16))
    # Fused biases (b_ih + b_hh), gate blocks spread, kept f32.
    for l in range(L):
        b = (params["b_ih"][l] + params["b_hh"][l]).reshape(1, 4 * H)
        inputs.append(_spread_gate_cols(b, 1, H, Hp))
    # FC weight/bias padded to lane-dense (Hp, Op) / (1, Op).
    w_fc_t = jnp.transpose(params["w_fc"])                     # (H, O)
    w_fc_p = jnp.zeros((Hp, Op), jnp.float32).at[:H, :O].set(w_fc_t)
    b_fc_p = jnp.zeros((1, Op), jnp.float32).at[0, :O].set(params["b_fc"])
    inputs += [w_fc_p.astype(jnp.bfloat16), b_fc_p]

    kernel = functools.partial(_lstm_kernel, L, T, Bp, Hp, O, Op)
    vmem = pl.BlockSpec(memory_space=pltpu.MemorySpace.VMEM)

    out_padded = pl.pallas_call(
        kernel,
        out_shape=jax.ShapeDtypeStruct((Bp, Op), jnp.float32),
        in_specs=[vmem] * len(inputs),
        out_specs=vmem,
        scratch_shapes=[
            pltpu.VMEM((Bp, Hp), jnp.float32),          # h
            pltpu.VMEM((Bp, Hp), jnp.float32),          # c
            pltpu.VMEM((T * Bp, Hp), jnp.float32),      # layer output sequence
            pltpu.VMEM((T * Bp, 4 * Hp), jnp.float32),  # hoisted gates_x
        ],
    )(*inputs)
    return out_padded[:B, :O]


def init_params(key, input_dim, hidden_dim, layer_dim, output_dim):
    """Deterministic init matching PyTorch parameter shapes for nn.LSTM/Linear."""
    H = hidden_dim
    bound = 1.0 / float(H) ** 0.5
    params = {"w_ih": [], "w_hh": [], "b_ih": [], "b_hh": []}
    for l in range(layer_dim):
        d_in = input_dim if l == 0 else hidden_dim
        key, k1, k2, k3, k4 = jax.random.split(key, 5)
        params["w_ih"].append(
            jax.random.uniform(k1, (4 * H, d_in), jnp.float32, -bound, bound))
        params["w_hh"].append(
            jax.random.uniform(k2, (4 * H, H), jnp.float32, -bound, bound))
        params["b_ih"].append(
            jax.random.uniform(k3, (4 * H,), jnp.float32, -bound, bound))
        params["b_hh"].append(
            jax.random.uniform(k4, (4 * H,), jnp.float32, -bound, bound))
    key, k5, k6 = jax.random.split(key, 3)
    params["w_fc"] = jax.random.uniform(
        k5, (output_dim, H), jnp.float32, -bound, bound)
    params["b_fc"] = jax.random.uniform(
        k6, (output_dim,), jnp.float32, -bound, bound)
    return params


def reference_forward(x, params, hidden_dim, output_dim):
    """Pure-JAX f32 reference matching torch semantics (eval mode)."""
    B, T, D = x.shape
    H = hidden_dim
    layer_in = x
    for l in range(len(params["w_ih"])):
        w_ih, w_hh = params["w_ih"][l], params["w_hh"][l]
        b = params["b_ih"][l] + params["b_hh"][l]
        h = jnp.zeros((B, H), jnp.float32)
        c = jnp.zeros((B, H), jnp.float32)
        outs = []
        for t in range(T):
            gates = layer_in[:, t, :] @ w_ih.T + h @ w_hh.T + b
            i = jax.nn.sigmoid(gates[:, :H])
            f = jax.nn.sigmoid(gates[:, H:2 * H])
            g = jnp.tanh(gates[:, 2 * H:3 * H])
            o = jax.nn.sigmoid(gates[:, 3 * H:])
            c = f * c + i * g
            h = o * jnp.tanh(c)
            outs.append(h)
        layer_in = jnp.stack(outs, axis=1)
    logits = layer_in[:, -1, :] @ params["w_fc"].T + params["b_fc"]
    return jax.nn.log_softmax(logits, axis=1)


if __name__ == "__main__":
    B, T = 2, 8                 # batch, sequence length
    INPUT_DIM, HIDDEN_DIM = 16, 32
    LAYER_DIM, OUTPUT_DIM = 2, 10
    DROPOUT = 0.1               # unused in eval-mode forward

    key = jax.random.PRNGKey(0)
    key, xkey = jax.random.split(key)
    x = jax.random.normal(xkey, (B, T, INPUT_DIM), jnp.float32)
    params = init_params(key, INPUT_DIM, HIDDEN_DIM, LAYER_DIM, OUTPUT_DIM)

    out = lstm_model_forward(x, params, HIDDEN_DIM, OUTPUT_DIM)
    out = jax.block_until_ready(out)

    ref = reference_forward(x, params, HIDDEN_DIM, OUTPUT_DIM)
    assert out.shape == (B, OUTPUT_DIM)
    # bf16 matmul inputs (f32 accumulation) -> allow small drift vs f32 ref.
    assert jnp.allclose(out, ref, atol=5e-2, rtol=5e-2), (out, ref)

    print("KERNEL_OK")
</pallas_src>

<mosaic_0001>
module attributes {stable_mosaic.version = 11 : i64} {
  func.func @_lstm_kernel(%arg0: memref<64x128xbf16, #tpu.memory_space<vmem>>, %arg1: memref<128x512xbf16, #tpu.memory_space<vmem>>, %arg2: memref<128x512xbf16, #tpu.memory_space<vmem>>, %arg3: memref<128x512xbf16, #tpu.memory_space<vmem>>, %arg4: memref<128x512xbf16, #tpu.memory_space<vmem>>, %arg5: memref<1x512xf32, #tpu.memory_space<vmem>>, %arg6: memref<1x512xf32, #tpu.memory_space<vmem>>, %arg7: memref<128x128xbf16, #tpu.memory_space<vmem>>, %arg8: memref<1x128xf32, #tpu.memory_space<vmem>>, %arg9: memref<8x128xf32, #tpu.memory_space<vmem>>, %arg10: memref<8x128xf32, #tpu.memory_space<vmem>>, %arg11: memref<8x128xf32, #tpu.memory_space<vmem>>, %arg12: memref<64x128xf32, #tpu.memory_space<vmem>>, %arg13: memref<64x512xf32, #tpu.memory_space<vmem>>) attributes {dimension_semantics = [], scalar_prefetch = 0 : i64, scratch_operands = 4 : i64, tpu.core_type = #tpu.core_type<tc>} {
    %c0 = arith.constant 0 : index
    %c0_0 = arith.constant 0 : index
    %0 = vector.load %arg3[%c0, %c0_0] : memref<128x512xbf16, #tpu.memory_space<vmem>>, vector<128x512xbf16>
    %c0_1 = arith.constant 0 : index
    %c0_2 = arith.constant 0 : index
    %1 = vector.load %arg0[%c0_1, %c0_2] : memref<64x128xbf16, #tpu.memory_space<vmem>>, vector<64x128xbf16>
    %c0_3 = arith.constant 0 : index
    %c0_4 = arith.constant 0 : index
    %2 = vector.load %arg1[%c0_3, %c0_4] : memref<128x512xbf16, #tpu.memory_space<vmem>>, vector<128x512xbf16>
    %cst = arith.constant dense<0.000000e+00> : vector<64x512xf32>
    %3 = tpu.matmul %1, %2, %cst {dimension_numbers = #tpu.dot_dimension_numbers<[1], [0], [0], [1], [0, 0, 1, 1], [], []>} : vector<64x128xbf16>, vector<128x512xbf16>, vector<64x512xf32> -> vector<64x512xf32>
    %c0_5 = arith.constant 0 : index
    %c0_6 = arith.constant 0 : index
    %4 = vector.load %arg5[%c0_5, %c0_6] : memref<1x512xf32, #tpu.memory_space<vmem>>, vector<1x512xf32>
    %5 = vector.broadcast %4 : vector<1x512xf32> to vector<64x512xf32>
    %6 = arith.addf %3, %5 : vector<64x512xf32>
    %c0_7 = arith.constant 0 : index
    %c0_8 = arith.constant 0 : index
    %7 = vector.load %arg13[%c0_7, %c0_8] : memref<64x512xf32, #tpu.memory_space<vmem>>, vector<64x512xf32>
    tpu.vector_store %arg13[%c0_7, %c0_8], %6 {strides = array<i32>} : memref<64x512xf32, #tpu.memory_space<vmem>>, vector<64x512xf32>,
    %cst_9 = arith.constant 0.000000e+00 : f32
    %8 = vector.broadcast %cst_9 : f32 to vector<8x128xf32>
    %c0_10 = arith.constant 0 : index
    %c0_11 = arith.constant 0 : index
    %9 = vector.load %arg10[%c0_10, %c0_11] : memref<8x128xf32, #tpu.memory_space<vmem>>, vector<8x128xf32>
    tpu.vector_store %arg10[%c0_10, %c0_11], %8 {strides = array<i32>} : memref<8x128xf32, #tpu.memory_space<vmem>>, vector<8x128xf32>,
    %cst_12 = arith.constant 0.000000e+00 : f32
    %10 = vector.broadcast %cst_12 : f32 to vector<8x128xf32>
    %c0_13 = arith.constant 0 : index
    %c0_14 = arith.constant 0 : index
    %11 = vector.load %arg11[%c0_13, %c0_14] : memref<8x128xf32, #tpu.memory_space<vmem>>, vector<8x128xf32>
    tpu.vector_store %arg11[%c0_13, %c0_14], %10 {strides = array<i32>} : memref<8x128xf32, #tpu.memory_space<vmem>>, vector<8x128xf32>,
    %c0_i32 = arith.constant 0 : i32
    %c8_i32 = arith.constant 8 : i32
    %12 = arith.muli %c0_i32, %c8_i32 : i32
    %13 = tpu.assume_multiple %12, 8 : i32
    %14 = arith.index_cast %13 : i32 to index
    %c0_15 = arith.constant 0 : index
    %15 = vector.load %arg13[%14, %c0_15] : memref<64x512xf32, #tpu.memory_space<vmem>>, vector<8x512xf32>
    %c0_16 = arith.constant 0 : index
    %c0_17 = arith.constant 0 : index
    %16 = vector.load %arg10[%c0_16, %c0_17] : memref<8x128xf32, #tpu.memory_space<vmem>>, vector<8x128xf32>
    %17 = arith.truncf %16 : vector<8x128xf32> to vector<8x128xbf16>
    %cst_18 = arith.constant dense<0.000000e+00> : vector<8x512xf32>
    %18 = tpu.matmul %17, %0, %cst_18 {dimension_numbers = #tpu.dot_dimension_numbers<[1], [0], [0], [1], [0, 0, 1, 1], [], []>} : vector<8x128xbf16>, vector<128x512xbf16>, vector<8x512xf32> -> vector<8x512xf32>
    %19 = arith.addf %15, %18 : vector<8x512xf32>
    %20 = vector.extract_strided_slice %19 {offsets = [0, 0], sizes = [8, 128], strides = [1, 1]} : vector<8x512xf32> to vector<8x128xf32>
    %21 = arith.negf %20 : vector<8x128xf32>
    %22 = math.exp %21 : vector<8x128xf32>
    %cst_19 = arith.constant 1.000000e+00 : f32
    %23 = vector.broadcast %cst_19 : f32 to vector<8x128xf32>
    %24 = arith.addf %23, %22 : vector<8x128xf32>
    %25 = arith.divf %23, %24 : vector<8x128xf32>
    %26 = vector.extract_strided_slice %19 {offsets = [0, 128], sizes = [8, 128], strides = [1, 1]} : vector<8x512xf32> to vector<8x128xf32>
    %27 = arith.negf %26 : vector<8x128xf32>
    %28 = math.exp %27 : vector<8x128xf32>
    %cst_20 = arith.constant 1.000000e+00 : f32
    %29 = vector.broadcast %cst_20 : f32 to vector<8x128xf32>
    %30 = arith.addf %29, %28 : vector<8x128xf32>
    %31 = arith.divf %29, %30 : vector<8x128xf32>
    %32 = vector.extract_strided_slice %19 {offsets = [0, 256], sizes = [8, 128], strides = [1, 1]} : vector<8x512xf32> to vector<8x128xf32>
    %33 = math.tanh %32 : vector<8x128xf32>
    %34 = vector.extract_strided_slice %19 {offsets = [0, 384], sizes = [8, 128], strides = [1, 1]} : vector<8x512xf32> to vector<8x128xf32>
    %35 = arith.negf %34 : vector<8x128xf32>
    %36 = math.exp %35 : vector<8x128xf32>
    %cst_21 = arith.constant 1.000000e+00 : f32
    %37 = vector.broadcast %cst_21 : f32 to vector<8x128xf32>
    %38 = arith.addf %37, %36 : vector<8x128xf32>
    %39 = arith.divf %37, %38 : vector<8x128xf32>
    %c0_22 = arith.constant 0 : index
    %c0_23 = arith.constant 0 : index
    %40 = vector.load %arg11[%c0_22, %c0_23] : memref<8x128xf32, #tpu.memory_space<vmem>>, vector<8x128xf32>
    %41 = arith.mulf %31, %40 : vector<8x128xf32>
    %42 = arith.mulf %25, %33 : vector<8x128xf32>
    %43 = arith.addf %41, %42 : vector<8x128xf32>
    %44 = math.tanh %43 : vector<8x128xf32>
    %45 = arith.mulf %39, %44 : vector<8x128xf32>
    %c0_24 = arith.constant 0 : index
    %c0_25 = arith.constant 0 : index
    %46 = vector.load %arg11[%c0_24, %c0_25] : memref<8x128xf32, #tpu.memory_space<vmem>>, vector<8x128xf32>
    tpu.vector_store %arg11[%c0_24, %c0_25], %43 {strides = array<i32>} : memref<8x128xf32, #tpu.memory_space<vmem>>, vector<8x128xf32>,
    %c0_26 = arith.constant 0 : index
    %c0_27 = arith.constant 0 : index
    %47 = vector.load %arg10[%c0_26, %c0_27] : memref<8x128xf32, #tpu.memory_space<vmem>>, vector<8x128xf32>
    tpu.vector_store %arg10[%c0_26, %c0_27], %45 {strides = array<i32>} : memref<8x128xf32, #tpu.memory_space<vmem>>, vector<8x128xf32>,
    %48 = arith.index_cast %13 : i32 to index
    %c0_28 = arith.constant 0 : index
    %49 = vector.load %arg12[%48, %c0_28] : memref<64x128xf32, #tpu.memory_space<vmem>>, vector<8x128xf32>
    tpu.vector_store %arg12[%48, %c0_28], %45 {strides = array<i32>} : memref<64x128xf32, #tpu.memory_space<vmem>>, vector<8x128xf32>,
    %c1_i32 = arith.constant 1 : i32
    %c8_i32_29 = arith.constant 8 : i32
    %50 = arith.muli %c1_i32, %c8_i32_29 : i32
    %51 = tpu.assume_multiple %50, 8 : i32
    %52 = arith.index_cast %51 : i32 to index
    %c0_30 = arith.constant 0 : index
    %53 = vector.load %arg13[%52, %c0_30] : memref<64x512xf32, #tpu.memory_space<vmem>>, vector<8x512xf32>
    %c0_31 = arith.constant 0 : index
    %c0_32 = arith.constant 0 : index
    %54 = vector.load %arg10[%c0_31, %c0_32] : memref<8x128xf32, #tpu.memory_space<vmem>>, vector<8x128xf32>
    %55 = arith.truncf %54 : vector<8x128xf32> to vector<8x128xbf16>
    %cst_33 = arith.constant dense<0.000000e+00> : vector<8x512xf32>
    %56 = tpu.matmul %55, %0, %cst_33 {dimension_numbers = #tpu.dot_dimension_numbers<[1], [0], [0], [1], [0, 0, 1, 1], [], []>} : vector<8x128xbf16>, vector<128x512xbf16>, vector<8x512xf32> -> vector<8x512xf32>
    %57 = arith.addf %53, %56 : vector<8x512xf32>
    %58 = vector.extract_strided_slice %57 {offsets = [0, 0], sizes = [8, 128], strides = [1, 1]} : vector<8x512xf32> to vector<8x128xf32>
    %59 = arith.negf %58 : vector<8x128xf32>
    %60 = math.exp %59 : vector<8x128xf32>
    %cst_34 = arith.constant 1.000000e+00 : f32
    %61 = vector.broadcast %cst_34 : f32 to vector<8x128xf32>
    %62 = arith.addf %61, %60 : vector<8x128xf32>
    %63 = arith.divf %61, %62 : vector<8x128xf32>
    %64 = vector.extract_strided_slice %57 {offsets = [0, 128], sizes = [8, 128], strides = [1, 1]} : vector<8x512xf32> to vector<8x128xf32>
    %65 = arith.negf %64 : vector<8x128xf32>
    %66 = math.exp %65 : vector<8x128xf32>
    %cst_35 = arith.constant 1.000000e+00 : f32
    %67 = vector.broadcast %cst_35 : f32 to vector<8x128xf32>
    %68 = arith.addf %67, %66 : vector<8x128xf32>
    %69 = arith.divf %67, %68 : vector<8x128xf32>
    %70 = vector.extract_strided_slice %57 {offsets = [0, 256], sizes = [8, 128], strides = [1, 1]} : vector<8x512xf32> to vector<8x128xf32>
    %71 = math.tanh %70 : vector<8x128xf32>
    %72 = vector.extract_strided_slice %57 {offsets = [0, 384], sizes = [8, 128], strides = [1, 1]} : vector<8x512xf32> to vector<8x128xf32>
    %73 = arith.negf %72 : vector<8x128xf32>
    %74 = math.exp %73 : vector<8x128xf32>
    %cst_36 = arith.constant 1.000000e+00 : f32
    %75 = vector.broadcast %cst_36 : f32 to vector<8x128xf32>
    %76 = arith.addf %75, %74 : vector<8x128xf32>
    %77 = arith.divf %75, %76 : vector<8x128xf32>
    %c0_37 = arith.constant 0 : index
    %c0_38 = arith.constant 0 : index
    %78 = vector.load %arg11[%c0_37, %c0_38] : memref<8x128xf32, #tpu.memory_space<vmem>>, vector<8x128xf32>
    %79 = arith.mulf %69, %78 : vector<8x128xf32>
    %80 = arith.mulf %63, %71 : vector<8x128xf32>
    %81 = arith.addf %79, %80 : vector<8x128xf32>
    %82 = math.tanh %81 : vector<8x128xf32>
    %83 = arith.mulf %77, %82 : vector<8x128xf32>
    %c0_39 = arith.constant 0 : index
    %c0_40 = arith.constant 0 : index
    %84 = vector.load %arg11[%c0_39, %c0_40] : memref<8x128xf32, #tpu.memory_space<vmem>>, vector<8x128xf32>
    tpu.vector_store %arg11[%c0_39, %c0_40], %81 {strides = array<i32>} : memref<8x128xf32, #tpu.memory_space<vmem>>, vector<8x128xf32>,
    %c0_41 = arith.constant 0 : index
    %c0_42 = arith.constant 0 : index
    %85 = vector.load %arg10[%c0_41, %c0_42] : memref<8x128xf32, #tpu.memory_space<vmem>>, vector<8x128xf32>
    tpu.vector_store %arg10[%c0_41, %c0_42], %83 {strides = array<i32>} : memref<8x128xf32, #tpu.memory_space<vmem>>, vector<8x128xf32>,
    %86 = arith.index_cast %51 : i32 to index
    %c0_43 = arith.constant 0 : index
    %87 = vector.load %arg12[%86, %c0_43] : memref<64x128xf32, #tpu.memory_space<vmem>>, vector<8x128xf32>
    tpu.vector_store %arg12[%86, %c0_43], %83 {strides = array<i32>} : memref<64x128xf32, #tpu.memory_space<vmem>>, vector<8x128xf32>,
    %c2_i32 = arith.constant 2 : i32
    %c8_i32_44 = arith.constant 8 : i32
    %88 = arith.muli %c2_i32, %c8_i32_44 : i32
    %89 = tpu.assume_multiple %88, 8 : i32
    %90 = arith.index_cast %89 : i32 to index
    %c0_45 = arith.constant 0 : index
    %91 = vector.load %arg13[%90, %c0_45] : memref<64x512xf32, #tpu.memory_space<vmem>>, vector<8x512xf32>
    %c0_46 = arith.constant 0 : index
    %c0_47 = arith.constant 0 : index
    %92 = vector.load %arg10[%c0_46, %c0_47] : memref<8x128xf32, #tpu.memory_space<vmem>>, vector<8x128xf32>
    %93 = arith.truncf %92 : vector<8x128xf32> to vector<8x128xbf16>
    %cst_48 = arith.constant dense<0.000000e+00> : vector<8x512xf32>
    %94 = tpu.matmul %93, %0, %cst_48 {dimension_numbers = #tpu.dot_dimension_numbers<[1], [0], [0], [1], [0, 0, 1, 1], [], []>} : vector<8x128xbf16>, vector<128x512xbf16>, vector<8x512xf32> -> vector<8x512xf32>
    %95 = arith.addf %91, %94 : vector<8x512xf32>
    %96 = vector.extract_strided_slice %95 {offsets = [0, 0], sizes = [8, 128], strides = [1, 1]} : vector<8x512xf32> to vector<8x128xf32>
    %97 = arith.negf %96 : vector<8x128xf32>
    %98 = math.exp %97 : vector<8x128xf32>
    %cst_49 = arith.constant 1.000000e+00 : f32
    %99 = vector.broadcast %cst_49 : f32 to vector<8x128xf32>
    %100 = arith.addf %99, %98 : vector<8x128xf32>
    %101 = arith.divf %99, %100 : vector<8x128xf32>
    %102 = vector.extract_strided_slice %95 {offsets = [0, 128], sizes = [8, 128], strides = [1, 1]} : vector<8x512xf32> to vector<8x128xf32>
    %103 = arith.negf %102 : vector<8x128xf32>
    %104 = math.exp %103 : vector<8x128xf32>
    %cst_50 = arith.constant 1.000000e+00 : f32
    %105 = vector.broadcast %cst_50 : f32 to vector<8x128xf32>
    %106 = arith.addf %105, %104 : vector<8x128xf32>
    %107 = arith.divf %105, %106 : vector<8x128xf32>
    %108 = vector.extract_strided_slice %95 {offsets = [0, 256], sizes = [8, 128], strides = [1, 1]} : vector<8x512xf32> to vector<8x128xf32>
    %109 = math.tanh %108 : vector<8x128xf32>
    %110 = vector.extract_strided_slice %95 {offsets = [0, 384], sizes = [8, 128], strides = [1, 1]} : vector<8x512xf32> to vector<8x128xf32>
    %111 = arith.negf %110 : vector<8x128xf32>
    %112 = math.exp %111 : vector<8x128xf32>
    %cst_51 = arith.constant 1.000000e+00 : f32
    %113 = vector.broadcast %cst_51 : f32 to vector<8x128xf32>
    %114 = arith.addf %113, %112 : vector<8x128xf32>
    %115 = arith.divf %113, %114 : vector<8x128xf32>
    %c0_52 = arith.constant 0 : index
    %c0_53 = arith.constant 0 : index
    %116 = vector.load %arg11[%c0_52, %c0_53] : memref<8x128xf32, #tpu.memory_space<vmem>>, vector<8x128xf32>
    %117 = arith.mulf %107, %116 : vector<8x128xf32>
    %118 = arith.mulf %101, %109 : vector<8x128xf32>
    %119 = arith.addf %117, %118 : vector<8x128xf32>
    %120 = math.tanh %119 : vector<8x128xf32>
    %121 = arith.mulf %115, %120 : vector<8x128xf32>
    %c0_54 = arith.constant 0 : index
    %c0_55 = arith.constant 0 : index
    %122 = vector.load %arg11[%c0_54, %c0_55] : memref<8x128xf32, #tpu.memory_space<vmem>>, vector<8x128xf32>
    tpu.vector_store %arg11[%c0_54, %c0_55], %119 {strides = array<i32>} : memref<8x128xf32, #tpu.memory_space<vmem>>, vector<8x128xf32>,
    %c0_56 = arith.constant 0 : index
    %c0_57 = arith.constant 0 : index
    %123 = vector.load %arg10[%c0_56, %c0_57] : memref<8x128xf32, #tpu.memory_space<vmem>>, vector<8x128xf32>
    tpu.vector_store %arg10[%c0_56, %c0_57], %121 {strides = array<i32>} : memref<8x128xf32, #tpu.memory_space<vmem>>, vector<8x128xf32>,
    %124 = arith.index_cast %89 : i32 to index
    %c0_58 = arith.constant 0 : index
    %125 = vector.load %arg12[%124, %c0_58] : memref<64x128xf32, #tpu.memory_space<vmem>>, vector<8x128xf32>
    tpu.vector_store %arg12[%124, %c0_58], %121 {strides = array<i32>} : memref<64x128xf32, #tpu.memory_space<vmem>>, vector<8x128xf32>,
    %c3_i32 = arith.constant 3 : i32
    %c8_i32_59 = arith.constant 8 : i32
    %126 = arith.muli %c3_i32, %c8_i32_59 : i32
    %127 = tpu.assume_multiple %126, 8 : i32
    %128 = arith.index_cast %127 : i32 to index
    %c0_60 = arith.constant 0 : index
    %129 = vector.load %arg13[%128, %c0_60] : memref<64x512xf32, #tpu.memory_space<vmem>>, vector<8x512xf32>
    %c0_61 = arith.constant 0 : index
    %c0_62 = arith.constant 0 : index
    %130 = vector.load %arg10[%c0_61, %c0_62] : memref<8x128xf32, #tpu.memory_space<vmem>>, vector<8x128xf32>
    %131 = arith.truncf %130 : vector<8x128xf32> to vector<8x128xbf16>
    %cst_63 = arith.constant dense<0.000000e+00> : vector<8x512xf32>
    %132 = tpu.matmul %131, %0, %cst_63 {dimension_numbers = #tpu.dot_dimension_numbers<[1], [0], [0], [1], [0, 0, 1, 1], [], []>} : vector<8x128xbf16>, vector<128x512xbf16>, vector<8x512xf32> -> vector<8x512xf32>
    %133 = arith.addf %129, %132 : vector<8x512xf32>
    %134 = vector.extract_strided_slice %133 {offsets = [0, 0], sizes = [8, 128], strides = [1, 1]} : vector<8x512xf32> to vector<8x128xf32>
    %135 = arith.negf %134 : vector<8x128xf32>
    %136 = math.exp %135 : vector<8x128xf32>
    %cst_64 = arith.constant 1.000000e+00 : f32
    %137 = vector.broadcast %cst_64 : f32 to vector<8x128xf32>
    %138 = arith.addf %137, %136 : vector<8x128xf32>
    %139 = arith.divf %137, %138 : vector<8x128xf32>
    %140 = vector.extract_strided_slice %133 {offsets = [0, 128], sizes = [8, 128], strides = [1, 1]} : vector<8x512xf32> to vector<8x128xf32>
    %141 = arith.negf %140 : vector<8x128xf32>
    %142 = math.exp %141 : vector<8x128xf32>
    %cst_65 = arith.constant 1.000000e+00 : f32
    %143 = vector.broadcast %cst_65 : f32 to vector<8x128xf32>
    %144 = arith.addf %143, %142 : vector<8x128xf32>
    %145 = arith.divf %143, %144 : vector<8x128xf32>
    %146 = vector.extract_strided_slice %133 {offsets = [0, 256], sizes = [8, 128], strides = [1, 1]} : vector<8x512xf32> to vector<8x128xf32>
    %147 = math.tanh %146 : vector<8x128xf32>
    %148 = vector.extract_strided_slice %133 {offsets = [0, 384], sizes = [8, 128], strides = [1, 1]} : vector<8x512xf32> to vector<8x128xf32>
    %149 = arith.negf %148 : vector<8x128xf32>
    %150 = math.exp %149 : vector<8x128xf32>
    %cst_66 = arith.constant 1.000000e+00 : f32
    %151 = vector.broadcast %cst_66 : f32 to vector<8x128xf32>
    %152 = arith.addf %151, %150 : vector<8x128xf32>
    %153 = arith.divf %151, %152 : vector<8x128xf32>
    %c0_67 = arith.constant 0 : index
    %c0_68 = arith.constant 0 : index
    %154 = vector.load %arg11[%c0_67, %c0_68] : memref<8x128xf32, #tpu.memory_space<vmem>>, vector<8x128xf32>
    %155 = arith.mulf %145, %154 : vector<8x128xf32>
    %156 = arith.mulf %139, %147 : vector<8x128xf32>
    %157 = arith.addf %155, %156 : vector<8x128xf32>
    %158 = math.tanh %157 : vector<8x128xf32>
    %159 = arith.mulf %153, %158 : vector<8x128xf32>
    %c0_69 = arith.constant 0 : index
    %c0_70 = arith.constant 0 : index
    %160 = vector.load %arg11[%c0_69, %c0_70] : memref<8x128xf32, #tpu.memory_space<vmem>>, vector<8x128xf32>
    tpu.vector_store %arg11[%c0_69, %c0_70], %157 {strides = array<i32>} : memref<8x128xf32, #tpu.memory_space<vmem>>, vector<8x128xf32>,
    %c0_71 = arith.constant 0 : index
    %c0_72 = arith.constant 0 : index
    %161 = vector.load %arg10[%c0_71, %c0_72] : memref<8x128xf32, #tpu.memory_space<vmem>>, vector<8x128xf32>
    tpu.vector_store %arg10[%c0_71, %c0_72], %159 {strides = array<i32>} : memref<8x128xf32, #tpu.memory_space<vmem>>, vector<8x128xf32>,
    %162 = arith.index_cast %127 : i32 to index
    %c0_73 = arith.constant 0 : index
    %163 = vector.load %arg12[%162, %c0_73] : memref<64x128xf32, #tpu.memory_space<vmem>>, vector<8x128xf32>
    tpu.vector_store %arg12[%162, %c0_73], %159 {strides = array<i32>} : memref<64x128xf32, #tpu.memory_space<vmem>>, vector<8x128xf32>,
    %c4_i32 = arith.constant 4 : i32
    %c8_i32_74 = arith.constant 8 : i32
    %164 = arith.muli %c4_i32, %c8_i32_74 : i32
    %165 = tpu.assume_multiple %164, 8 : i32
    %166 = arith.index_cast %165 : i32 to index
    %c0_75 = arith.constant 0 : index
    %167 = vector.load %arg13[%166, %c0_75] : memref<64x512xf32, #tpu.memory_space<vmem>>, vector<8x512xf32>
    %c0_76 = arith.constant 0 : index
    %c0_77 = arith.constant 0 : index
    %168 = vector.load %arg10[%c0_76, %c0_77] : memref<8x128xf32, #tpu.memory_space<vmem>>, vector<8x128xf32>
    %169 = arith.truncf %168 : vector<8x128xf32> to vector<8x128xbf16>
    %cst_78 = arith.constant dense<0.000000e+00> : vector<8x512xf32>
    %170 = tpu.matmul %169, %0, %cst_78 {dimension_numbers = #tpu.dot_dimension_numbers<[1], [0], [0], [1], [0, 0, 1, 1], [], []>} : vector<8x128xbf16>, vector<128x512xbf16>, vector<8x512xf32> -> vector<8x512xf32>
    %171 = arith.addf %167, %170 : vector<8x512xf32>
    %172 = vector.extract_strided_slice %171 {offsets = [0, 0], sizes = [8, 128], strides = [1, 1]} : vector<8x512xf32> to vector<8x128xf32>
    %173 = arith.negf %172 : vector<8x128xf32>
    %174 = math.exp %173 : vector<8x128xf32>
    %cst_79 = arith.constant 1.000000e+00 : f32
    %175 = vector.broadcast %cst_79 : f32 to vector<8x128xf32>
    %176 = arith.addf %175, %174 : vector<8x128xf32>
    %177 = arith.divf %175, %176 : vector<8x128xf32>
    %178 = vector.extract_strided_slice %171 {offsets = [0, 128], sizes = [8, 128], strides = [1, 1]} : vector<8x512xf32> to vector<8x128xf32>
    %179 = arith.negf %178 : vector<8x128xf32>
    %180 = math.exp %179 : vector<8x128xf32>
    %cst_80 = arith.constant 1.000000e+00 : f32
    %181 = vector.broadcast %cst_80 : f32 to vector<8x128xf32>
    %182 = arith.addf %181, %180 : vector<8x128xf32>
    %183 = arith.divf %181, %182 : vector<8x128xf32>
    %184 = vector.extract_strided_slice %171 {offsets = [0, 256], sizes = [8, 128], strides = [1, 1]} : vector<8x512xf32> to vector<8x128xf32>
    %185 = math.tanh %184 : vector<8x128xf32>
    %186 = vector.extract_strided_slice %171 {offsets = [0, 384], sizes = [8, 128], strides = [1, 1]} : vector<8x512xf32> to vector<8x128xf32>
    %187 = arith.negf %186 : vector<8x128xf32>
    %188 = math.exp %187 : vector<8x128xf32>
    %cst_81 = arith.constant 1.000000e+00 : f32
    %189 = vector.broadcast %cst_81 : f32 to vector<8x128xf32>
    %190 = arith.addf %189, %188 : vector<8x128xf32>
    %191 = arith.divf %189, %190 : vector<8x128xf32>
    %c0_82 = arith.constant 0 : index
    %c0_83 = arith.constant 0 : index
    %192 = vector.load %arg11[%c0_82, %c0_83] : memref<8x128xf32, #tpu.memory_space<vmem>>, vector<8x128xf32>
    %193 = arith.mulf %183, %192 : vector<8x128xf32>
    %194 = arith.mulf %177, %185 : vector<8x128xf32>
    %195 = arith.addf %193, %194 : vector<8x128xf32>
    %196 = math.tanh %195 : vector<8x128xf32>
    %197 = arith.mulf %191, %196 : vector<8x128xf32>
    %c0_84 = arith.constant 0 : index
    %c0_85 = arith.constant 0 : index
    %198 = vector.load %arg11[%c0_84, %c0_85] : memref<8x128xf32, #tpu.memory_space<vmem>>, vector<8x128xf32>
    tpu.vector_store %arg11[%c0_84, %c0_85], %195 {strides = array<i32>} : memref<8x128xf32, #tpu.memory_space<vmem>>, vector<8x128xf32>,
    %c0_86 = arith.constant 0 : index
    %c0_87 = arith.constant 0 : index
    %199 = vector.load %arg10[%c0_86, %c0_87] : memref<8x128xf32, #tpu.memory_space<vmem>>, vector<8x128xf32>
    tpu.vector_store %arg10[%c0_86, %c0_87], %197 {strides = array<i32>} : memref<8x128xf32, #tpu.memory_space<vmem>>, vector<8x128xf32>,
    %200 = arith.index_cast %165 : i32 to index
    %c0_88 = arith.constant 0 : index
    %201 = vector.load %arg12[%200, %c0_88] : memref<64x128xf32, #tpu.memory_space<vmem>>, vector<8x128xf32>
    tpu.vector_store %arg12[%200, %c0_88], %197 {strides = array<i32>} : memref<64x128xf32, #tpu.memory_space<vmem>>, vector<8x128xf32>,
    %c5_i32 = arith.constant 5 : i32
    %c8_i32_89 = arith.constant 8 : i32
    %202 = arith.muli %c5_i32, %c8_i32_89 : i32
    %203 = tpu.assume_multiple %202, 8 : i32
    %204 = arith.index_cast %203 : i32 to index
    %c0_90 = arith.constant 0 : index
    %205 = vector.load %arg13[%204, %c0_90] : memref<64x512xf32, #tpu.memory_space<vmem>>, vector<8x512xf32>
    %c0_91 = arith.constant 0 : index
    %c0_92 = arith.constant 0 : index
    %206 = vector.load %arg10[%c0_91, %c0_92] : memref<8x128xf32, #tpu.memory_space<vmem>>, vector<8x128xf32>
    %207 = arith.truncf %206 : vector<8x128xf32> to vector<8x128xbf16>
    %cst_93 = arith.constant dense<0.000000e+00> : vector<8x512xf32>
    %208 = tpu.matmul %207, %0, %cst_93 {dimension_numbers = #tpu.dot_dimension_numbers<[1], [0], [0], [1], [0, 0, 1, 1], [], []>} : vector<8x128xbf16>, vector<128x512xbf16>, vector<8x512xf32> -> vector<8x512xf32>
    %209 = arith.addf %205, %208 : vector<8x512xf32>
    %210 = vector.extract_strided_slice %209 {offsets = [0, 0], sizes = [8, 128], strides = [1, 1]} : vector<8x512xf32> to vector<8x128xf32>
    %211 = arith.negf %210 : vector<8x128xf32>
    %212 = math.exp %211 : vector<8x128xf32>
    %cst_94 = arith.constant 1.000000e+00 : f32
    %213 = vector.broadcast %cst_94 : f32 to vector<8x128xf32>
    %214 = arith.addf %213, %212 : vector<8x128xf32>
    %215 = arith.divf %213, %214 : vector<8x128xf32>
    %216 = vector.extract_strided_slice %209 {offsets = [0, 128], sizes = [8, 128], strides = [1, 1]} : vector<8x512xf32> to vector<8x128xf32>
    %217 = arith.negf %216 : vector<8x128xf32>
    %218 = math.exp %217 : vector<8x128xf32>
    %cst_95 = arith.constant 1.000000e+00 : f32
    %219 = vector.broadcast %cst_95 : f32 to vector<8x128xf32>
    %220 = arith.addf %219, %218 : vector<8x128xf32>
    %221 = arith.divf %219, %220 : vector<8x128xf32>
    %222 = vector.extract_strided_slice %209 {offsets = [0, 256], sizes = [8, 128], strides = [1, 1]} : vector<8x512xf32> to vector<8x128xf32>
    %223 = math.tanh %222 : vector<8x128xf32>
    %224 = vector.extract_strided_slice %209 {offsets = [0, 384], sizes = [8, 128], strides = [1, 1]} : vector<8x512xf32> to vector<8x128xf32>
    %225 = arith.negf %224 : vector<8x128xf32>
    %226 = math.exp %225 : vector<8x128xf32>
    %cst_96 = arith.constant 1.000000e+00 : f32
    %227 = vector.broadcast %cst_96 : f32 to vector<8x128xf32>
    %228 = arith.addf %227, %226 : vector<8x128xf32>
    %229 = arith.divf %227, %228 : vector<8x128xf32>
    %c0_97 = arith.constant 0 : index
    %c0_98 = arith.constant 0 : index
    %230 = vector.load %arg11[%c0_97, %c0_98] : memref<8x128xf32, #tpu.memory_space<vmem>>, vector<8x128xf32>
    %231 = arith.mulf %221, %230 : vector<8x128xf32>
    %232 = arith.mulf %215, %223 : vector<8x128xf32>
    %233 = arith.addf %231, %232 : vector<8x128xf32>
    %234 = math.tanh %233 : vector<8x128xf32>
    %235 = arith.mulf %229, %234 : vector<8x128xf32>
    %c0_99 = arith.constant 0 : index
    %c0_100 = arith.constant 0 : index
    %236 = vector.load %arg11[%c0_99, %c0_100] : memref<8x128xf32, #tpu.memory_space<vmem>>, vector<8x128xf32>
    tpu.vector_store %arg11[%c0_99, %c0_100], %233 {strides = array<i32>} : memref<8x128xf32, #tpu.memory_space<vmem>>, vector<8x128xf32>,
    %c0_101 = arith.constant 0 : index
    %c0_102 = arith.constant 0 : index
    %237 = vector.load %arg10[%c0_101, %c0_102] : memref<8x128xf32, #tpu.memory_space<vmem>>, vector<8x128xf32>
    tpu.vector_store %arg10[%c0_101, %c0_102], %235 {strides = array<i32>} : memref<8x128xf32, #tpu.memory_space<vmem>>, vector<8x128xf32>,
    %238 = arith.index_cast %203 : i32 to index
    %c0_103 = arith.constant 0 : index
    %239 = vector.load %arg12[%238, %c0_103] : memref<64x128xf32, #tpu.memory_space<vmem>>, vector<8x128xf32>
    tpu.vector_store %arg12[%238, %c0_103], %235 {strides = array<i32>} : memref<64x128xf32, #tpu.memory_space<vmem>>, vector<8x128xf32>,
    %c6_i32 = arith.constant 6 : i32
    %c8_i32_104 = arith.constant 8 : i32
    %240 = arith.muli %c6_i32, %c8_i32_104 : i32
    %241 = tpu.assume_multiple %240, 8 : i32
    %242 = arith.index_cast %241 : i32 to index
    %c0_105 = arith.constant 0 : index
    %243 = vector.load %arg13[%242, %c0_105] : memref<64x512xf32, #tpu.memory_space<vmem>>, vector<8x512xf32>
    %c0_106 = arith.constant 0 : index
    %c0_107 = arith.constant 0 : index
    %244 = vector.load %arg10[%c0_106, %c0_107] : memref<8x128xf32, #tpu.memory_space<vmem>>, vector<8x128xf32>
    %245 = arith.truncf %244 : vector<8x128xf32> to vector<8x128xbf16>
    %cst_108 = arith.constant dense<0.000000e+00> : vector<8x512xf32>
    %246 = tpu.matmul %245, %0, %cst_108 {dimension_numbers = #tpu.dot_dimension_numbers<[1], [0], [0], [1], [0, 0, 1, 1], [], []>} : vector<8x128xbf16>, vector<128x512xbf16>, vector<8x512xf32> -> vector<8x512xf32>
    %247 = arith.addf %243, %246 : vector<8x512xf32>
    %248 = vector.extract_strided_slice %247 {offsets = [0, 0], sizes = [8, 128], strides = [1, 1]} : vector<8x512xf32> to vector<8x128xf32>
    %249 = arith.negf %248 : vector<8x128xf32>
    %250 = math.exp %249 : vector<8x128xf32>
    %cst_109 = arith.constant 1.000000e+00 : f32
    %251 = vector.broadcast %cst_109 : f32 to vector<8x128xf32>
    %252 = arith.addf %251, %250 : vector<8x128xf32>
    %253 = arith.divf %251, %252 : vector<8x128xf32>
    %254 = vector.extract_strided_slice %247 {offsets = [0, 128], sizes = [8, 128], strides = [1, 1]} : vector<8x512xf32> to vector<8x128xf32>
    %255 = arith.negf %254 : vector<8x128xf32>
    %256 = math.exp %255 : vector<8x128xf32>
    %cst_110 = arith.constant 1.000000e+00 : f32
    %257 = vector.broadcast %cst_110 : f32 to vector<8x128xf32>
    %258 = arith.addf %257, %256 : vector<8x128xf32>
    %259 = arith.divf %257, %258 : vector<8x128xf32>
    %260 = vector.extract_strided_slice %247 {offsets = [0, 256], sizes = [8, 128], strides = [1, 1]} : vector<8x512xf32> to vector<8x128xf32>
    %261 = math.tanh %260 : vector<8x128xf32>
    %262 = vector.extract_strided_slice %247 {offsets = [0, 384], sizes = [8, 128], strides = [1, 1]} : vector<8x512xf32> to vector<8x128xf32>
    %263 = arith.negf %262 : vector<8x128xf32>
    %264 = math.exp %263 : vector<8x128xf32>
    %cst_111 = arith.constant 1.000000e+00 : f32
    %265 = vector.broadcast %cst_111 : f32 to vector<8x128xf32>
    %266 = arith.addf %265, %264 : vector<8x128xf32>
    %267 = arith.divf %265, %266 : vector<8x128xf32>
    %c0_112 = arith.constant 0 : index
    %c0_113 = arith.constant 0 : index
    %268 = vector.load %arg11[%c0_112, %c0_113] : memref<8x128xf32, #tpu.memory_space<vmem>>, vector<8x128xf32>
    %269 = arith.mulf %259, %268 : vector<8x128xf32>
    %270 = arith.mulf %253, %261 : vector<8x128xf32>
    %271 = arith.addf %269, %270 : vector<8x128xf32>
    %272 = math.tanh %271 : vector<8x128xf32>
    %273 = arith.mulf %267, %272 : vector<8x128xf32>
    %c0_114 = arith.constant 0 : index
    %c0_115 = arith.constant 0 : index
    %274 = vector.load %arg11[%c0_114, %c0_115] : memref<8x128xf32, #tpu.memory_space<vmem>>, vector<8x128xf32>
    tpu.vector_store %arg11[%c0_114, %c0_115], %271 {strides = array<i32>} : memref<8x128xf32, #tpu.memory_space<vmem>>, vector<8x128xf32>,
    %c0_116 = arith.constant 0 : index
    %c0_117 = arith.constant 0 : index
    %275 = vector.load %arg10[%c0_116, %c0_117] : memref<8x128xf32, #tpu.memory_space<vmem>>, vector<8x128xf32>
    tpu.vector_store %arg10[%c0_116, %c0_117], %273 {strides = array<i32>} : memref<8x128xf32, #tpu.memory_space<vmem>>, vector<8x128xf32>,
    %276 = arith.index_cast %241 : i32 to index
    %c0_118 = arith.constant 0 : index
    %277 = vector.load %arg12[%276, %c0_118] : memref<64x128xf32, #tpu.memory_space<vmem>>, vector<8x128xf32>
    tpu.vector_store %arg12[%276, %c0_118], %273 {strides = array<i32>} : memref<64x128xf32, #tpu.memory_space<vmem>>, vector<8x128xf32>,
    %c7_i32 = arith.constant 7 : i32
    %c8_i32_119 = arith.constant 8 : i32
    %278 = arith.muli %c7_i32, %c8_i32_119 : i32
    %279 = tpu.assume_multiple %278, 8 : i32
    %280 = arith.index_cast %279 : i32 to index
    %c0_120 = arith.constant 0 : index
    %281 = vector.load %arg13[%280, %c0_120] : memref<64x512xf32, #tpu.memory_space<vmem>>, vector<8x512xf32>
    %c0_121 = arith.constant 0 : index
    %c0_122 = arith.constant 0 : index
    %282 = vector.load %arg10[%c0_121, %c0_122] : memref<8x128xf32, #tpu.memory_space<vmem>>, vector<8x128xf32>
    %283 = arith.truncf %282 : vector<8x128xf32> to vector<8x128xbf16>
    %cst_123 = arith.constant dense<0.000000e+00> : vector<8x512xf32>
    %284 = tpu.matmul %283, %0, %cst_123 {dimension_numbers = #tpu.dot_dimension_numbers<[1], [0], [0], [1], [0, 0, 1, 1], [], []>} : vector<8x128xbf16>, vector<128x512xbf16>, vector<8x512xf32> -> vector<8x512xf32>
    %285 = arith.addf %281, %284 : vector<8x512xf32>
    %286 = vector.extract_strided_slice %285 {offsets = [0, 0], sizes = [8, 128], strides = [1, 1]} : vector<8x512xf32> to vector<8x128xf32>
    %287 = arith.negf %286 : vector<8x128xf32>
    %288 = math.exp %287 : vector<8x128xf32>
    %cst_124 = arith.constant 1.000000e+00 : f32
    %289 = vector.broadcast %cst_124 : f32 to vector<8x128xf32>
    %290 = arith.addf %289, %288 : vector<8x128xf32>
    %291 = arith.divf %289, %290 : vector<8x128xf32>
    %292 = vector.extract_strided_slice %285 {offsets = [0, 128], sizes = [8, 128], strides = [1, 1]} : vector<8x512xf32> to vector<8x128xf32>
    %293 = arith.negf %292 : vector<8x128xf32>
    %294 = math.exp %293 : vector<8x128xf32>
    %cst_125 = arith.constant 1.000000e+00 : f32
    %295 = vector.broadcast %cst_125 : f32 to vector<8x128xf32>
    %296 = arith.addf %295, %294 : vector<8x128xf32>
    %297 = arith.divf %295, %296 : vector<8x128xf32>
    %298 = vector.extract_strided_slice %285 {offsets = [0, 256], sizes = [8, 128], strides = [1, 1]} : vector<8x512xf32> to vector<8x128xf32>
    %299 = math.tanh %298 : vector<8x128xf32>
    %300 = vector.extract_strided_slice %285 {offsets = [0, 384], sizes = [8, 128], strides = [1, 1]} : vector<8x512xf32> to vector<8x128xf32>
    %301 = arith.negf %300 : vector<8x128xf32>
    %302 = math.exp %301 : vector<8x128xf32>
    %cst_126 = arith.constant 1.000000e+00 : f32
    %303 = vector.broadcast %cst_126 : f32 to vector<8x128xf32>
    %304 = arith.addf %303, %302 : vector<8x128xf32>
    %305 = arith.divf %303, %304 : vector<8x128xf32>
    %c0_127 = arith.constant 0 : index
    %c0_128 = arith.constant 0 : index
    %306 = vector.load %arg11[%c0_127, %c0_128] : memref<8x128xf32, #tpu.memory_space<vmem>>, vector<8x128xf32>
    %307 = arith.mulf %297, %306 : vector<8x128xf32>
    %308 = arith.mulf %291, %299 : vector<8x128xf32>
    %309 = arith.addf %307, %308 : vector<8x128xf32>
    %310 = math.tanh %309 : vector<8x128xf32>
    %311 = arith.mulf %305, %310 : vector<8x128xf32>
    %c0_129 = arith.constant 0 : index
    %c0_130 = arith.constant 0 : index
    %312 = vector.load %arg11[%c0_129, %c0_130] : memref<8x128xf32, #tpu.memory_space<vmem>>, vector<8x128xf32>
    tpu.vector_store %arg11[%c0_129, %c0_130], %309 {strides = array<i32>} : memref<8x128xf32, #tpu.memory_space<vmem>>, vector<8x128xf32>,
    %c0_131 = arith.constant 0 : index
    %c0_132 = arith.constant 0 : index
    %313 = vector.load %arg10[%c0_131, %c0_132] : memref<8x128xf32, #tpu.memory_space<vmem>>, vector<8x128xf32>
    tpu.vector_store %arg10[%c0_131, %c0_132], %311 {strides = array<i32>} : memref<8x128xf32, #tpu.memory_space<vmem>>, vector<8x128xf32>,
    %314 = arith.index_cast %279 : i32 to index
    %c0_133 = arith.constant 0 : index
    %315 = vector.load %arg12[%314, %c0_133] : memref<64x128xf32, #tpu.memory_space<vmem>>, vector<8x128xf32>
    tpu.vector_store %arg12[%314, %c0_133], %311 {strides = array<i32>} : memref<64x128xf32, #tpu.memory_space<vmem>>, vector<8x128xf32>,
    %c8_i32_134 = arith.constant 8 : i32
    %c0_135 = arith.constant 0 : index
    %c0_136 = arith.constant 0 : index
    %316 = vector.load %arg4[%c0_135, %c0_136] : memref<128x512xbf16, #tpu.memory_space<vmem>>, vector<128x512xbf16>
    %c0_137 = arith.constant 0 : index
    %c0_138 = arith.constant 0 : index
    %317 = vector.load %arg12[%c0_137, %c0_138] : memref<64x128xf32, #tpu.memory_space<vmem>>, vector<64x128xf32>
    %318 = arith.truncf %317 : vector<64x128xf32> to vector<64x128xbf16>
    %c0_139 = arith.constant 0 : index
    %c0_140 = arith.constant 0 : index
    %319 = vector.load %arg2[%c0_139, %c0_140] : memref<128x512xbf16, #tpu.memory_space<vmem>>, vector<128x512xbf16>
    %cst_141 = arith.constant dense<0.000000e+00> : vector<64x512xf32>
    %320 = tpu.matmul %318, %319, %cst_141 {dimension_numbers = #tpu.dot_dimension_numbers<[1], [0], [0], [1], [0, 0, 1, 1], [], []>} : vector<64x128xbf16>, vector<128x512xbf16>, vector<64x512xf32> -> vector<64x512xf32>
    %c0_142 = arith.constant 0 : index
    %c0_143 = arith.constant 0 : index
    %321 = vector.load %arg6[%c0_142, %c0_143] : memref<1x512xf32, #tpu.memory_space<vmem>>, vector<1x512xf32>
    %322 = vector.broadcast %321 : vector<1x512xf32> to vector<64x512xf32>
    %323 = arith.addf %320, %322 : vector<64x512xf32>
    %c0_144 = arith.constant 0 : index
    %c0_145 = arith.constant 0 : index
    %324 = vector.load %arg13[%c0_144, %c0_145] : memref<64x512xf32, #tpu.memory_space<vmem>>, vector<64x512xf32>
    tpu.vector_store %arg13[%c0_144, %c0_145], %323 {strides = array<i32>} : memref<64x512xf32, #tpu.memory_space<vmem>>, vector<64x512xf32>,
    %cst_146 = arith.constant 0.000000e+00 : f32
    %325 = vector.broadcast %cst_146 : f32 to vector<8x128xf32>
    %c0_147 = arith.constant 0 : index
    %c0_148 = arith.constant 0 : index
    %326 = vector.load %arg10[%c0_147, %c0_148] : memref<8x128xf32, #tpu.memory_space<vmem>>, vector<8x128xf32>
    tpu.vector_store %arg10[%c0_147, %c0_148], %325 {strides = array<i32>} : memref<8x128xf32, #tpu.memory_space<vmem>>, vector<8x128xf32>,
    %cst_149 = arith.constant 0.000000e+00 : f32
    %327 = vector.broadcast %cst_149 : f32 to vector<8x128xf32>
    %c0_150 = arith.constant 0 : index
    %c0_151 = arith.constant 0 : index
    %328 = vector.load %arg11[%c0_150, %c0_151] : memref<8x128xf32, #tpu.memory_space<vmem>>, vector<8x128xf32>
    tpu.vector_store %arg11[%c0_150, %c0_151], %327 {strides = array<i32>} : memref<8x128xf32, #tpu.memory_space<vmem>>, vector<8x128xf32>,
    %c0_i32_152 = arith.constant 0 : i32
    %c8_i32_153 = arith.constant 8 : i32
    %329 = arith.muli %c0_i32_152, %c8_i32_153 : i32
    %330 = tpu.assume_multiple %329, 8 : i32
    %331 = arith.index_cast %330 : i32 to index
    %c0_154 = arith.constant 0 : index
    %332 = vector.load %arg13[%331, %c0_154] : memref<64x512xf32, #tpu.memory_space<vmem>>, vector<8x512xf32>
    %c0_155 = arith.constant 0 : index
    %c0_156 = arith.constant 0 : index
    %333 = vector.load %arg10[%c0_155, %c0_156] : memref<8x128xf32, #tpu.memory_space<vmem>>, vector<8x128xf32>
    %334 = arith.truncf %333 : vector<8x128xf32> to vector<8x128xbf16>
    %cst_157 = arith.constant dense<0.000000e+00> : vector<8x512xf32>
    %335 = tpu.matmul %334, %316, %cst_157 {dimension_numbers = #tpu.dot_dimension_numbers<[1], [0], [0], [1], [0, 0, 1, 1], [], []>} : vector<8x128xbf16>, vector<128x512xbf16>, vector<8x512xf32> -> vector<8x512xf32>
    %336 = arith.addf %332, %335 : vector<8x512xf32>
    %337 = vector.extract_strided_slice %336 {offsets = [0, 0], sizes = [8, 128], strides = [1, 1]} : vector<8x512xf32> to vector<8x128xf32>
    %338 = arith.negf %337 : vector<8x128xf32>
    %339 = math.exp %338 : vector<8x128xf32>
    %cst_158 = arith.constant 1.000000e+00 : f32
    %340 = vector.broadcast %cst_158 : f32 to vector<8x128xf32>
    %341 = arith.addf %340, %339 : vector<8x128xf32>
    %342 = arith.divf %340, %341 : vector<8x128xf32>
    %343 = vector.extract_strided_slice %336 {offsets = [0, 128], sizes = [8, 128], strides = [1, 1]} : vector<8x512xf32> to vector<8x128xf32>
    %344 = arith.negf %343 : vector<8x128xf32>
    %345 = math.exp %344 : vector<8x128xf32>
    %cst_159 = arith.constant 1.000000e+00 : f32
    %346 = vector.broadcast %cst_159 : f32 to vector<8x128xf32>
    %347 = arith.addf %346, %345 : vector<8x128xf32>
    %348 = arith.divf %346, %347 : vector<8x128xf32>
    %349 = vector.extract_strided_slice %336 {offsets = [0, 256], sizes = [8, 128], strides = [1, 1]} : vector<8x512xf32> to vector<8x128xf32>
    %350 = math.tanh %349 : vector<8x128xf32>
    %351 = vector.extract_strided_slice %336 {offsets = [0, 384], sizes = [8, 128], strides = [1, 1]} : vector<8x512xf32> to vector<8x128xf32>
    %352 = arith.negf %351 : vector<8x128xf32>
    %353 = math.exp %352 : vector<8x128xf32>
    %cst_160 = arith.constant 1.000000e+00 : f32
    %354 = vector.broadcast %cst_160 : f32 to vector<8x128xf32>
    %355 = arith.addf %354, %353 : vector<8x128xf32>
    %356 = arith.divf %354, %355 : vector<8x128xf32>
    %c0_161 = arith.constant 0 : index
    %c0_162 = arith.constant 0 : index
    %357 = vector.load %arg11[%c0_161, %c0_162] : memref<8x128xf32, #tpu.memory_space<vmem>>, vector<8x128xf32>
    %358 = arith.mulf %348, %357 : vector<8x128xf32>
    %359 = arith.mulf %342, %350 : vector<8x128xf32>
    %360 = arith.addf %358, %359 : vector<8x128xf32>
    %361 = math.tanh %360 : vector<8x128xf32>
    %362 = arith.mulf %356, %361 : vector<8x128xf32>
    %c0_163 = arith.constant 0 : index
    %c0_164 = arith.constant 0 : index
    %363 = vector.load %arg11[%c0_163, %c0_164] : memref<8x128xf32, #tpu.memory_space<vmem>>, vector<8x128xf32>
    tpu.vector_store %arg11[%c0_163, %c0_164], %360 {strides = array<i32>} : memref<8x128xf32, #tpu.memory_space<vmem>>, vector<8x128xf32>,
    %c0_165 = arith.constant 0 : index
    %c0_166 = arith.constant 0 : index
    %364 = vector.load %arg10[%c0_165, %c0_166] : memref<8x128xf32, #tpu.memory_space<vmem>>, vector<8x128xf32>
    tpu.vector_store %arg10[%c0_165, %c0_166], %362 {strides = array<i32>} : memref<8x128xf32, #tpu.memory_space<vmem>>, vector<8x128xf32>,
    %365 = arith.index_cast %330 : i32 to index
    %c0_167 = arith.constant 0 : index
    %366 = vector.load %arg12[%365, %c0_167] : memref<64x128xf32, #tpu.memory_space<vmem>>, vector<8x128xf32>
    tpu.vector_store %arg12[%365, %c0_167], %362 {strides = array<i32>} : memref<64x128xf32, #tpu.memory_space<vmem>>, vector<8x128xf32>,
    %c1_i32_168 = arith.constant 1 : i32
    %c8_i32_169 = arith.constant 8 : i32
    %367 = arith.muli %c1_i32_168, %c8_i32_169 : i32
    %368 = tpu.assume_multiple %367, 8 : i32
    %369 = arith.index_cast %368 : i32 to index
    %c0_170 = arith.constant 0 : index
    %370 = vector.load %arg13[%369, %c0_170] : memref<64x512xf32, #tpu.memory_space<vmem>>, vector<8x512xf32>
    %c0_171 = arith.constant 0 : index
    %c0_172 = arith.constant 0 : index
    %371 = vector.load %arg10[%c0_171, %c0_172] : memref<8x128xf32, #tpu.memory_space<vmem>>, vector<8x128xf32>
    %372 = arith.truncf %371 : vector<8x128xf32> to vector<8x128xbf16>
    %cst_173 = arith.constant dense<0.000000e+00> : vector<8x512xf32>
    %373 = tpu.matmul %372, %316, %cst_173 {dimension_numbers = #tpu.dot_dimension_numbers<[1], [0], [0], [1], [0, 0, 1, 1], [], []>} : vector<8x128xbf16>, vector<128x512xbf16>, vector<8x512xf32> -> vector<8x512xf32>
    %374 = arith.addf %370, %373 : vector<8x512xf32>
    %375 = vector.extract_strided_slice %374 {offsets = [0, 0], sizes = [8, 128], strides = [1, 1]} : vector<8x512xf32> to vector<8x128xf32>
    %376 = arith.negf %375 : vector<8x128xf32>
    %377 = math.exp %376 : vector<8x128xf32>
    %cst_174 = arith.constant 1.000000e+00 : f32
    %378 = vector.broadcast %cst_174 : f32 to vector<8x128xf32>
    %379 = arith.addf %378, %377 : vector<8x128xf32>
    %380 = arith.divf %378, %379 : vector<8x128xf32>
    %381 = vector.extract_strided_slice %374 {offsets = [0, 128], sizes = [8, 128], strides = [1, 1]} : vector<8x512xf32> to vector<8x128xf32>
    %382 = arith.negf %381 : vector<8x128xf32>
    %383 = math.exp %382 : vector<8x128xf32>
    %cst_175 = arith.constant 1.000000e+00 : f32
    %384 = vector.broadcast %cst_175 : f32 to vector<8x128xf32>
    %385 = arith.addf %384, %383 : vector<8x128xf32>
    %386 = arith.divf %384, %385 : vector<8x128xf32>
    %387 = vector.extract_strided_slice %374 {offsets = [0, 256], sizes = [8, 128], strides = [1, 1]} : vector<8x512xf32> to vector<8x128xf32>
    %388 = math.tanh %387 : vector<8x128xf32>
    %389 = vector.extract_strided_slice %374 {offsets = [0, 384], sizes = [8, 128], strides = [1, 1]} : vector<8x512xf32> to vector<8x128xf32>
    %390 = arith.negf %389 : vector<8x128xf32>
    %391 = math.exp %390 : vector<8x128xf32>
    %cst_176 = arith.constant 1.000000e+00 : f32
    %392 = vector.broadcast %cst_176 : f32 to vector<8x128xf32>
    %393 = arith.addf %392, %391 : vector<8x128xf32>
    %394 = arith.divf %392, %393 : vector<8x128xf32>
    %c0_177 = arith.constant 0 : index
    %c0_178 = arith.constant 0 : index
    %395 = vector.load %arg11[%c0_177, %c0_178] : memref<8x128xf32, #tpu.memory_space<vmem>>, vector<8x128xf32>
    %396 = arith.mulf %386, %395 : vector<8x128xf32>
    %397 = arith.mulf %380, %388 : vector<8x128xf32>
    %398 = arith.addf %396, %397 : vector<8x128xf32>
    %399 = math.tanh %398 : vector<8x128xf32>
    %400 = arith.mulf %394, %399 : vector<8x128xf32>
    %c0_179 = arith.constant 0 : index
    %c0_180 = arith.constant 0 : index
    %401 = vector.load %arg11[%c0_179, %c0_180] : memref<8x128xf32, #tpu.memory_space<vmem>>, vector<8x128xf32>
    tpu.vector_store %arg11[%c0_179, %c0_180], %398 {strides = array<i32>} : memref<8x128xf32, #tpu.memory_space<vmem>>, vector<8x128xf32>,
    %c0_181 = arith.constant 0 : index
    %c0_182 = arith.constant 0 : index
    %402 = vector.load %arg10[%c0_181, %c0_182] : memref<8x128xf32, #tpu.memory_space<vmem>>, vector<8x128xf32>
    tpu.vector_store %arg10[%c0_181, %c0_182], %400 {strides = array<i32>} : memref<8x128xf32, #tpu.memory_space<vmem>>, vector<8x128xf32>,
    %403 = arith.index_cast %368 : i32 to index
    %c0_183 = arith.constant 0 : index
    %404 = vector.load %arg12[%403, %c0_183] : memref<64x128xf32, #tpu.memory_space<vmem>>, vector<8x128xf32>
    tpu.vector_store %arg12[%403, %c0_183], %400 {strides = array<i32>} : memref<64x128xf32, #tpu.memory_space<vmem>>, vector<8x128xf32>,
    %c2_i32_184 = arith.constant 2 : i32
    %c8_i32_185 = arith.constant 8 : i32
    %405 = arith.muli %c2_i32_184, %c8_i32_185 : i32
    %406 = tpu.assume_multiple %405, 8 : i32
    %407 = arith.index_cast %406 : i32 to index
    %c0_186 = arith.constant 0 : index
    %408 = vector.load %arg13[%407, %c0_186] : memref<64x512xf32, #tpu.memory_space<vmem>>, vector<8x512xf32>
    %c0_187 = arith.constant 0 : index
    %c0_188 = arith.constant 0 : index
    %409 = vector.load %arg10[%c0_187, %c0_188] : memref<8x128xf32, #tpu.memory_space<vmem>>, vector<8x128xf32>
    %410 = arith.truncf %409 : vector<8x128xf32> to vector<8x128xbf16>
    %cst_189 = arith.constant dense<0.000000e+00> : vector<8x512xf32>
    %411 = tpu.matmul %410, %316, %cst_189 {dimension_numbers = #tpu.dot_dimension_numbers<[1], [0], [0], [1], [0, 0, 1, 1], [], []>} : vector<8x128xbf16>, vector<128x512xbf16>, vector<8x512xf32> -> vector<8x512xf32>
    %412 = arith.addf %408, %411 : vector<8x512xf32>
    %413 = vector.extract_strided_slice %412 {offsets = [0, 0], sizes = [8, 128], strides = [1, 1]} : vector<8x512xf32> to vector<8x128xf32>
    %414 = arith.negf %413 : vector<8x128xf32>
    %415 = math.exp %414 : vector<8x128xf32>
    %cst_190 = arith.constant 1.000000e+00 : f32
    %416 = vector.broadcast %cst_190 : f32 to vector<8x128xf32>
    %417 = arith.addf %416, %415 : vector<8x128xf32>
    %418 = arith.divf %416, %417 : vector<8x128xf32>
    %419 = vector.extract_strided_slice %412 {offsets = [0, 128], sizes = [8, 128], strides = [1, 1]} : vector<8x512xf32> to vector<8x128xf32>
    %420 = arith.negf %419 : vector<8x128xf32>
    %421 = math.exp %420 : vector<8x128xf32>
    %cst_191 = arith.constant 1.000000e+00 : f32
    %422 = vector.broadcast %cst_191 : f32 to vector<8x128xf32>
    %423 = arith.addf %422, %421 : vector<8x128xf32>
    %424 = arith.divf %422, %423 : vector<8x128xf32>
    %425 = vector.extract_strided_slice %412 {offsets = [0, 256], sizes = [8, 128], strides = [1, 1]} : vector<8x512xf32> to vector<8x128xf32>
    %426 = math.tanh %425 : vector<8x128xf32>
    %427 = vector.extract_strided_slice %412 {offsets = [0, 384], sizes = [8, 128], strides = [1, 1]} : vector<8x512xf32> to vector<8x128xf32>
    %428 = arith.negf %427 : vector<8x128xf32>
    %429 = math.exp %428 : vector<8x128xf32>
    %cst_192 = arith.constant 1.000000e+00 : f32
    %430 = vector.broadcast %cst_192 : f32 to vector<8x128xf32>
    %431 = arith.addf %430, %429 : vector<8x128xf32>
    %432 = arith.divf %430, %431 : vector<8x128xf32>
    %c0_193 = arith.constant 0 : index
    %c0_194 = arith.constant 0 : index
    %433 = vector.load %arg11[%c0_193, %c0_194] : memref<8x128xf32, #tpu.memory_space<vmem>>, vector<8x128xf32>
    %434 = arith.mulf %424, %433 : vector<8x128xf32>
    %435 = arith.mulf %418, %426 : vector<8x128xf32>
    %436 = arith.addf %434, %435 : vector<8x128xf32>
    %437 = math.tanh %436 : vector<8x128xf32>
    %438 = arith.mulf %432, %437 : vector<8x128xf32>
    %c0_195 = arith.constant 0 : index
    %c0_196 = arith.constant 0 : index
    %439 = vector.load %arg11[%c0_195, %c0_196] : memref<8x128xf32, #tpu.memory_space<vmem>>, vector<8x128xf32>
    tpu.vector_store %arg11[%c0_195, %c0_196], %436 {strides = array<i32>} : memref<8x128xf32, #tpu.memory_space<vmem>>, vector<8x128xf32>,
    %c0_197 = arith.constant 0 : index
    %c0_198 = arith.constant 0 : index
    %440 = vector.load %arg10[%c0_197, %c0_198] : memref<8x128xf32, #tpu.memory_space<vmem>>, vector<8x128xf32>
    tpu.vector_store %arg10[%c0_197, %c0_198], %438 {strides = array<i32>} : memref<8x128xf32, #tpu.memory_space<vmem>>, vector<8x128xf32>,
    %441 = arith.index_cast %406 : i32 to index
    %c0_199 = arith.constant 0 : index
    %442 = vector.load %arg12[%441, %c0_199] : memref<64x128xf32, #tpu.memory_space<vmem>>, vector<8x128xf32>
    tpu.vector_store %arg12[%441, %c0_199], %438 {strides = array<i32>} : memref<64x128xf32, #tpu.memory_space<vmem>>, vector<8x128xf32>,
    %c3_i32_200 = arith.constant 3 : i32
    %c8_i32_201 = arith.constant 8 : i32
    %443 = arith.muli %c3_i32_200, %c8_i32_201 : i32
    %444 = tpu.assume_multiple %443, 8 : i32
    %445 = arith.index_cast %444 : i32 to index
    %c0_202 = arith.constant 0 : index
    %446 = vector.load %arg13[%445, %c0_202] : memref<64x512xf32, #tpu.memory_space<vmem>>, vector<8x512xf32>
    %c0_203 = arith.constant 0 : index
    %c0_204 = arith.constant 0 : index
    %447 = vector.load %arg10[%c0_203, %c0_204] : memref<8x128xf32, #tpu.memory_space<vmem>>, vector<8x128xf32>
    %448 = arith.truncf %447 : vector<8x128xf32> to vector<8x128xbf16>
    %cst_205 = arith.constant dense<0.000000e+00> : vector<8x512xf32>
    %449 = tpu.matmul %448, %316, %cst_205 {dimension_numbers = #tpu.dot_dimension_numbers<[1], [0], [0], [1], [0, 0, 1, 1], [], []>} : vector<8x128xbf16>, vector<128x512xbf16>, vector<8x512xf32> -> vector<8x512xf32>
    %450 = arith.addf %446, %449 : vector<8x512xf32>
    %451 = vector.extract_strided_slice %450 {offsets = [0, 0], sizes = [8, 128], strides = [1, 1]} : vector<8x512xf32> to vector<8x128xf32>
    %452 = arith.negf %451 : vector<8x128xf32>
    %453 = math.exp %452 : vector<8x128xf32>
    %cst_206 = arith.constant 1.000000e+00 : f32
    %454 = vector.broadcast %cst_206 : f32 to vector<8x128xf32>
    %455 = arith.addf %454, %453 : vector<8x128xf32>
    %456 = arith.divf %454, %455 : vector<8x128xf32>
    %457 = vector.extract_strided_slice %450 {offsets = [0, 128], sizes = [8, 128], strides = [1, 1]} : vector<8x512xf32> to vector<8x128xf32>
    %458 = arith.negf %457 : vector<8x128xf32>
    %459 = math.exp %458 : vector<8x128xf32>
    %cst_207 = arith.constant 1.000000e+00 : f32
    %460 = vector.broadcast %cst_207 : f32 to vector<8x128xf32>
    %461 = arith.addf %460, %459 : vector<8x128xf32>
    %462 = arith.divf %460, %461 : vector<8x128xf32>
    %463 = vector.extract_strided_slice %450 {offsets = [0, 256], sizes = [8, 128], strides = [1, 1]} : vector<8x512xf32> to vector<8x128xf32>
    %464 = math.tanh %463 : vector<8x128xf32>
    %465 = vector.extract_strided_slice %450 {offsets = [0, 384], sizes = [8, 128], strides = [1, 1]} : vector<8x512xf32> to vector<8x128xf32>
    %466 = arith.negf %465 : vector<8x128xf32>
    %467 = math.exp %466 : vector<8x128xf32>
    %cst_208 = arith.constant 1.000000e+00 : f32
    %468 = vector.broadcast %cst_208 : f32 to vector<8x128xf32>
    %469 = arith.addf %468, %467 : vector<8x128xf32>
    %470 = arith.divf %468, %469 : vector<8x128xf32>
    %c0_209 = arith.constant 0 : index
    %c0_210 = arith.constant 0 : index
    %471 = vector.load %arg11[%c0_209, %c0_210] : memref<8x128xf32, #tpu.memory_space<vmem>>, vector<8x128xf32>
    %472 = arith.mulf %462, %471 : vector<8x128xf32>
    %473 = arith.mulf %456, %464 : vector<8x128xf32>
    %474 = arith.addf %472, %473 : vector<8x128xf32>
    %475 = math.tanh %474 : vector<8x128xf32>
    %476 = arith.mulf %470, %475 : vector<8x128xf32>
    %c0_211 = arith.constant 0 : index
    %c0_212 = arith.constant 0 : index
    %477 = vector.load %arg11[%c0_211, %c0_212] : memref<8x128xf32, #tpu.memory_space<vmem>>, vector<8x128xf32>
    tpu.vector_store %arg11[%c0_211, %c0_212], %474 {strides = array<i32>} : memref<8x128xf32, #tpu.memory_space<vmem>>, vector<8x128xf32>,
    %c0_213 = arith.constant 0 : index
    %c0_214 = arith.constant 0 : index
    %478 = vector.load %arg10[%c0_213, %c0_214] : memref<8x128xf32, #tpu.memory_space<vmem>>, vector<8x128xf32>
    tpu.vector_store %arg10[%c0_213, %c0_214], %476 {strides = array<i32>} : memref<8x128xf32, #tpu.memory_space<vmem>>, vector<8x128xf32>,
    %479 = arith.index_cast %444 : i32 to index
    %c0_215 = arith.constant 0 : index
    %480 = vector.load %arg12[%479, %c0_215] : memref<64x128xf32, #tpu.memory_space<vmem>>, vector<8x128xf32>
    tpu.vector_store %arg12[%479, %c0_215], %476 {strides = array<i32>} : memref<64x128xf32, #tpu.memory_space<vmem>>, vector<8x128xf32>,
    %c4_i32_216 = arith.constant 4 : i32
    %c8_i32_217 = arith.constant 8 : i32
    %481 = arith.muli %c4_i32_216, %c8_i32_217 : i32
    %482 = tpu.assume_multiple %481, 8 : i32
    %483 = arith.index_cast %482 : i32 to index
    %c0_218 = arith.constant 0 : index
    %484 = vector.load %arg13[%483, %c0_218] : memref<64x512xf32, #tpu.memory_space<vmem>>, vector<8x512xf32>
    %c0_219 = arith.constant 0 : index
    %c0_220 = arith.constant 0 : index
    %485 = vector.load %arg10[%c0_219, %c0_220] : memref<8x128xf32, #tpu.memory_space<vmem>>, vector<8x128xf32>
    %486 = arith.truncf %485 : vector<8x128xf32> to vector<8x128xbf16>
    %cst_221 = arith.constant dense<0.000000e+00> : vector<8x512xf32>
    %487 = tpu.matmul %486, %316, %cst_221 {dimension_numbers = #tpu.dot_dimension_numbers<[1], [0], [0], [1], [0, 0, 1, 1], [], []>} : vector<8x128xbf16>, vector<128x512xbf16>, vector<8x512xf32> -> vector<8x512xf32>
    %488 = arith.addf %484, %487 : vector<8x512xf32>
    %489 = vector.extract_strided_slice %488 {offsets = [0, 0], sizes = [8, 128], strides = [1, 1]} : vector<8x512xf32> to vector<8x128xf32>
    %490 = arith.negf %489 : vector<8x128xf32>
    %491 = math.exp %490 : vector<8x128xf32>
    %cst_222 = arith.constant 1.000000e+00 : f32
    %492 = vector.broadcast %cst_222 : f32 to vector<8x128xf32>
    %493 = arith.addf %492, %491 : vector<8x128xf32>
    %494 = arith.divf %492, %493 : vector<8x128xf32>
    %495 = vector.extract_strided_slice %488 {offsets = [0, 128], sizes = [8, 128], strides = [1, 1]} : vector<8x512xf32> to vector<8x128xf32>
    %496 = arith.negf %495 : vector<8x128xf32>
    %497 = math.exp %496 : vector<8x128xf32>
    %cst_223 = arith.constant 1.000000e+00 : f32
    %498 = vector.broadcast %cst_223 : f32 to vector<8x128xf32>
    %499 = arith.addf %498, %497 : vector<8x128xf32>
    %500 = arith.divf %498, %499 : vector<8x128xf32>
    %501 = vector.extract_strided_slice %488 {offsets = [0, 256], sizes = [8, 128], strides = [1, 1]} : vector<8x512xf32> to vector<8x128xf32>
    %502 = math.tanh %501 : vector<8x128xf32>
    %503 = vector.extract_strided_slice %488 {offsets = [0, 384], sizes = [8, 128], strides = [1, 1]} : vector<8x512xf32> to vector<8x128xf32>
    %504 = arith.negf %503 : vector<8x128xf32>
    %505 = math.exp %504 : vector<8x128xf32>
    %cst_224 = arith.constant 1.000000e+00 : f32
    %506 = vector.broadcast %cst_224 : f32 to vector<8x128xf32>
    %507 = arith.addf %506, %505 : vector<8x128xf32>
    %508 = arith.divf %506, %507 : vector<8x128xf32>
    %c0_225 = arith.constant 0 : index
    %c0_226 = arith.constant 0 : index
    %509 = vector.load %arg11[%c0_225, %c0_226] : memref<8x128xf32, #tpu.memory_space<vmem>>, vector<8x128xf32>
    %510 = arith.mulf %500, %509 : vector<8x128xf32>
    %511 = arith.mulf %494, %502 : vector<8x128xf32>
    %512 = arith.addf %510, %511 : vector<8x128xf32>
    %513 = math.tanh %512 : vector<8x128xf32>
    %514 = arith.mulf %508, %513 : vector<8x128xf32>
    %c0_227 = arith.constant 0 : index
    %c0_228 = arith.constant 0 : index
    %515 = vector.load %arg11[%c0_227, %c0_228] : memref<8x128xf32, #tpu.memory_space<vmem>>, vector<8x128xf32>
    tpu.vector_store %arg11[%c0_227, %c0_228], %512 {strides = array<i32>} : memref<8x128xf32, #tpu.memory_space<vmem>>, vector<8x128xf32>,
    %c0_229 = arith.constant 0 : index
    %c0_230 = arith.constant 0 : index
    %516 = vector.load %arg10[%c0_229, %c0_230] : memref<8x128xf32, #tpu.memory_space<vmem>>, vector<8x128xf32>
    tpu.vector_store %arg10[%c0_229, %c0_230], %514 {strides = array<i32>} : memref<8x128xf32, #tpu.memory_space<vmem>>, vector<8x128xf32>,
    %517 = arith.index_cast %482 : i32 to index
    %c0_231 = arith.constant 0 : index
    %518 = vector.load %arg12[%517, %c0_231] : memref<64x128xf32, #tpu.memory_space<vmem>>, vector<8x128xf32>
    tpu.vector_store %arg12[%517, %c0_231], %514 {strides = array<i32>} : memref<64x128xf32, #tpu.memory_space<vmem>>, vector<8x128xf32>,
    %c5_i32_232 = arith.constant 5 : i32
    %c8_i32_233 = arith.constant 8 : i32
    %519 = arith.muli %c5_i32_232, %c8_i32_233 : i32
    %520 = tpu.assume_multiple %519, 8 : i32
    %521 = arith.index_cast %520 : i32 to index
    %c0_234 = arith.constant 0 : index
    %522 = vector.load %arg13[%521, %c0_234] : memref<64x512xf32, #tpu.memory_space<vmem>>, vector<8x512xf32>
    %c0_235 = arith.constant 0 : index
    %c0_236 = arith.constant 0 : index
    %523 = vector.load %arg10[%c0_235, %c0_236] : memref<8x128xf32, #tpu.memory_space<vmem>>, vector<8x128xf32>
    %524 = arith.truncf %523 : vector<8x128xf32> to vector<8x128xbf16>
    %cst_237 = arith.constant dense<0.000000e+00> : vector<8x512xf32>
    %525 = tpu.matmul %524, %316, %cst_237 {dimension_numbers = #tpu.dot_dimension_numbers<[1], [0], [0], [1], [0, 0, 1, 1], [], []>} : vector<8x128xbf16>, vector<128x512xbf16>, vector<8x512xf32> -> vector<8x512xf32>
    %526 = arith.addf %522, %525 : vector<8x512xf32>
    %527 = vector.extract_strided_slice %526 {offsets = [0, 0], sizes = [8, 128], strides = [1, 1]} : vector<8x512xf32> to vector<8x128xf32>
    %528 = arith.negf %527 : vector<8x128xf32>
    %529 = math.exp %528 : vector<8x128xf32>
    %cst_238 = arith.constant 1.000000e+00 : f32
    %530 = vector.broadcast %cst_238 : f32 to vector<8x128xf32>
    %531 = arith.addf %530, %529 : vector<8x128xf32>
    %532 = arith.divf %530, %531 : vector<8x128xf32>
    %533 = vector.extract_strided_slice %526 {offsets = [0, 128], sizes = [8, 128], strides = [1, 1]} : vector<8x512xf32> to vector<8x128xf32>
    %534 = arith.negf %533 : vector<8x128xf32>
    %535 = math.exp %534 : vector<8x128xf32>
    %cst_239 = arith.constant 1.000000e+00 : f32
    %536 = vector.broadcast %cst_239 : f32 to vector<8x128xf32>
    %537 = arith.addf %536, %535 : vector<8x128xf32>
    %538 = arith.divf %536, %537 : vector<8x128xf32>
    %539 = vector.extract_strided_slice %526 {offsets = [0, 256], sizes = [8, 128], strides = [1, 1]} : vector<8x512xf32> to vector<8x128xf32>
    %540 = math.tanh %539 : vector<8x128xf32>
    %541 = vector.extract_strided_slice %526 {offsets = [0, 384], sizes = [8, 128], strides = [1, 1]} : vector<8x512xf32> to vector<8x128xf32>
    %542 = arith.negf %541 : vector<8x128xf32>
    %543 = math.exp %542 : vector<8x128xf32>
    %cst_240 = arith.constant 1.000000e+00 : f32
    %544 = vector.broadcast %cst_240 : f32 to vector<8x128xf32>
    %545 = arith.addf %544, %543 : vector<8x128xf32>
    %546 = arith.divf %544, %545 : vector<8x128xf32>
    %c0_241 = arith.constant 0 : index
    %c0_242 = arith.constant 0 : index
    %547 = vector.load %arg11[%c0_241, %c0_242] : memref<8x128xf32, #tpu.memory_space<vmem>>, vector<8x128xf32>
    %548 = arith.mulf %538, %547 : vector<8x128xf32>
    %549 = arith.mulf %532, %540 : vector<8x128xf32>
    %550 = arith.addf %548, %549 : vector<8x128xf32>
    %551 = math.tanh %550 : vector<8x128xf32>
    %552 = arith.mulf %546, %551 : vector<8x128xf32>
    %c0_243 = arith.constant 0 : index
    %c0_244 = arith.constant 0 : index
    %553 = vector.load %arg11[%c0_243, %c0_244] : memref<8x128xf32, #tpu.memory_space<vmem>>, vector<8x128xf32>
    tpu.vector_store %arg11[%c0_243, %c0_244], %550 {strides = array<i32>} : memref<8x128xf32, #tpu.memory_space<vmem>>, vector<8x128xf32>,
    %c0_245 = arith.constant 0 : index
    %c0_246 = arith.constant 0 : index
    %554 = vector.load %arg10[%c0_245, %c0_246] : memref<8x128xf32, #tpu.memory_space<vmem>>, vector<8x128xf32>
    tpu.vector_store %arg10[%c0_245, %c0_246], %552 {strides = array<i32>} : memref<8x128xf32, #tpu.memory_space<vmem>>, vector<8x128xf32>,
    %555 = arith.index_cast %520 : i32 to index
    %c0_247 = arith.constant 0 : index
    %556 = vector.load %arg12[%555, %c0_247] : memref<64x128xf32, #tpu.memory_space<vmem>>, vector<8x128xf32>
    tpu.vector_store %arg12[%555, %c0_247], %552 {strides = array<i32>} : memref<64x128xf32, #tpu.memory_space<vmem>>, vector<8x128xf32>,
    %c6_i32_248 = arith.constant 6 : i32
    %c8_i32_249 = arith.constant 8 : i32
    %557 = arith.muli %c6_i32_248, %c8_i32_249 : i32
    %558 = tpu.assume_multiple %557, 8 : i32
    %559 = arith.index_cast %558 : i32 to index
    %c0_250 = arith.constant 0 : index
    %560 = vector.load %arg13[%559, %c0_250] : memref<64x512xf32, #tpu.memory_space<vmem>>, vector<8x512xf32>
    %c0_251 = arith.constant 0 : index
    %c0_252 = arith.constant 0 : index
    %561 = vector.load %arg10[%c0_251, %c0_252] : memref<8x128xf32, #tpu.memory_space<vmem>>, vector<8x128xf32>
    %562 = arith.truncf %561 : vector<8x128xf32> to vector<8x128xbf16>
    %cst_253 = arith.constant dense<0.000000e+00> : vector<8x512xf32>
    %563 = tpu.matmul %562, %316, %cst_253 {dimension_numbers = #tpu.dot_dimension_numbers<[1], [0], [0], [1], [0, 0, 1, 1], [], []>} : vector<8x128xbf16>, vector<128x512xbf16>, vector<8x512xf32> -> vector<8x512xf32>
    %564 = arith.addf %560, %563 : vector<8x512xf32>
    %565 = vector.extract_strided_slice %564 {offsets = [0, 0], sizes = [8, 128], strides = [1, 1]} : vector<8x512xf32> to vector<8x128xf32>
    %566 = arith.negf %565 : vector<8x128xf32>
    %567 = math.exp %566 : vector<8x128xf32>
    %cst_254 = arith.constant 1.000000e+00 : f32
    %568 = vector.broadcast %cst_254 : f32 to vector<8x128xf32>
    %569 = arith.addf %568, %567 : vector<8x128xf32>
    %570 = arith.divf %568, %569 : vector<8x128xf32>
    %571 = vector.extract_strided_slice %564 {offsets = [0, 128], sizes = [8, 128], strides = [1, 1]} : vector<8x512xf32> to vector<8x128xf32>
    %572 = arith.negf %571 : vector<8x128xf32>
    %573 = math.exp %572 : vector<8x128xf32>
    %cst_255 = arith.constant 1.000000e+00 : f32
    %574 = vector.broadcast %cst_255 : f32 to vector<8x128xf32>
    %575 = arith.addf %574, %573 : vector<8x128xf32>
    %576 = arith.divf %574, %575 : vector<8x128xf32>
    %577 = vector.extract_strided_slice %564 {offsets = [0, 256], sizes = [8, 128], strides = [1, 1]} : vector<8x512xf32> to vector<8x128xf32>
    %578 = math.tanh %577 : vector<8x128xf32>
    %579 = vector.extract_strided_slice %564 {offsets = [0, 384], sizes = [8, 128], strides = [1, 1]} : vector<8x512xf32> to vector<8x128xf32>
    %580 = arith.negf %579 : vector<8x128xf32>
    %581 = math.exp %580 : vector<8x128xf32>
    %cst_256 = arith.constant 1.000000e+00 : f32
    %582 = vector.broadcast %cst_256 : f32 to vector<8x128xf32>
    %583 = arith.addf %582, %581 : vector<8x128xf32>
    %584 = arith.divf %582, %583 : vector<8x128xf32>
    %c0_257 = arith.constant 0 : index
    %c0_258 = arith.constant 0 : index
    %585 = vector.load %arg11[%c0_257, %c0_258] : memref<8x128xf32, #tpu.memory_space<vmem>>, vector<8x128xf32>
    %586 = arith.mulf %576, %585 : vector<8x128xf32>
    %587 = arith.mulf %570, %578 : vector<8x128xf32>
    %588 = arith.addf %586, %587 : vector<8x128xf32>
    %589 = math.tanh %588 : vector<8x128xf32>
    %590 = arith.mulf %584, %589 : vector<8x128xf32>
    %c0_259 = arith.constant 0 : index
    %c0_260 = arith.constant 0 : index
    %591 = vector.load %arg11[%c0_259, %c0_260] : memref<8x128xf32, #tpu.memory_space<vmem>>, vector<8x128xf32>
    tpu.vector_store %arg11[%c0_259, %c0_260], %588 {strides = array<i32>} : memref<8x128xf32, #tpu.memory_space<vmem>>, vector<8x128xf32>,
    %c0_261 = arith.constant 0 : index
    %c0_262 = arith.constant 0 : index
    %592 = vector.load %arg10[%c0_261, %c0_262] : memref<8x128xf32, #tpu.memory_space<vmem>>, vector<8x128xf32>
    tpu.vector_store %arg10[%c0_261, %c0_262], %590 {strides = array<i32>} : memref<8x128xf32, #tpu.memory_space<vmem>>, vector<8x128xf32>,
    %593 = arith.index_cast %558 : i32 to index
    %c0_263 = arith.constant 0 : index
    %594 = vector.load %arg12[%593, %c0_263] : memref<64x128xf32, #tpu.memory_space<vmem>>, vector<8x128xf32>
    tpu.vector_store %arg12[%593, %c0_263], %590 {strides = array<i32>} : memref<64x128xf32, #tpu.memory_space<vmem>>, vector<8x128xf32>,
    %c7_i32_264 = arith.constant 7 : i32
    %c8_i32_265 = arith.constant 8 : i32
    %595 = arith.muli %c7_i32_264, %c8_i32_265 : i32
    %596 = tpu.assume_multiple %595, 8 : i32
    %597 = arith.index_cast %596 : i32 to index
    %c0_266 = arith.constant 0 : index
    %598 = vector.load %arg13[%597, %c0_266] : memref<64x512xf32, #tpu.memory_space<vmem>>, vector<8x512xf32>
    %c0_267 = arith.constant 0 : index
    %c0_268 = arith.constant 0 : index
    %599 = vector.load %arg10[%c0_267, %c0_268] : memref<8x128xf32, #tpu.memory_space<vmem>>, vector<8x128xf32>
    %600 = arith.truncf %599 : vector<8x128xf32> to vector<8x128xbf16>
    %cst_269 = arith.constant dense<0.000000e+00> : vector<8x512xf32>
    %601 = tpu.matmul %600, %316, %cst_269 {dimension_numbers = #tpu.dot_dimension_numbers<[1], [0], [0], [1], [0, 0, 1, 1], [], []>} : vector<8x128xbf16>, vector<128x512xbf16>, vector<8x512xf32> -> vector<8x512xf32>
    %602 = arith.addf %598, %601 : vector<8x512xf32>
    %603 = vector.extract_strided_slice %602 {offsets = [0, 0], sizes = [8, 128], strides = [1, 1]} : vector<8x512xf32> to vector<8x128xf32>
    %604 = arith.negf %603 : vector<8x128xf32>
    %605 = math.exp %604 : vector<8x128xf32>
    %cst_270 = arith.constant 1.000000e+00 : f32
    %606 = vector.broadcast %cst_270 : f32 to vector<8x128xf32>
    %607 = arith.addf %606, %605 : vector<8x128xf32>
    %608 = arith.divf %606, %607 : vector<8x128xf32>
    %609 = vector.extract_strided_slice %602 {offsets = [0, 128], sizes = [8, 128], strides = [1, 1]} : vector<8x512xf32> to vector<8x128xf32>
    %610 = arith.negf %609 : vector<8x128xf32>
    %611 = math.exp %610 : vector<8x128xf32>
    %cst_271 = arith.constant 1.000000e+00 : f32
    %612 = vector.broadcast %cst_271 : f32 to vector<8x128xf32>
    %613 = arith.addf %612, %611 : vector<8x128xf32>
    %614 = arith.divf %612, %613 : vector<8x128xf32>
    %615 = vector.extract_strided_slice %602 {offsets = [0, 256], sizes = [8, 128], strides = [1, 1]} : vector<8x512xf32> to vector<8x128xf32>
    %616 = math.tanh %615 : vector<8x128xf32>
    %617 = vector.extract_strided_slice %602 {offsets = [0, 384], sizes = [8, 128], strides = [1, 1]} : vector<8x512xf32> to vector<8x128xf32>
    %618 = arith.negf %617 : vector<8x128xf32>
    %619 = math.exp %618 : vector<8x128xf32>
    %cst_272 = arith.constant 1.000000e+00 : f32
    %620 = vector.broadcast %cst_272 : f32 to vector<8x128xf32>
    %621 = arith.addf %620, %619 : vector<8x128xf32>
    %622 = arith.divf %620, %621 : vector<8x128xf32>
    %c0_273 = arith.constant 0 : index
    %c0_274 = arith.constant 0 : index
    %623 = vector.load %arg11[%c0_273, %c0_274] : memref<8x128xf32, #tpu.memory_space<vmem>>, vector<8x128xf32>
    %624 = arith.mulf %614, %623 : vector<8x128xf32>
    %625 = arith.mulf %608, %616 : vector<8x128xf32>
    %626 = arith.addf %624, %625 : vector<8x128xf32>
    %627 = math.tanh %626 : vector<8x128xf32>
    %628 = arith.mulf %622, %627 : vector<8x128xf32>
    %c0_275 = arith.constant 0 : index
    %c0_276 = arith.constant 0 : index
    %629 = vector.load %arg11[%c0_275, %c0_276] : memref<8x128xf32, #tpu.memory_space<vmem>>, vector<8x128xf32>
    tpu.vector_store %arg11[%c0_275, %c0_276], %626 {strides = array<i32>} : memref<8x128xf32, #tpu.memory_space<vmem>>, vector<8x128xf32>,
    %c0_277 = arith.constant 0 : index
    %c0_278 = arith.constant 0 : index
    %630 = vector.load %arg10[%c0_277, %c0_278] : memref<8x128xf32, #tpu.memory_space<vmem>>, vector<8x128xf32>
    tpu.vector_store %arg10[%c0_277, %c0_278], %628 {strides = array<i32>} : memref<8x128xf32, #tpu.memory_space<vmem>>, vector<8x128xf32>,
    %631 = arith.index_cast %596 : i32 to index
    %c0_279 = arith.constant 0 : index
    %632 = vector.load %arg12[%631, %c0_279] : memref<64x128xf32, #tpu.memory_space<vmem>>, vector<8x128xf32>
    tpu.vector_store %arg12[%631, %c0_279], %628 {strides = array<i32>} : memref<64x128xf32, #tpu.memory_space<vmem>>, vector<8x128xf32>,
    %c8_i32_280 = arith.constant 8 : i32
    %c0_281 = arith.constant 0 : index
    %c0_282 = arith.constant 0 : index
    %633 = vector.load %arg10[%c0_281, %c0_282] : memref<8x128xf32, #tpu.memory_space<vmem>>, vector<8x128xf32>
    %634 = arith.truncf %633 : vector<8x128xf32> to vector<8x128xbf16>
    %c0_283 = arith.constant 0 : index
    %c0_284 = arith.constant 0 : index
    %635 = vector.load %arg7[%c0_283, %c0_284] : memref<128x128xbf16, #tpu.memory_space<vmem>>, vector<128x128xbf16>
    %cst_285 = arith.constant dense<0.000000e+00> : vector<8x128xf32>
    %636 = tpu.matmul %634, %635, %cst_285 {dimension_numbers = #tpu.dot_dimension_numbers<[1], [0], [0], [1], [0, 0, 1, 1], [], []>} : vector<8x128xbf16>, vector<128x128xbf16>, vector<8x128xf32> -> vector<8x128xf32>
    %c0_286 = arith.constant 0 : index
    %c0_287 = arith.constant 0 : index
    %637 = vector.load %arg8[%c0_286, %c0_287] : memref<1x128xf32, #tpu.memory_space<vmem>>, vector<1x128xf32>
    %638 = vector.broadcast %637 : vector<1x128xf32> to vector<8x128xf32>
    %639 = arith.addf %636, %638 : vector<8x128xf32>
    %640 = tpu.iota {dimensions = array<i32: 1>} : vector<8x128xi32>
    %c10_i32 = arith.constant 10 : i32
    %641 = vector.broadcast %c10_i32 : i32 to vector<8x128xi32>
    %642 = arith.cmpi slt, %640, %641 : vector<8x128xi32>
    %cst_288 = arith.constant -1.000000e+30 : f32
    %643 = vector.broadcast %cst_288 : f32 to vector<8x128xf32>
    %644 = arith.select %642, %639, %643 : vector<8x128xi1>, vector<8x128xf32>
    %cst_289 = arith.constant dense<0xFF800000> : vector<8xf32>
    %645 = vector.multi_reduction <maximumf>, %644, %cst_289 [1] : vector<8x128xf32> to vector<8xf32>
    %646 = vector.shape_cast %645 : vector<8xf32> to vector<8x1xf32>
    %647 = vector.broadcast %646 : vector<8x1xf32> to vector<8x128xf32>
    %648 = arith.subf %644, %647 : vector<8x128xf32>
    %649 = math.exp %648 : vector<8x128xf32>
    %cst_290 = arith.constant dense<0.000000e+00> : vector<8xf32>
    %650 = vector.multi_reduction <add>, %649, %cst_290 [1] : vector<8x128xf32> to vector<8xf32>
    %651 = vector.shape_cast %650 : vector<8xf32> to vector<8x1xf32>
    %652 = math.log %651 : vector<8x1xf32>
    %653 = vector.broadcast %652 : vector<8x1xf32> to vector<8x128xf32>
    %654 = arith.subf %648, %653 : vector<8x128xf32>
    %c0_291 = arith.constant 0 : index
    %c0_292 = arith.constant 0 : index
    %655 = vector.load %arg9[%c0_291, %c0_292] : memref<8x128xf32, #tpu.memory_space<vmem>>, vector<8x128xf32>
    tpu.vector_store %arg9[%c0_291, %c0_292], %654 {strides = array<i32>} : memref<8x128xf32, #tpu.memory_space<vmem>>, vector<8x128xf32>,
    return
  }
}

</mosaic_0001>

<bundles_post_ra>
// kernel: tpu_custom_call.1
= control target key start
LH: loop header
LB: loop body
LE: loop exit
PB: predicated region body
PF: predicated region fallthrough
CT: control target
= control target key end

     0   :  { %14 = vsyncpa [#allocation7], 0  ;;  %s5712_s0 = inlined_call_operand.hbm [shape: bf16[64,128], index: 0, kind: input, shape index: {}]   ;;  %s5713_s1 = inlined_call_operand.hbm [shape: bf16[128,512], index: 1, kind: input, shape index: {}]   ;;  %s5714_s2 = inlined_call_operand.hbm [shape: bf16[128,512], index: 2, kind: input, shape index: {}]   ;;  %s5715_s3 = inlined_call_operand.hbm [shape: bf16[128,512], index: 3, kind: input, shape index: {}]   ;;  %s5716_s4 = inlined_call_operand.hbm [shape: bf16[128,512], index: 4, kind: input, shape index: {}]   ;;  %s5717_s5 = inlined_call_operand.vmem [shape: f32[1,512], index: 5, kind: input, shape index: {}]   ;;  %s5718_s6 = inlined_call_operand.vmem [shape: f32[1,512], index: 6, kind: input, shape index: {}]   ;;  %s5719_s7 = inlined_call_operand.hbm [shape: bf16[128,128], index: 7, kind: input, shape index: {}]   ;;  %s5720_s8 = inlined_call_operand.vmem [shape: f32[1,128], index: 8, kind: input, shape index: {}]   ;;  %s5721_s9 = inlined_call_operand.hbm [shape: f32[8,128], index: 9, kind: output, shape index: {}]  }
   0x1   :  { %15 = vsyncpa [#allocation10], 0 }
   0x2   :  { %16 = vsyncpa [#allocation13], 0 }
   0x3   :  { %17 = vsyncpa [#allocation16], 0 }
   0x4   :  { %18 = vsyncpa [#allocation8], 0  ;;  %s4361_s30 = smov [#allocation9]   ;;  %s4197_s13 = scalar_lea.hbm %s5713_s1, 4096 }
   0x5   :  { %s36_s10 = sshll.u32 %s4361_s30, 4  ;;  %p4198_p0 = scmp.ne.s32.totalorder %s5713_s1, %s4197_s13  ;;  %s37_s10 = int_to_ptr.vmem [resolvable:$true] %s36_s10 }
   0x6   :  { %p4201_p1 = scmp.lt.u32.totalorder %s4197_s13, %s5713_s1 }
   0x8   :  { %p4203_p2 = pnand %p4201_p1, %p4198_p0 }
   0xa   :  { %4206 = shalt.err (!%p4203_p2)
}
   0xb   :  { %s4207_s18 = scalar_lea.vmem %s37_s10, 4096  ;;  %p4212_p4 = scmp.lt.s32.totalorder %s37_s10, %s37_s10 }
   0xc   :  { %p4208_p3 = scmp.ne.s32.totalorder %s37_s10, %s4207_s18  ;;  %p4213_p5 = scmp.lt.s32.totalorder %s4207_s18, %s4207_s18 }
   0xe   :  { %p4214_p6 = por %p4213_p5, %p4212_p4 }
  0x10   :  { %p4215_p7 = pnand %p4214_p6, %p4208_p3 }
  0x12   :  { %4218 = shalt.err (!%p4215_p7)
}
  0x13   :  { %s4362_s19 = smov 256   ;;  %s4363_s20 = smov 16  }
  0x14   :  { %42 = dma.hbm_to_vmem [thread:$0]  %s5713_s1, 4096, %s37_s10, [#allocation10], %s4362_s19, %s4362_s19, %s4363_s20  }
  0x15   :  { %s4364_s23 = smov [#allocation12]   ;;  %s4365_s25 = smov [#allocation6]  }
  0x16   :  { %s60_s24 = sshll.u32 %s4364_s23, 4  ;;  %s24_s26 = sshll.u32 %s4365_s25, 4  ;;  %s61_s24 = int_to_ptr.vmem [resolvable:$true] %s60_s24  ;;  %s25_s26 = int_to_ptr.vmem [resolvable:$true] %s24_s26 }
  0x17   :  { %s4219_s29 = scalar_lea.hbm %s5715_s3, 4096 }
  0x18   :  { %p4220_p8 = scmp.ne.s32.totalorder %s5715_s3, %s4219_s29  ;;  %p4223_p9 = scmp.lt.u32.totalorder %s4219_s29, %s5715_s3 }
  0x1a   :  { %p4225_p10 = pnand %p4223_p9, %p4220_p8 }
  0x1c   :  { %4228 = shalt.err (!%p4225_p10)
}
  0x1d   :  { %s4229_s1 = scalar_lea.vmem %s61_s24, 4096  ;;  %p4234_p12 = scmp.lt.s32.totalorder %s61_s24, %s61_s24 }
  0x1e   :  { %p4230_p11 = scmp.ne.s32.totalorder %s61_s24, %s4229_s1  ;;  %p4235_p13 = scmp.lt.s32.totalorder %s4229_s1, %s4229_s1 }
  0x20   :  { %p4236_p0 = por %p4235_p13, %p4234_p12 }
  0x22   :  { %p4237_p1 = pnand %p4236_p0, %p4230_p11 }
  0x24   :  { %4240 = shalt.err (!%p4237_p1)
}
  0x25   :  { %66 = dma.hbm_to_vmem [thread:$0]  %s5715_s3, 4096, %s61_s24, [#allocation13], %s4362_s19, %s4362_s19, %s4363_s20  }
  0x26   :  { %s4241_s17 = scalar_lea.hbm %s5712_s0, 512 }
  0x27   :  { %p4242_p2 = scmp.ne.s32.totalorder %s5712_s0, %s4241_s17  ;;  %p4245_p3 = scmp.lt.u32.totalorder %s4241_s17, %s5712_s0 }
  0x29   :  { %p4247_p4 = pnand %p4245_p3, %p4242_p2 }
  0x2b   :  { %4250 = shalt.err (!%p4247_p4)
}
  0x2c   :  { %s4251_s25 = scalar_lea.vmem %s25_s26, 512  ;;  %p4256_p6 = scmp.lt.s32.totalorder %s25_s26, %s25_s26 }
  0x2d   :  { %p4252_p5 = scmp.ne.s32.totalorder %s25_s26, %s4251_s25  ;;  %p4257_p7 = scmp.lt.s32.totalorder %s4251_s25, %s4251_s25 }
  0x2f   :  { %p4258_p8 = por %p4257_p7, %p4256_p6 }
  0x31   :  { %p4259_p9 = pnand %p4258_p8, %p4252_p5 }
  0x33   :  { %4262 = shalt.err (!%p4259_p9)
}
  0x34   :  { %s4366_s3 = smov 64   ;;  %s4367_s24 = smov 4  }
  0x35   :  { %30 = dma.hbm_to_vmem [thread:$0]  %s5712_s0, 512, %s25_s26, [#allocation7], %s4366_s3, %s4366_s3, %s4367_s24  }
  0x36   :  { %s4368_s29 = smov [#allocation11]   ;;  %s4369_s11 = smov [#allocation14]  }
  0x37   :  { %s48_s30 = sshll.u32 %s4368_s29, 4  ;;  %s72_s12 = sshll.u32 %s4369_s11, 4  ;;  %s49_s30 = int_to_ptr.vmem [resolvable:$true] %s48_s30  ;;  %s73_s12 = int_to_ptr.vmem [resolvable:$true] %s72_s12 }
  0x38   :  { %s4263_s10 = scalar_lea.hbm %s5714_s2, 4096 }
  0x39   :  { %p4264_p10 = scmp.ne.s32.totalorder %s5714_s2, %s4263_s10  ;;  %p4267_p11 = scmp.lt.u32.totalorder %s4263_s10, %s5714_s2 }
  0x3b   :  { %p4269_p12 = pnand %p4267_p11, %p4264_p10 }
  0x3d   :  { %4272 = shalt.err (!%p4269_p12)
}
  0x3e   :  { %s4273_s0 = scalar_lea.vmem %s49_s30, 4096  ;;  %p4278_p0 = scmp.lt.s32.totalorder %s49_s30, %s49_s30 }
  0x3f   :  { %p4274_p13 = scmp.ne.s32.totalorder %s49_s30, %s4273_s0  ;;  %p4279_p1 = scmp.lt.s32.totalorder %s4273_s0, %s4273_s0 }
  0x41   :  { %p4280_p2 = por %p4279_p1, %p4278_p0 }
  0x43   :  { %p4281_p3 = pnand %p4280_p2, %p4274_p13 }
  0x45   :  { %4284 = shalt.err (!%p4281_p3)
}
  0x46   :  { %54 = dma.hbm_to_vmem [thread:$0]  %s5714_s2, 4096, %s49_s30, [#allocation10], %s4362_s19, %s4362_s19, %s4363_s20  }
  0x47   :  { %s4285_s23 = scalar_lea.hbm %s5716_s4, 4096 }
  0x48   :  { %p4286_p4 = scmp.ne.s32.totalorder %s5716_s4, %s4285_s23  ;;  %p4289_p5 = scmp.lt.u32.totalorder %s4285_s23, %s5716_s4 }
  0x4a   :  { %p4291_p6 = pnand %p4289_p5, %p4286_p4 }
  0x4c   :  { %4294 = shalt.err (!%p4291_p6)
}
  0x4d   :  { %s4295_s11 = scalar_lea.vmem %s73_s12, 4096  ;;  %p4300_p8 = scmp.lt.s32.totalorder %s73_s12, %s73_s12 }
  0x4e   :  { %p4296_p7 = scmp.ne.s32.totalorder %s73_s12, %s4295_s11  ;;  %p4301_p9 = scmp.lt.s32.totalorder %s4295_s11, %s4295_s11 }
  0x50   :  { %p4302_p10 = por %p4301_p9, %p4300_p8 }
  0x52   :  { %p4303_p11 = pnand %p4302_p10, %p4296_p7 }
  0x54   :  { %4306 = shalt.err (!%p4303_p11)
}
  0x55   :  { %78 = dma.hbm_to_vmem [thread:$0]  %s5716_s4, 4096, %s73_s12, [#allocation13], %s4362_s19, %s4362_s19, %s4363_s20  }
  0x56   :  { %s4370_s13 = smov [#allocation15]   ;;  %s4307_s15 = scalar_lea.hbm %s5719_s7, 1024 }
  0x57   :  { %s88_s1 = sshll.u32 %s4370_s13, 4  ;;  %p4308_p12 = scmp.ne.s32.totalorder %s5719_s7, %s4307_s15  ;;  %s89_s1 = int_to_ptr.vmem [resolvable:$true] %s88_s1 }
  0x58   :  { %p4311_p13 = scmp.lt.u32.totalorder %s4307_s15, %s5719_s7 }
  0x5a   :  { %p4313_p0 = pnand %p4311_p13, %p4308_p12 }
  0x5c   :  { %4316 = shalt.err (!%p4313_p0)
}
  0x5d   :  { %s4317_s18 = scalar_lea.vmem %s89_s1, 1024  ;;  %p4322_p2 = scmp.lt.s32.totalorder %s89_s1, %s89_s1 }
  0x5e   :  { %p4318_p1 = scmp.ne.s32.totalorder %s89_s1, %s4317_s18  ;;  %p4323_p3 = scmp.lt.s32.totalorder %s4317_s18, %s4317_s18 }
  0x60   :  { %p4324_p4 = por %p4323_p3, %p4322_p2 }
  0x62   :  { %p4325_p5 = pnand %p4324_p4, %p4318_p1 }
  0x64   :  { %4328 = shalt.err (!%p4325_p5)
}
  0x65   :  { %94 = dma.hbm_to_vmem [thread:$0]  %s5719_s7, 1024, %s89_s1, [#allocation16], %s4366_s3, %s4366_s3, %s4367_s24  }
  0x66   :  { %4351 = dma.done.wait [#allocation7], 512  }
  0x67   :  { %4352 = vsyncadd [#allocation7], 4294966784 }
  0x68   :  { %4353 = dma.done.wait [#allocation10], 8192  }
  0x69   :  { %4354 = vsyncadd [#allocation10], 4294959104 }
  0x6a   :  { %4355 = dma.done.wait [#allocation13], 8192  }
  0x6b   :  { %4356 = vsyncadd [#allocation13], 4294959104 }
  0x6c   :  { %4357 = dma.done.wait [#allocation16], 1024  }
  0x6d   :  { %4358 = vsyncadd [#allocation16], 4294966272  ;;  %v5729_v0 = vmov 0   ;;  %v3669_v1 = vld [vmem:[#allocation9 + $0x4] ss:$16 sps:$4 sm:$0xff]   ;;  %v3730_v44 = vld [vmem:[#allocation6 + $0x8] sm:$0xff]  }
  0x6e   :  { %426 = vmatprep.mubr.bf16.mxu0 %v5729_v0  ;;  %499 = vmatprep.mubr.bf16.mxu1 %v5729_v0  ;;  %v3671_v2 = vld [vmem:[#allocation9 + $0xc] ss:$16 sps:$4 sm:$0xff]   ;;  %v3673_v3 = vld [vmem:[#allocation9] ss:$16 sps:$4 sm:$0xff]   ;;  %v3674_v4 = vld [vmem:[#allocation9 + $0x8] ss:$16 sps:$4 sm:$0xff]  }
  0x6f   :  { %394 = vmatprep.subr.bf16.mxu0 %v3669_v1  ;;  %467 = vmatprep.subr.bf16.mxu1 %v3671_v2  ;;  %v3675_v5 = vld [vmem:[#allocation9 + $0x24] ss:$16 sps:$4 sm:$0xff]   ;;  %v3677_v6 = vld [vmem:[#allocation9 + $0x2c] ss:$16 sps:$4 sm:$0xff]   ;;  %v3679_v7 = vld [vmem:[#allocation9 + $0x20] ss:$16 sps:$4 sm:$0xff]  }
  0x70   :  { %395 = vmatpush1.bf16.msra.mxu0 %v3673_v3  ;;  %468 = vmatpush1.bf16.msra.mxu1 %v3674_v4  ;;  %v3680_v8 = vld [vmem:[#allocation9 + $0x28] ss:$16 sps:$4 sm:$0xff]   ;;  %v3681_v9 = vld [vmem:[#allocation9 + $0x44] ss:$16 sps:$4 sm:$0xff]   ;;  %v3683_v10 = vld [vmem:[#allocation9 + $0x4c] ss:$16 sps:$4 sm:$0xff]  }
  0x71   :  { %396 = vmatprep.subr.bf16.mxu0 %v3675_v5  ;;  %469 = vmatprep.subr.bf16.mxu1 %v3677_v6  ;;  %v3685_v11 = vld [vmem:[#allocation9 + $0x40] ss:$16 sps:$4 sm:$0xff]   ;;  %v3686_v12 = vld [vmem:[#allocation9 + $0x48] ss:$16 sps:$4 sm:$0xff]   ;;  %v3687_v13 = vld [vmem:[#allocation9 + $0x64] ss:$16 sps:$4 sm:$0xff]  }
  0x72   :  { %v3689_v14 = vld [vmem:[#allocation9 + $0x6c] ss:$16 sps:$4 sm:$0xff]   ;;  %v3691_v15 = vld [vmem:[#allocation9 + $0x60] ss:$16 sps:$4 sm:$0xff]   ;;  %v3692_v16 = vld [vmem:[#allocation9 + $0x68] ss:$16 sps:$4 sm:$0xff]  }
  0x73   :  { %v3693_v17 = vld [vmem:[#allocation9 + $0x84] ss:$16 sps:$4 sm:$0xff]   ;;  %v3695_v18 = vld [vmem:[#allocation9 + $0x8c] ss:$16 sps:$4 sm:$0xff]   ;;  %v3697_v19 = vld [vmem:[#allocation9 + $0x80] ss:$16 sps:$4 sm:$0xff]  }
  0x74   :  { %397 = vmatpush1.bf16.msra.mxu0 %v3679_v7  ;;  %470 = vmatpush1.bf16.msra.mxu1 %v3680_v8  ;;  %v3698_v20 = vld [vmem:[#allocation9 + $0x88] ss:$16 sps:$4 sm:$0xff]   ;;  %v3699_v21 = vld [vmem:[#allocation9 + $0xa4] ss:$16 sps:$4 sm:$0xff]   ;;  %v3701_v22 = vld [vmem:[#allocation9 + $0xac] ss:$16 sps:$4 sm:$0xff]   ;;  %v5722_v7 = vlaneseq }
  0x75   :  { %398 = vmatprep.subr.bf16.mxu0 %v3681_v9  ;;  %471 = vmatprep.subr.bf16.mxu1 %v3683_v10  ;;  %v3703_v23 = vld [vmem:[#allocation9 + $0xa0] ss:$16 sps:$4 sm:$0xff]   ;;  %v3704_v24 = vld [vmem:[#allocation9 + $0xa8] ss:$16 sps:$4 sm:$0xff]   ;;  %v3705_v25 = vld [vmem:[#allocation9 + $0xc4] ss:$16 sps:$4 sm:$0xff]  }
  0x76   :  { %v3707_v26 = vld [vmem:[#allocation9 + $0xcc] ss:$16 sps:$4 sm:$0xff]   ;;  %v3709_v27 = vld [vmem:[#allocation9 + $0xc0] ss:$16 sps:$4 sm:$0xff]   ;;  %v3710_v28 = vld [vmem:[#allocation9 + $0xc8] ss:$16 sps:$4 sm:$0xff]  }
  0x77   :  { %v3711_v29 = vld [vmem:[#allocation9 + $0xe4] ss:$16 sps:$4 sm:$0xff]   ;;  %v3713_v30 = vld [vmem:[#allocation9 + $0xec] ss:$16 sps:$4 sm:$0xff]   ;;  %v3715_v31 = vld [vmem:[#allocation9 + $0xe0] ss:$16 sps:$4 sm:$0xff]  }
  0x78   :  { %399 = vmatpush1.bf16.msra.mxu0 %v3685_v11  ;;  %472 = vmatpush1.bf16.msra.mxu1 %v3686_v12  ;;  %v3716_v32 = vld [vmem:[#allocation9 + $0xe8] ss:$16 sps:$4 sm:$0xff]   ;;  %v4518_v33 = vld [vmem:[#allocation12 + $0x4] ss:$16 sps:$4 sm:$0xff]   ;;  %v4520_v34 = vld [vmem:[#allocation12 + $0xc] ss:$16 sps:$4 sm:$0xff]  }
  0x79   :  { %400 = vmatprep.subr.bf16.mxu0 %v3687_v13  ;;  %473 = vmatprep.subr.bf16.mxu1 %v3689_v14  ;;  %v3717_v35 = vld [vmem:[#allocation6] sm:$0xff]   ;;  %v4524_v37 = vld [vmem:[#allocation12 + $0x8] ss:$16 sps:$4 sm:$0xff]   ;;  %v4530_v39 = vld [vmem:[#allocation12 + $0x2c] ss:$16 sps:$4 sm:$0xff]   ;;  %v5727_v6 = vmov 0.0|0.0  }
  0x7a   :  { %v4522_v36 = vld [vmem:[#allocation12] ss:$16 sps:$4 sm:$0xff]   ;;  %v4528_v38 = vld [vmem:[#allocation12 + $0x24] ss:$16 sps:$4 sm:$0xff]   ;;  %v4536_v41 = vld [vmem:[#allocation12 + $0x28] ss:$16 sps:$4 sm:$0xff]  }
  0x7b   :  { %v4532_v40 = vld [vmem:[#allocation12 + $0x20] ss:$16 sps:$4 sm:$0xff]   ;;  %v4540_v42 = vld [vmem:[#allocation12 + $0x44] ss:$16 sps:$4 sm:$0xff]   ;;  %v4542_v43 = vld [vmem:[#allocation12 + $0x4c] ss:$16 sps:$4 sm:$0xff]  }
  0x7c   :  { %401 = vmatpush1.bf16.msra.mxu0 %v3691_v15  ;;  %474 = vmatpush1.bf16.msra.mxu1 %v3692_v16  ;;  %v4546_v45 = vld [vmem:[#allocation12 + $0x40] ss:$16 sps:$4 sm:$0xff]   ;;  %v4548_v46 = vld [vmem:[#allocation12 + $0x48] ss:$16 sps:$4 sm:$0xff]   ;;  %v4552_v47 = vld [vmem:[#allocation12 + $0x64] ss:$16 sps:$4 sm:$0xff]  }
  0x7d   :  { %402 = vmatprep.subr.bf16.mxu0 %v3693_v17  ;;  %475 = vmatprep.subr.bf16.mxu1 %v3695_v18  ;;  %v4556_v48 = vld [vmem:[#allocation12 + $0x6c] ss:$16 sps:$4 sm:$0xff]   ;;  %v4558_v49 = vld [vmem:[#allocation12 + $0x60] ss:$16 sps:$4 sm:$0xff]   ;;  %v4560_v50 = vld [vmem:[#allocation12 + $0x68] ss:$16 sps:$4 sm:$0xff]  }
  0x7e   :  { %v4564_v51 = vld [vmem:[#allocation12 + $0x84] ss:$16 sps:$4 sm:$0xff]   ;;  %v4568_v52 = vld [vmem:[#allocation12 + $0x8c] ss:$16 sps:$4 sm:$0xff]   ;;  %v4572_v54 = vld [vmem:[#allocation12 + $0x80] ss:$16 sps:$4 sm:$0xff]  }
  0x7f   :  { %v3743_v53 = vld [vmem:[#allocation6 + $0x10] sm:$0xff]   ;;  %v4574_v55 = vld [vmem:[#allocation12 + $0x88] ss:$16 sps:$4 sm:$0xff]   ;;  %v4578_v57 = vld [vmem:[#allocation12 + $0xac] ss:$16 sps:$4 sm:$0xff]   ;;  %v4661_v8 = vshrl.u32 %v5722_v7, 7 }
  0x80   :  { %403 = vmatpush1.bf16.msra.mxu0 %v3697_v19  ;;  %476 = vmatpush1.bf16.msra.mxu1 %v3698_v20  ;;  %v4576_v56 = vld [vmem:[#allocation12 + $0xa4] ss:$16 sps:$4 sm:$0xff]   ;;  %v4584_v58 = vld [vmem:[#allocation12 + $0xa0] ss:$16 sps:$4 sm:$0xff]   ;;  %v4586_v59 = vld [vmem:[#allocation12 + $0xa8] ss:$16 sps:$4 sm:$0xff]  }
  0x81   :  { %404 = vmatprep.subr.bf16.mxu0 %v3699_v21  ;;  %477 = vmatprep.subr.bf16.mxu1 %v3701_v22  ;;  %v4588_v60 = vld [vmem:[#allocation12 + $0xc4] ss:$16 sps:$4 sm:$0xff]   ;;  %v4590_v61 = vld [vmem:[#allocation12 + $0xcc] ss:$16 sps:$4 sm:$0xff]   ;;  %v4598_v63 = vld [vmem:[#allocation12 + $0xc0] ss:$16 sps:$4 sm:$0xff]  }
  0x82   :  { %v3756_v62 = vld [vmem:[#allocation6 + $0x18] sm:$0xff]   ;;  %v4602_v2 = vld [vmem:[#allocation12 + $0xe4] ss:$16 sps:$4 sm:$0xff]   ;;  %v4610_v4 = vld [vmem:[#allocation12 + $0xe0] ss:$16 sps:$4 sm:$0xff]   ;;  %5733 = vst [vmem:[#allocation23_spill] sm:$0xff] %v4661_v8 }
  0x83   :  { %v4600_v1 = vld [vmem:[#allocation12 + $0xc8] ss:$16 sps:$4 sm:$0xff]   ;;  %v4604_v3 = vld [vmem:[#allocation12 + $0xec] ss:$16 sps:$4 sm:$0xff]   ;;  %v5725_v9 = vsub.s32 2, %v4661_v8  ;;  %v5723_v10 = vsub.s32 3, %v4661_v8 }
  0x84   :  { %405 = vmatpush1.bf16.msra.mxu0 %v3703_v23  ;;  %478 = vmatpush1.bf16.msra.mxu1 %v3704_v24  ;;  %v4612_v5 = vld [vmem:[#allocation12 + $0xe8] ss:$16 sps:$4 sm:$0xff]   ;;  %v5726_v11 = vsub.s32 0, %v4661_v8  ;;  %v188_v12 = vld [vmem:[%s5717_s5] sm:$0xf]  ;;  %v5724_v13 = vsub.s32 1, %v4661_v8 }
  0x85   :  { %406 = vmatprep.subr.bf16.mxu0 %v3705_v25  ;;  %479 = vmatprep.subr.bf16.mxu1 %v3707_v26  ;;  %v4672_v14 = vrot.slane %v188_v12, %v5725_v9  ;;  %v4680_v17 = vrot.slane %v188_v12, %v5723_v10  ;;  %vm4374_vm0 = vmmov 0   ;;  %s4375_s12 = smov [#allocation17]  }
  0x86   :  { %v193_v18 = vrot.slane %v188_v12, %v5726_v11  ;;  %v197_v21 = vrot.slane %v188_v12, %v5724_v13  ;;  %s3417_s21 = sshll.u32 %s4375_s12, 4  ;;  %s3418_s21 = int_to_ptr.vmem [resolvable:$true] %s3417_s21 }
  0x87   :  { %p4334_p7 = scmp.lt.s32.totalorder %s3418_s21, %s3418_s21 }
  0x88   :  { %407 = vmatpush1.bf16.msra.mxu0 %v3709_v27  ;;  %480 = vmatpush1.bf16.msra.mxu1 %v3710_v28 }
  0x89   :  { %408 = vmatprep.subr.bf16.mxu0 %v3711_v29  ;;  %481 = vmatprep.subr.bf16.mxu1 %v3713_v30 }
  0x8c   :  { %409 = vmatpush1.bf16.msra.mxu0 %v3715_v31  ;;  %482 = vmatpush1.bf16.msra.mxu1 %v3716_v32 }
  0x8d   :  { %743 = vmatprep.subr.bf16.mxu0 %v4518_v33  ;;  %784 = vmatprep.subr.bf16.mxu1 %v4520_v34 }
  0x8f   :  { %427 = vmatmul.mubr.bf16.vlgmr.msra.gmra.mrb[0].mxu0 %v3717_v35  ;;  %500 = vmatmul.mubr.bf16.vlgmr.msra.gmra.mrb[0].mxu1 %v3717_v35 }
  0x90   :  { %744 = vmatpush1.bf16.msra.mxu0 %v4522_v36  ;;  %785 = vmatpush1.bf16.msra.mxu1 %v4524_v37 }
  0x91   :  { %745 = vmatprep.subr.bf16.mxu0 %v4528_v38  ;;  %786 = vmatprep.subr.bf16.mxu1 %v4530_v39 }
  0x92   :  { %436 = vmatprep.mubr.bf16.mxu0 %v5729_v0  ;;  %509 = vmatprep.mubr.bf16.mxu1 %v5729_v0 }
  0x94   :  { %746 = vmatpush1.bf16.msra.mxu0 %v4532_v40  ;;  %787 = vmatpush1.bf16.msra.mxu1 %v4536_v41 }
  0x95   :  { %747 = vmatprep.subr.bf16.mxu0 %v4540_v42  ;;  %788 = vmatprep.subr.bf16.mxu1 %v4542_v43 }
  0x97   :  { %437 = vmatmul.mubr.bf16.gmra.mrb[4].mxu0 %v3730_v44  ;;  %510 = vmatmul.mubr.bf16.gmra.mrb[4].mxu1 %v3730_v44 }
  0x98   :  { %748 = vmatpush1.bf16.msra.mxu0 %v4546_v45  ;;  %789 = vmatpush1.bf16.msra.mxu1 %v4548_v46 }
  0x99   :  { %749 = vmatprep.subr.bf16.mxu0 %v4552_v47  ;;  %790 = vmatprep.subr.bf16.mxu1 %v4556_v48 }
  0x9a   :  { %446 = vmatprep.mubr.bf16.mxu0 %v5729_v0  ;;  %519 = vmatprep.mubr.bf16.mxu1 %v5729_v0 }
  0x9c   :  { %750 = vmatpush1.bf16.msra.mxu0 %v4558_v49  ;;  %791 = vmatpush1.bf16.msra.mxu1 %v4560_v50 }
  0x9d   :  { %751 = vmatprep.subr.bf16.mxu0 %v4564_v51  ;;  %792 = vmatprep.subr.bf16.mxu1 %v4568_v52 }
  0x9f   :  { %447 = vmatmul.mubr.bf16.gmra.mrb[8].mxu0 %v3743_v53  ;;  %520 = vmatmul.mubr.bf16.gmra.mrb[8].mxu1 %v3743_v53 }
  0xa0   :  { %752 = vmatpush1.bf16.msra.mxu0 %v4572_v54  ;;  %793 = vmatpush1.bf16.msra.mxu1 %v4574_v55 }
  0xa1   :  { %753 = vmatprep.subr.bf16.mxu0 %v4576_v56  ;;  %794 = vmatprep.subr.bf16.mxu1 %v4578_v57 }
  0xa2   :  { %456 = vmatprep.mubr.bf16.mxu0 %v5729_v0  ;;  %529 = vmatprep.mubr.bf16.mxu1 %v5729_v0 }
  0xa4   :  { %754 = vmatpush1.bf16.msra.mxu0 %v4584_v58  ;;  %795 = vmatpush1.bf16.msra.mxu1 %v4586_v59 }
  0xa5   :  { %755 = vmatprep.subr.bf16.mxu0 %v4588_v60  ;;  %796 = vmatprep.subr.bf16.mxu1 %v4590_v61 }
  0xa7   :  { %457 = vmatmul.mubr.bf16.gmra.mrb[12].mxu0 %v3756_v62  ;;  %530 = vmatmul.mubr.bf16.gmra.mrb[12].mxu1 %v3756_v62 }
  0xa8   :  { %756 = vmatpush1.bf16.msra.mxu0 %v4598_v63  ;;  %797 = vmatpush1.bf16.msra.mxu1 %v4600_v1 }
  0xa9   :  { %757 = vmatprep.subr.bf16.mxu0 %v4602_v2  ;;  %798 = vmatprep.subr.bf16.mxu1 %v4604_v3 }
  0xaa   :  { %775 = vmatprep.mubr.bf16.mxu0 %v5729_v0  ;;  %816 = vmatprep.mubr.bf16.mxu1 %v5729_v0 }
  0xac   :  { %758 = vmatpush1.bf16.msra.mxu0 %v4610_v4  ;;  %799 = vmatpush1.bf16.msra.mxu1 %v4612_v5 }
  0xad   :  { %866 = vmatprep.subr.bf16.mxu0 %v4518_v33  ;;  %907 = vmatprep.subr.bf16.mxu1 %v4520_v34 }
  0xaf   :  { %776 = vmatmul.mubr.bf16.vlgmr.msra.gmra.mrb[16].mxu0 %v5727_v6  ;;  %817 = vmatmul.mubr.bf16.vlgmr.msra.gmra.mrb[16].mxu1 %v5727_v6 }
  0xb0   :  { %867 = vmatpush1.bf16.msra.mxu0 %v4522_v36  ;;  %908 = vmatpush1.bf16.msra.mxu1 %v4524_v37 }
  0xb1   :  { %868 = vmatprep.subr.bf16.mxu0 %v4528_v38  ;;  %909 = vmatprep.subr.bf16.mxu1 %v4530_v39 }
  0xb2   :  { %898 = vmatprep.mubr.bf16.mxu0 %v5729_v0  ;;  %939 = vmatprep.mubr.bf16.mxu1 %v5729_v0 }
  0xb4   :  { %869 = vmatpush1.bf16.msra.mxu0 %v4532_v40  ;;  %910 = vmatpush1.bf16.msra.mxu1 %v4536_v41 }
  0xb5   :  { %870 = vmatprep.subr.bf16.mxu0 %v4540_v42  ;;  %911 = vmatprep.subr.bf16.mxu1 %v4542_v43 }
  0xb8   :  { %871 = vmatpush1.bf16.msra.mxu0 %v4546_v45  ;;  %912 = vmatpush1.bf16.msra.mxu1 %v4548_v46 }
  0xb9   :  { %872 = vmatprep.subr.bf16.mxu0 %v4552_v47  ;;  %913 = vmatprep.subr.bf16.mxu1 %v4556_v48 }
  0xbc   :  { %873 = vmatpush1.bf16.msra.mxu0 %v4558_v49  ;;  %914 = vmatpush1.bf16.msra.mxu1 %v4560_v50 }
  0xbd   :  { %874 = vmatprep.subr.bf16.mxu0 %v4564_v51  ;;  %915 = vmatprep.subr.bf16.mxu1 %v4568_v52 }
  0xc0   :  { %875 = vmatpush1.bf16.msra.mxu0 %v4572_v54  ;;  %916 = vmatpush1.bf16.msra.mxu1 %v4574_v55 }
  0xc1   :  { %876 = vmatprep.subr.bf16.mxu0 %v4576_v56  ;;  %917 = vmatprep.subr.bf16.mxu1 %v4578_v57 }
  0xc4   :  { %877 = vmatpush1.bf16.msra.mxu0 %v4584_v58  ;;  %918 = vmatpush1.bf16.msra.mxu1 %v4586_v59 }
  0xc5   :  { %878 = vmatprep.subr.bf16.mxu0 %v4588_v60  ;;  %919 = vmatprep.subr.bf16.mxu1 %v4590_v61 }
  0xc8   :  { %879 = vmatpush1.bf16.msra.mxu0 %v4598_v63  ;;  %920 = vmatpush1.bf16.msra.mxu1 %v4600_v1 }
  0xc9   :  { %880 = vmatprep.subr.bf16.mxu0 %v4602_v2  ;;  %921 = vmatprep.subr.bf16.mxu1 %v4604_v3 }
  0xcc   :  { %881 = vmatpush1.bf16.msra.mxu0 %v4610_v4  ;;  %922 = vmatpush1.bf16.msra.mxu1 %v4612_v5 }
  0xcd   :  { %990 = vmatprep.subr.bf16.mxu0 %v4518_v33  ;;  %1031 = vmatprep.subr.bf16.mxu1 %v4520_v34 }
 0x162   :  { %v4674_v15 = vpop.f32.mrb[0].mxu0  ;;  %v4676_v16 = vpop.f32.mrb[0].mxu1 }
 0x163   :  { %v430_v19 = vpop.f32.mrb[1].mxu0  ;;  %v503_v20 = vpop.f32.mrb[1].mxu1 }
 0x164   :  { %v432_v22 = vpop.f32.mrb[2].mxu0  ;;  %v505_v23 = vpop.f32.mrb[2].mxu1 }
 0x165   :  { %v4686_v24 = vadd.f32 %v432_v22, %v193_v18  ;;  %v434_v25 = vpop.f32.mrb[3].mxu0  ;;  %v4689_v26 = vadd.f32 %v505_v23, %v4672_v14  ;;  %v507_v27 = vpop.f32.mrb[3].mxu1 }
 0x166   :  { %v4691_v28 = vadd.f32 %v434_v25, %v197_v21  ;;  %v4694_v29 = vadd.f32 %v507_v27, %v4680_v17 }
 0x16a   :  { %v438_v30 = vpop.f32.mrb[4].mxu0  ;;  %v511_v31 = vpop.f32.mrb[4].mxu1 }
 0x16b   :  { %v4696_v32 = vadd.f32 %v438_v30, %v193_v18  ;;  %v440_v35 = vpop.f32.mrb[5].mxu0  ;;  %v4699_v44 = vadd.f32 %v511_v31, %v4672_v14  ;;  %v513_v53 = vpop.f32.mrb[5].mxu1 }
 0x16c   :  { %v4701_v62 = vadd.f32 %v440_v35, %v197_v21  ;;  %v442_v12 = vpop.f32.mrb[6].mxu0  ;;  %v4704_v22 = vadd.f32 %v513_v53, %v4680_v17  ;;  %v515_v23 = vpop.f32.mrb[6].mxu1 }
 0x16d   :  { %v4706_v25 = vadd.f32 %v442_v12, %v193_v18  ;;  %v444_v27 = vpop.f32.mrb[7].mxu0  ;;  %v4709_v7 = vadd.f32 %v515_v23, %v4672_v14  ;;  %v517_v30 = vpop.f32.mrb[7].mxu1 }
 0x16e   :  { %5734 = vst [vmem:[#allocation24_spill] sm:$0xff] %v4704_v22  ;;  %v4711_v10 = vadd.f32 %v444_v27, %v197_v21  ;;  %v4714_v31 = vadd.f32 %v517_v30, %v4680_v17 }
 0x16f   :  { %5735 = vst [vmem:[#allocation25_spill] sm:$0xff] %v4706_v25  ;;  %5736 = vst [vmem:[#allocation26_spill] sm:$0xff] %v4709_v7 }
 0x170   :  { %5737 = vst [vmem:[#allocation27_spill] sm:$0xff] %v4711_v10  ;;  %5738 = vst [vmem:[#allocation28_spill] sm:$0xff] %v4714_v31 }
 0x172   :  { %v448_v13 = vpop.f32.mrb[8].mxu0  ;;  %v521_v35 = vpop.f32.mrb[8].mxu1 }
 0x173   :  { %v4716_v9 = vadd.f32 %v448_v13, %v193_v18  ;;  %v450_v11 = vpop.f32.mrb[9].mxu0  ;;  %v4719_v53 = vadd.f32 %v521_v35, %v4672_v14  ;;  %v523_v12 = vpop.f32.mrb[9].mxu1 }
 0x174   :  { %v4721_v6 = vadd.f32 %v450_v11, %v197_v21  ;;  %v452_v0 = vpop.f32.mrb[10].mxu0  ;;  %v4724_v23 = vadd.f32 %v523_v12, %v4680_v17  ;;  %v525_v27 = vpop.f32.mrb[10].mxu1 }
 0x175   :  { %5739 = vst [vmem:[#allocation29_spill] sm:$0xff] %v4716_v9  ;;  %5740 = vst [vmem:[#allocation30_spill] sm:$0xff] %v4719_v53  ;;  %v4726_v8 = vadd.f32 %v452_v0, %v193_v18  ;;  %v454_v30 = vpop.f32.mrb[11].mxu0  ;;  %v4729_v31 = vadd.f32 %v525_v27, %v4672_v14  ;;  %v527_v13 = vpop.f32.mrb[11].mxu1 }
 0x176   :  { %5741 = vst [vmem:[#allocation31_spill] sm:$0xff] %v4721_v6  ;;  %5742 = vst [vmem:[#allocation32_spill] sm:$0xff] %v4724_v23  ;;  %v4731_v9 = vadd.f32 %v454_v30, %v197_v21  ;;  %v4734_v35 = vadd.f32 %v527_v13, %v4680_v17 }
 0x177   :  { %5743 = vst [vmem:[#allocation33_spill] sm:$0xff] %v4726_v8  ;;  %5744 = vst [vmem:[#allocation34_spill] sm:$0xff] %v4729_v31 }
 0x178   :  { %5745 = vst [vmem:[#allocation35_spill] sm:$0xff] %v4731_v9  ;;  %5746 = vst [vmem:[#allocation36_spill] sm:$0xff] %v4734_v35 }
 0x17a   :  { %v458_v53 = vpop.f32.mrb[12].mxu0  ;;  %v531_v11 = vpop.f32.mrb[12].mxu1 }
 0x17b   :  { %v4736_v6 = vadd.f32 %v458_v53, %v193_v18  ;;  %v460_v10 = vpop.f32.mrb[13].mxu0  ;;  %v4739_v12 = vadd.f32 %v531_v11, %v4672_v14  ;;  %v533_v0 = vpop.f32.mrb[13].mxu1 }
 0x17c   :  { %v4741_v8 = vadd.f32 %v460_v10, %v197_v21  ;;  %v462_v23 = vpop.f32.mrb[14].mxu0  ;;  %v4744_v27 = vadd.f32 %v533_v0, %v4680_v17  ;;  %v535_v30 = vpop.f32.mrb[14].mxu1  ;;  %v429_v10 = vadd.f32 %v4674_v15, %v193_v18  ;;  %v431_v0 = vadd.f32 %v430_v19, %v197_v21 }
 0x17d   :  { %5747 = vst [vmem:[#allocation37_spill] sm:$0xff] %v4736_v6  ;;  %5748 = vst [vmem:[#allocation38_spill] sm:$0xff] %v4739_v12  ;;  %v4746_v9 = vadd.f32 %v462_v23, %v193_v18  ;;  %v464_v13 = vpop.f32.mrb[15].mxu0  ;;  %v4749_v35 = vadd.f32 %v535_v30, %v4672_v14  ;;  %v537_v53 = vpop.f32.mrb[15].mxu1 }
 0x17e   :  { %5749 = vst [vmem:[#allocation39_spill] sm:$0xff] %v4741_v8  ;;  %5750 = vst [vmem:[#allocation40_spill] sm:$0xff] %v4744_v27  ;;  %v4751_v6 = vadd.f32 %v464_v13, %v197_v21  ;;  %v4754_v11 = vadd.f32 %v537_v53, %v4680_v17  ;;  %v502_v8 = vadd.f32 %v4676_v16, %v4672_v14 }
 0x17f   :  { %5751 = vst [vmem:[#allocation41_spill] sm:$0xff] %v4746_v9  ;;  %5752 = vst [vmem:[#allocation42_spill] sm:$0xff] %v4749_v35  ;;  %v504_v27 = vadd.f32 %v503_v20, %v4680_v17 }
 0x180   :  { %5753 = vst [vmem:[#allocation43_spill] sm:$0xff] %v4751_v6  ;;  %5754 = vst [vmem:[#allocation44_spill] sm:$0xff] %v4754_v11 }
 0x182   :  { %v777_v23 = vpop.f32.mrb[16].mxu0  ;;  %v818_v9 = vpop.f32.mrb[16].mxu1 }
 0x183   :  { %v825_v12 = vadd.f32 %v777_v23, %v429_v10  ;;  %v827_v31 = vadd.f32 %v818_v9, %v502_v8  ;;  %v779_v30 = vpop.f32.mrb[17].mxu0  ;;  %v820_v35 = vpop.f32.mrb[17].mxu1 }
 0x184   :  { %v826_v7 = vadd.f32 %v779_v30, %v431_v0  ;;  %v828_v13 = vadd.f32 %v820_v35, %v504_v27  ;;  %v781_v6 = vpop.f32.mrb[18].mxu0  ;;  %v822_v25 = vpop.f32.mrb[18].mxu1 }
 0x185   :  { %v3504_v53 = vmul.f32 -1.442695, %v825_v12  ;;  %v782_v11 = vpop.f32.mrb[19].mxu0  ;;  %v823_v22 = vpop.f32.mrb[19].mxu1 }
 0x186   :  { %v3505_v15 = vmul.f32 -1.442695, %v826_v7  ;;  %v3506_v14 = vmul.f32 -1.442695, %v828_v13  ;;  %v5755_v11 = vmov 0  }
 0x187   :  { %3873 = vpow2.f32 %v3504_v53 }
 0x188   :  { %3875 = vpow2.f32 %v3505_v15 }
 0x189   :  { %3877 = vpow2.f32 %v3506_v14 }
 0x18a   :  { %3879 = vtanh.f32 %v827_v31 }
 0x191   :  { %v3874_v16 = vpop.eup %3873 }
 0x192   :  { %v3876_v18 = vpop.eup %3875  ;;  %v832_v17 = vadd.f32 1.0, %v3874_v16 }
 0x193   :  { %v838_v19 = vadd.f32 1.0, %v3876_v18  ;;  %v3878_v8 = vpop.eup %3877 }
 0x194   :  { %3881 = vrcp.f32 %v832_v17  ;;  %v3880_v9 = vpop.eup %3879  ;;  %v845_v25 = vadd.f32 1.0, %v3878_v8 }
 0x195   :  { %3883 = vrcp.f32 %v838_v19 }
 0x196   :  { %3885 = vrcp.f32 %v845_v25 }
 0x19e   :  { %v3882_v20 = vpop.eup %3881 }
 0x19f   :  { %v3884_v6 = vpop.eup %3883  ;;  %v850_v21 = vmul.f32 %v3882_v20, %v3880_v9 }
 0x1a0   :  { %v849_v35 = vmul.f32 0.0, %v3884_v6  ;;  %v3886_v7 = vpop.eup %3885 }
 0x1a2   :  { %v4760_v22 = vadd.f32 %v850_v21, %v849_v35 }
 0x1a4   :  { %3887 = vtanh.f32 %v4760_v22 }
 0x1ae   :  { %v3888_v12 = vpop.eup %3887 }
 0x1af   :  { %v4763_v27 = vmul.f32 %v3888_v12, %v3886_v7 }
 0x1b1   :  { %v865_v31 = vpack.c.bf16 %v4763_v27, %v4763_v27 }
 0x1b3   :  { %899 = vmatmul.mubr.bf16.vlgmr.msra.gmra.mrb[20].mxu0 %v865_v31  ;;  %940 = vmatmul.mubr.bf16.vlgmr.msra.gmra.mrb[20].mxu1 %v865_v31 }
 0x1b4   :  { %991 = vmatpush1.bf16.msra.mxu0 %v4522_v36  ;;  %1032 = vmatpush1.bf16.msra.mxu1 %v4524_v37 }
 0x1b5   :  { %992 = vmatprep.subr.bf16.mxu0 %v4528_v38  ;;  %1033 = vmatprep.subr.bf16.mxu1 %v4530_v39 }
 0x1b6   :  { %1022 = vmatprep.mubr.bf16.mxu0 %v5755_v11  ;;  %1063 = vmatprep.mubr.bf16.mxu1 %v5755_v11 }
 0x1b8   :  { %993 = vmatpush1.bf16.msra.mxu0 %v4532_v40  ;;  %1034 = vmatpush1.bf16.msra.mxu1 %v4536_v41 }
 0x1b9   :  { %994 = vmatprep.subr.bf16.mxu0 %v4540_v42  ;;  %1035 = vmatprep.subr.bf16.mxu1 %v4542_v43 }
 0x1bc   :  { %995 = vmatpush1.bf16.msra.mxu0 %v4546_v45  ;;  %1036 = vmatpush1.bf16.msra.mxu1 %v4548_v46 }
 0x1bd   :  { %996 = vmatprep.subr.bf16.mxu0 %v4552_v47  ;;  %1037 = vmatprep.subr.bf16.mxu1 %v4556_v48 }
 0x1c0   :  { %997 = vmatpush1.bf16.msra.mxu0 %v4558_v49  ;;  %1038 = vmatpush1.bf16.msra.mxu1 %v4560_v50 }
 0x1c1   :  { %998 = vmatprep.subr.bf16.mxu0 %v4564_v51  ;;  %1039 = vmatprep.subr.bf16.mxu1 %v4568_v52 }
 0x1c4   :  { %999 = vmatpush1.bf16.msra.mxu0 %v4572_v54  ;;  %1040 = vmatpush1.bf16.msra.mxu1 %v4574_v55 }
 0x1c5   :  { %1000 = vmatprep.subr.bf16.mxu0 %v4576_v56  ;;  %1041 = vmatprep.subr.bf16.mxu1 %v4578_v57 }
 0x1c8   :  { %1001 = vmatpush1.bf16.msra.mxu0 %v4584_v58  ;;  %1042 = vmatpush1.bf16.msra.mxu1 %v4586_v59 }
 0x1c9   :  { %1002 = vmatprep.subr.bf16.mxu0 %v4588_v60  ;;  %1043 = vmatprep.subr.bf16.mxu1 %v4590_v61 }
 0x1cc   :  { %1003 = vmatpush1.bf16.msra.mxu0 %v4598_v63  ;;  %1044 = vmatpush1.bf16.msra.mxu1 %v4600_v1 }
 0x1cd   :  { %1004 = vmatprep.subr.bf16.mxu0 %v4602_v2  ;;  %1045 = vmatprep.subr.bf16.mxu1 %v4604_v3 }
 0x1d0   :  { %1005 = vmatpush1.bf16.msra.mxu0 %v4610_v4  ;;  %1046 = vmatpush1.bf16.msra.mxu1 %v4612_v5 }
 0x1d1   :  { %1114 = vmatprep.subr.bf16.mxu0 %v4518_v33  ;;  %1155 = vmatprep.subr.bf16.mxu1 %v4520_v34 }
 0x286   :  { %v900_v10 = vpop.f32.mrb[20].mxu0  ;;  %v941_v0 = vpop.f32.mrb[20].mxu1 }
 0x287   :  { %v948_v23 = vadd.f32 %v900_v10, %v4686_v24  ;;  %v950_v30 = vadd.f32 %v941_v0, %v4689_v26  ;;  %v902_v13 = vpop.f32.mrb[21].mxu0  ;;  %v943_v53 = vpop.f32.mrb[21].mxu1 }
 0x288   :  { %v949_v15 = vadd.f32 %v902_v13, %v4691_v28  ;;  %v951_v14 = vadd.f32 %v943_v53, %v4694_v29  ;;  %v904_v16 = vpop.f32.mrb[22].mxu0  ;;  %v945_v18 = vpop.f32.mrb[22].mxu1 }
 0x289   :  { %v3507_v17 = vmul.f32 -1.442695, %v948_v23  ;;  %v905_v19 = vpop.f32.mrb[23].mxu0  ;;  %v946_v8 = vpop.f32.mrb[23].mxu1 }
 0x28a   :  { %v3508_v9 = vmul.f32 -1.442695, %v949_v15  ;;  %v3509_v20 = vmul.f32 -1.442695, %v951_v14  ;;  %v5756_v19 = vld [vmem:[#allocation24_spill] sm:$0xff] }
 0x28b   :  { %3889 = vpow2.f32 %v3507_v17 }
 0x28c   :  { %3891 = vpow2.f32 %v3508_v9 }
 0x28d   :  { %3893 = vpow2.f32 %v3509_v20 }
 0x28e   :  { %3895 = vtanh.f32 %v950_v30 }
 0x295   :  { %v3890_v6 = vpop.eup %3889 }
 0x296   :  { %v3892_v21 = vpop.eup %3891  ;;  %v955_v24 = vadd.f32 1.0, %v3890_v6 }
 0x297   :  { %v961_v26 = vadd.f32 1.0, %v3892_v21  ;;  %v3894_v28 = vpop.eup %3893 }
 0x298   :  { %3897 = vrcp.f32 %v955_v24  ;;  %v3896_v25 = vpop.eup %3895  ;;  %v968_v12 = vadd.f32 1.0, %v3894_v28 }
 0x299   :  { %3899 = vrcp.f32 %v961_v26 }
 0x29a   :  { %3901 = vrcp.f32 %v968_v12 }
 0x2a2   :  { %v3898_v29 = vpop.eup %3897 }
 0x2a3   :  { %v3900_v35 = vpop.eup %3899  ;;  %v973_v7 = vmul.f32 %v3898_v29, %v3896_v25 }
 0x2a4   :  { %v972_v31 = vmul.f32 %v3900_v35, %v4760_v22  ;;  %v3902_v0 = vpop.eup %3901 }
 0x2a6   :  { %v4806_v10 = vadd.f32 %v973_v7, %v972_v31 }
 0x2a8   :  { %3903 = vtanh.f32 %v4806_v10 }
 0x2b2   :  { %v3904_v23 = vpop.eup %3903 }
 0x2b3   :  { %v4809_v13 = vmul.f32 %v3904_v23, %v3902_v0 }
 0x2b5   :  { %v989_v30 = vpack.c.bf16 %v4809_v13, %v4809_v13 }
 0x2b7   :  { %1023 = vmatmul.mubr.bf16.vlgmr.msra.gmra.mrb[24].mxu0 %v989_v30  ;;  %1064 = vmatmul.mubr.bf16.vlgmr.msra.gmra.mrb[24].mxu1 %v989_v30 }
 0x2b8   :  { %1115 = vmatpush1.bf16.msra.mxu0 %v4522_v36  ;;  %1156 = vmatpush1.bf16.msra.mxu1 %v4524_v37 }
 0x2b9   :  { %1116 = vmatprep.subr.bf16.mxu0 %v4528_v38  ;;  %1157 = vmatprep.subr.bf16.mxu1 %v4530_v39 }
 0x2ba   :  { %1146 = vmatprep.mubr.bf16.mxu0 %v5755_v11  ;;  %1187 = vmatprep.mubr.bf16.mxu1 %v5755_v11 }
 0x2bc   :  { %1117 = vmatpush1.bf16.msra.mxu0 %v4532_v40  ;;  %1158 = vmatpush1.bf16.msra.mxu1 %v4536_v41 }
 0x2bd   :  { %1118 = vmatprep.subr.bf16.mxu0 %v4540_v42  ;;  %1159 = vmatprep.subr.bf16.mxu1 %v4542_v43 }
 0x2c0   :  { %1119 = vmatpush1.bf16.msra.mxu0 %v4546_v45  ;;  %1160 = vmatpush1.bf16.msra.mxu1 %v4548_v46 }
 0x2c1   :  { %1120 = vmatprep.subr.bf16.mxu0 %v4552_v47  ;;  %1161 = vmatprep.subr.bf16.mxu1 %v4556_v48 }
 0x2c4   :  { %1121 = vmatpush1.bf16.msra.mxu0 %v4558_v49  ;;  %1162 = vmatpush1.bf16.msra.mxu1 %v4560_v50 }
 0x2c5   :  { %1122 = vmatprep.subr.bf16.mxu0 %v4564_v51  ;;  %1163 = vmatprep.subr.bf16.mxu1 %v4568_v52 }
 0x2c8   :  { %1123 = vmatpush1.bf16.msra.mxu0 %v4572_v54  ;;  %1164 = vmatpush1.bf16.msra.mxu1 %v4574_v55 }
 0x2c9   :  { %1124 = vmatprep.subr.bf16.mxu0 %v4576_v56  ;;  %1165 = vmatprep.subr.bf16.mxu1 %v4578_v57 }
 0x2cc   :  { %1125 = vmatpush1.bf16.msra.mxu0 %v4584_v58  ;;  %1166 = vmatpush1.bf16.msra.mxu1 %v4586_v59 }
 0x2cd   :  { %1126 = vmatprep.subr.bf16.mxu0 %v4588_v60  ;;  %1167 = vmatprep.subr.bf16.mxu1 %v4590_v61 }
 0x2d0   :  { %1127 = vmatpush1.bf16.msra.mxu0 %v4598_v63  ;;  %1168 = vmatpush1.bf16.msra.mxu1 %v4600_v1 }
 0x2d1   :  { %1128 = vmatprep.subr.bf16.mxu0 %v4602_v2  ;;  %1169 = vmatprep.subr.bf16.mxu1 %v4604_v3 }
 0x2d4   :  { %1129 = vmatpush1.bf16.msra.mxu0 %v4610_v4  ;;  %1170 = vmatpush1.bf16.msra.mxu1 %v4612_v5 }
 0x2d5   :  { %1238 = vmatprep.subr.bf16.mxu0 %v4518_v33  ;;  %1279 = vmatprep.subr.bf16.mxu1 %v4520_v34 }
 0x38a   :  { %v1024_v22 = vpop.f32.mrb[24].mxu0  ;;  %v1065_v53 = vpop.f32.mrb[24].mxu1 }
 0x38b   :  { %v1072_v15 = vadd.f32 %v1024_v22, %v4696_v32  ;;  %v1074_v14 = vadd.f32 %v1065_v53, %v4699_v44  ;;  %v1026_v16 = vpop.f32.mrb[25].mxu0  ;;  %v1067_v18 = vpop.f32.mrb[25].mxu1 }
 0x38c   :  { %v1073_v17 = vadd.f32 %v1026_v16, %v4701_v62  ;;  %v1075_v8 = vadd.f32 %v1067_v18, %v5756_v19  ;;  %v1028_v9 = vpop.f32.mrb[26].mxu0  ;;  %v1069_v20 = vpop.f32.mrb[26].mxu1 }
 0x38d   :  { %v3510_v6 = vmul.f32 -1.442695, %v1072_v15  ;;  %v1029_v21 = vpop.f32.mrb[27].mxu0  ;;  %v1070_v24 = vpop.f32.mrb[27].mxu1 }
 0x38e   :  { %v3511_v33 = vmul.f32 -1.442695, %v1073_v17  ;;  %v3512_v34 = vmul.f32 -1.442695, %v1075_v8 }
 0x38f   :  { %3905 = vpow2.f32 %v3510_v6 }
 0x390   :  { %3907 = vpow2.f32 %v3511_v33 }
 0x391   :  { %3909 = vpow2.f32 %v3512_v34 }
 0x392   :  { %3911 = vtanh.f32 %v1074_v14 }
 0x399   :  { %v3906_v26 = vpop.eup %3905 }
 0x39a   :  { %v3908_v28 = vpop.eup %3907  ;;  %v1079_v32 = vadd.f32 1.0, %v3906_v26 }
 0x39b   :  { %v1085_v44 = vadd.f32 1.0, %v3908_v28  ;;  %v3910_v62 = vpop.eup %3909 }
 0x39c   :  { %3913 = vrcp.f32 %v1079_v32  ;;  %v3912_v25 = vpop.eup %3911  ;;  %v1092_v12 = vadd.f32 1.0, %v3910_v62  ;;  %v4909_v32 = vld [vmem:[#allocation12] ss:$16 sps:$4 sm:$0xff]   ;;  %v4915_v62 = vld [vmem:[#allocation12 + $0x24] ss:$16 sps:$4 sm:$0xff]  }
 0x39d   :  { %3915 = vrcp.f32 %v1085_v44  ;;  %v4912_v44 = vld [vmem:[#allocation12 + $0x8] ss:$16 sps:$4 sm:$0xff]  }
 0x39e   :  { %3917 = vrcp.f32 %v1092_v12  ;;  %v4932_v12 = vld [vmem:[#allocation12 + $0x4c] ss:$16 sps:$4 sm:$0xff]  }
 0x3a6   :  { %v3914_v29 = vpop.eup %3913 }
 0x3a7   :  { %v3916_v35 = vpop.eup %3915  ;;  %v1097_v7 = vmul.f32 %v3914_v29, %v3912_v25  ;;  %v4918_v25 = vld [vmem:[#allocation12 + $0x2c] ss:$16 sps:$4 sm:$0xff]   ;;  %v4923_v29 = vld [vmem:[#allocation12 + $0x20] ss:$16 sps:$4 sm:$0xff]  }
 0x3a8   :  { %v1096_v31 = vmul.f32 %v3916_v35, %v4806_v10  ;;  %v3918_v23 = vpop.eup %3917  ;;  %v4926_v35 = vld [vmem:[#allocation12 + $0x28] ss:$16 sps:$4 sm:$0xff]  }
 0x3aa   :  { %v4852_v0 = vadd.f32 %v1097_v7, %v1096_v31  ;;  %v4929_v7 = vld [vmem:[#allocation12 + $0x44] ss:$16 sps:$4 sm:$0xff]   ;;  %v4935_v31 = vld [vmem:[#allocation12 + $0x40] ss:$16 sps:$4 sm:$0xff]  }
 0x3ac   :  { %3919 = vtanh.f32 %v4852_v0 }
 0x3b6   :  { %v3920_v30 = vpop.eup %3919 }
 0x3b7   :  { %v4855_v22 = vmul.f32 %v3920_v30, %v3918_v23  ;;  %v4941_v23 = vld [vmem:[#allocation12 + $0x64] ss:$16 sps:$4 sm:$0xff]   ;;  %v4944_v30 = vld [vmem:[#allocation12 + $0x6c] ss:$16 sps:$4 sm:$0xff]  }
 0x3b9   :  { %v1113_v53 = vpack.c.bf16 %v4855_v22, %v4855_v22 }
 0x3bb   :  { %1147 = vmatmul.mubr.bf16.vlgmr.msra.gmra.mrb[28].mxu0 %v1113_v53  ;;  %1188 = vmatmul.mubr.bf16.vlgmr.msra.gmra.mrb[28].mxu1 %v1113_v53  ;;  %v4947_v53 = vld [vmem:[#allocation12 + $0x60] ss:$16 sps:$4 sm:$0xff]  }
 0x3bc   :  { %1239 = vmatpush1.bf16.msra.mxu0 %v4522_v36  ;;  %1280 = vmatpush1.bf16.msra.mxu1 %v4524_v37  ;;  %v4891_v36 = vld [vmem:[#allocation12 + $0x4] ss:$16 sps:$4 sm:$0xff]   ;;  %v4894_v37 = vld [vmem:[#allocation12 + $0xc] ss:$16 sps:$4 sm:$0xff]  }
 0x3bd   :  { %1240 = vmatprep.subr.bf16.mxu0 %v4528_v38  ;;  %1281 = vmatprep.subr.bf16.mxu1 %v4530_v39 }
 0x3be   :  { %1270 = vmatprep.mubr.bf16.mxu0 %v5755_v11  ;;  %1311 = vmatprep.mubr.bf16.mxu1 %v5755_v11 }
 0x3c0   :  { %1241 = vmatpush1.bf16.msra.mxu0 %v4532_v40  ;;  %1282 = vmatpush1.bf16.msra.mxu1 %v4536_v41  ;;  %v5757_v40 = vld [vmem:[#allocation25_spill] sm:$0xff] }
 0x3c1   :  { %1242 = vmatprep.subr.bf16.mxu0 %v4540_v42  ;;  %1283 = vmatprep.subr.bf16.mxu1 %v4542_v43  ;;  %v5758_v42 = vld [vmem:[#allocation26_spill] sm:$0xff] }
 0x3c4   :  { %1243 = vmatpush1.bf16.msra.mxu0 %v4546_v45  ;;  %1284 = vmatpush1.bf16.msra.mxu1 %v4548_v46 }
 0x3c5   :  { %1244 = vmatprep.subr.bf16.mxu0 %v4552_v47  ;;  %1285 = vmatprep.subr.bf16.mxu1 %v4556_v48  ;;  %v5759_v47 = vld [vmem:[#allocation27_spill] sm:$0xff] }
 0x3c8   :  { %1245 = vmatpush1.bf16.msra.mxu0 %v4558_v49  ;;  %1286 = vmatpush1.bf16.msra.mxu1 %v4560_v50  ;;  %v5760_v49 = vld [vmem:[#allocation28_spill] sm:$0xff] }
 0x3c9   :  { %1246 = vmatprep.subr.bf16.mxu0 %v4564_v51  ;;  %1287 = vmatprep.subr.bf16.mxu1 %v4568_v52 }
 0x3cc   :  { %1247 = vmatpush1.bf16.msra.mxu0 %v4572_v54  ;;  %1288 = vmatpush1.bf16.msra.mxu1 %v4574_v55 }
 0x3cd   :  { %1248 = vmatprep.subr.bf16.mxu0 %v4576_v56  ;;  %1289 = vmatprep.subr.bf16.mxu1 %v4578_v57 }
 0x3d0   :  { %1249 = vmatpush1.bf16.msra.mxu0 %v4584_v58  ;;  %1290 = vmatpush1.bf16.msra.mxu1 %v4586_v59 }
 0x3d1   :  { %1250 = vmatprep.subr.bf16.mxu0 %v4588_v60  ;;  %1291 = vmatprep.subr.bf16.mxu1 %v4590_v61 }
 0x3d4   :  { %1251 = vmatpush1.bf16.msra.mxu0 %v4598_v63  ;;  %1292 = vmatpush1.bf16.msra.mxu1 %v4600_v1 }
 0x3d5   :  { %1252 = vmatprep.subr.bf16.mxu0 %v4602_v2  ;;  %1293 = vmatprep.subr.bf16.mxu1 %v4604_v3 }
 0x3d8   :  { %1253 = vmatpush1.bf16.msra.mxu0 %v4610_v4  ;;  %1294 = vmatpush1.bf16.msra.mxu1 %v4612_v5 }
 0x3d9   :  { %1362 = vmatprep.subr.bf16.mxu0 %v4891_v36  ;;  %1403 = vmatprep.subr.bf16.mxu1 %v4894_v37 }
 0x48e   :  { %v1148_v38 = vpop.f32.mrb[28].mxu0  ;;  %v1189_v39 = vpop.f32.mrb[28].mxu1 }
 0x48f   :  { %v1196_v41 = vadd.f32 %v1148_v38, %v5757_v40  ;;  %v1198_v43 = vadd.f32 %v1189_v39, %v5758_v42  ;;  %v1150_v45 = vpop.f32.mrb[29].mxu0  ;;  %v1191_v46 = vpop.f32.mrb[29].mxu1  ;;  %v4950_v38 = vld [vmem:[#allocation12 + $0x68] ss:$16 sps:$4 sm:$0xff]   ;;  %v4953_v39 = vld [vmem:[#allocation12 + $0x84] ss:$16 sps:$4 sm:$0xff]  }
 0x490   :  { %v1197_v48 = vadd.f32 %v1150_v45, %v5759_v47  ;;  %v1199_v50 = vadd.f32 %v1191_v46, %v5760_v49  ;;  %v1152_v51 = vpop.f32.mrb[30].mxu0  ;;  %v1193_v52 = vpop.f32.mrb[30].mxu1  ;;  %v4956_v40 = vld [vmem:[#allocation12 + $0x8c] ss:$16 sps:$4 sm:$0xff]   ;;  %v4962_v42 = vld [vmem:[#allocation12 + $0x88] ss:$16 sps:$4 sm:$0xff]  }
 0x491   :  { %v3513_v54 = vmul.f32 -1.442695, %v1196_v41  ;;  %v1153_v55 = vpop.f32.mrb[31].mxu0  ;;  %v1194_v56 = vpop.f32.mrb[31].mxu1  ;;  %v4959_v41 = vld [vmem:[#allocation12 + $0x80] ss:$16 sps:$4 sm:$0xff]  }
 0x492   :  { %v3514_v57 = vmul.f32 -1.442695, %v1197_v48  ;;  %v3515_v10 = vmul.f32 -1.442695, %v1199_v50  ;;  %v4968_v45 = vld [vmem:[#allocation12 + $0xac] ss:$16 sps:$4 sm:$0xff]  }
 0x493   :  { %3921 = vpow2.f32 %v3513_v54  ;;  %v5762_v46 = vld [vmem:[#allocation30_spill] sm:$0xff]  ;;  %v5763_v48 = vld [vmem:[#allocation31_spill] sm:$0xff]  ;;  %v5764_v49 = vld [vmem:[#allocation32_spill] sm:$0xff] }
 0x494   :  { %3923 = vpow2.f32 %v3514_v57 }
 0x495   :  { %3925 = vpow2.f32 %v3515_v10 }
 0x496   :  { %3927 = vtanh.f32 %v1198_v43  ;;  %v4965_v43 = vld [vmem:[#allocation12 + $0xa4] ss:$16 sps:$4 sm:$0xff]  }
 0x49d   :  { %v3922_v15 = vpop.eup %3921 }
 0x49e   :  { %v3924_v14 = vpop.eup %3923  ;;  %v1203_v16 = vadd.f32 1.0, %v3922_v15 }
 0x49f   :  { %v1209_v18 = vadd.f32 1.0, %v3924_v14  ;;  %v3926_v17 = vpop.eup %3925 }
 0x4a0   :  { %3929 = vrcp.f32 %v1203_v16  ;;  %v3928_v19 = vpop.eup %3927  ;;  %v1216_v6 = vadd.f32 1.0, %v3926_v17 }
 0x4a1   :  { %3931 = vrcp.f32 %v1209_v18 }
 0x4a2   :  { %3933 = vrcp.f32 %v1216_v6 }
 0x4aa   :  { %v3930_v8 = vpop.eup %3929 }
 0x4ab   :  { %v3932_v9 = vpop.eup %3931  ;;  %v1221_v20 = vmul.f32 %v3930_v8, %v3928_v19 }
 0x4ac   :  { %v1220_v21 = vmul.f32 %v3932_v9, %v4852_v0  ;;  %v3934_v33 = vpop.eup %3933  ;;  %v4938_v0 = vld [vmem:[#allocation12 + $0x48] ss:$16 sps:$4 sm:$0xff]  }
 0x4ae   :  { %v4902_v24 = vadd.f32 %v1221_v20, %v1220_v21 }
 0x4b0   :  { %3935 = vtanh.f32 %v4902_v24 }
 0x4ba   :  { %v3936_v34 = vpop.eup %3935 }
 0x4bb   :  { %v4905_v26 = vmul.f32 %v3936_v34, %v3934_v33 }
 0x4bd   :  { %v1237_v28 = vpack.c.bf16 %v4905_v26, %v4905_v26 }
 0x4bf   :  { %1271 = vmatmul.mubr.bf16.vlgmr.msra.gmra.mrb[32].mxu0 %v1237_v28  ;;  %1312 = vmatmul.mubr.bf16.vlgmr.msra.gmra.mrb[32].mxu1 %v1237_v28  ;;  %v5020_v28 = vld [vmem:[#allocation12 + $0xa8] ss:$16 sps:$4 sm:$0xff]  }
 0x4c0   :  { %1363 = vmatpush1.bf16.msra.mxu0 %v4909_v32  ;;  %1404 = vmatpush1.bf16.msra.mxu1 %v4912_v44 }
 0x4c1   :  { %1364 = vmatprep.subr.bf16.mxu0 %v4915_v62  ;;  %1405 = vmatprep.subr.bf16.mxu1 %v4918_v25 }
 0x4c2   :  { %1394 = vmatprep.mubr.bf16.mxu0 %v5755_v11  ;;  %1435 = vmatprep.mubr.bf16.mxu1 %v5755_v11 }
 0x4c4   :  { %1365 = vmatpush1.bf16.msra.mxu0 %v4923_v29  ;;  %1406 = vmatpush1.bf16.msra.mxu1 %v4926_v35 }
 0x4c5   :  { %1366 = vmatprep.subr.bf16.mxu0 %v4929_v7  ;;  %1407 = vmatprep.subr.bf16.mxu1 %v4932_v12 }
 0x4c8   :  { %1367 = vmatpush1.bf16.msra.mxu0 %v4935_v31  ;;  %1408 = vmatpush1.bf16.msra.mxu1 %v4938_v0 }
 0x4c9   :  { %1368 = vmatprep.subr.bf16.mxu0 %v4941_v23  ;;  %1409 = vmatprep.subr.bf16.mxu1 %v4944_v30 }
 0x4cc   :  { %1369 = vmatpush1.bf16.msra.mxu0 %v4947_v53  ;;  %1410 = vmatpush1.bf16.msra.mxu1 %v4950_v38 }
 0x4cd   :  { %1370 = vmatprep.subr.bf16.mxu0 %v4953_v39  ;;  %1411 = vmatprep.subr.bf16.mxu1 %v4956_v40 }
 0x4d0   :  { %1371 = vmatpush1.bf16.msra.mxu0 %v4959_v41  ;;  %1412 = vmatpush1.bf16.msra.mxu1 %v4962_v42 }
 0x4d1   :  { %1372 = vmatprep.subr.bf16.mxu0 %v4965_v43  ;;  %1413 = vmatprep.subr.bf16.mxu1 %v4968_v45 }
 0x4d4   :  { %1373 = vmatpush1.bf16.msra.mxu0 %v4584_v58  ;;  %1414 = vmatpush1.bf16.msra.mxu1 %v4586_v59 }
 0x4d5   :  { %1374 = vmatprep.subr.bf16.mxu0 %v4588_v60  ;;  %1415 = vmatprep.subr.bf16.mxu1 %v4590_v61  ;;  %v5761_v60 = vld [vmem:[#allocation29_spill] sm:$0xff] }
 0x4d8   :  { %1375 = vmatpush1.bf16.msra.mxu0 %v4598_v63  ;;  %1416 = vmatpush1.bf16.msra.mxu1 %v4600_v1 }
 0x4d9   :  { %1376 = vmatprep.subr.bf16.mxu0 %v4602_v2  ;;  %1417 = vmatprep.subr.bf16.mxu1 %v4604_v3 }
 0x4dc   :  { %1377 = vmatpush1.bf16.msra.mxu0 %v4610_v4  ;;  %1418 = vmatpush1.bf16.msra.mxu1 %v4612_v5 }
 0x4dd   :  { %1486 = vmatprep.subr.bf16.mxu0 %v4891_v36  ;;  %1527 = vmatprep.subr.bf16.mxu1 %v4894_v37 }
 0x592   :  { %v1272_v58 = vpop.f32.mrb[32].mxu0  ;;  %v1313_v59 = vpop.f32.mrb[32].mxu1 }
 0x593   :  { %v1320_v61 = vadd.f32 %v1272_v58, %v5761_v60  ;;  %v1322_v63 = vadd.f32 %v1313_v59, %v5762_v46  ;;  %v1274_v47 = vpop.f32.mrb[33].mxu0  ;;  %v1315_v1 = vpop.f32.mrb[33].mxu1  ;;  %v5023_v58 = vld [vmem:[#allocation12 + $0xc4] ss:$16 sps:$4 sm:$0xff]   ;;  %v5026_v59 = vld [vmem:[#allocation12 + $0xcc] ss:$16 sps:$4 sm:$0xff]  }
 0x594   :  { %v1321_v2 = vadd.f32 %v1274_v47, %v5763_v48  ;;  %v1323_v3 = vadd.f32 %v1315_v1, %v5764_v49  ;;  %v1276_v50 = vpop.f32.mrb[34].mxu0  ;;  %v1317_v4 = vpop.f32.mrb[34].mxu1  ;;  %v5029_v60 = vld [vmem:[#allocation12 + $0xc0] ss:$16 sps:$4 sm:$0xff]   ;;  %v5035_v46 = vld [vmem:[#allocation12 + $0xe4] ss:$16 sps:$4 sm:$0xff]  }
 0x595   :  { %v3516_v51 = vmul.f32 -1.442695, %v1320_v61  ;;  %v1277_v5 = vpop.f32.mrb[35].mxu0  ;;  %v1318_v52 = vpop.f32.mrb[35].mxu1  ;;  %v5032_v61 = vld [vmem:[#allocation12 + $0xc8] ss:$16 sps:$4 sm:$0xff]  }
 0x596   :  { %v3517_v54 = vmul.f32 -1.442695, %v1321_v2  ;;  %v3518_v55 = vmul.f32 -1.442695, %v1323_v3  ;;  %v5041_v47 = vld [vmem:[#allocation12 + $0xe0] ss:$16 sps:$4 sm:$0xff]  }
 0x597   :  { %3937 = vpow2.f32 %v3516_v51  ;;  %v5044_v1 = vld [vmem:[#allocation12 + $0xe8] ss:$16 sps:$4 sm:$0xff]   ;;  %v5766_v50 = vld [vmem:[#allocation34_spill] sm:$0xff] }
 0x598   :  { %3939 = vpow2.f32 %v3517_v54  ;;  %v5765_v49 = vld [vmem:[#allocation33_spill] sm:$0xff]  ;;  %v5767_v52 = vld [vmem:[#allocation35_spill] sm:$0xff] }
 0x599   :  { %3941 = vpow2.f32 %v3518_v55  ;;  %v5768_v55 = vld [vmem:[#allocation36_spill] sm:$0xff] }
 0x59a   :  { %3943 = vtanh.f32 %v1322_v63  ;;  %v5038_v63 = vld [vmem:[#allocation12 + $0xec] ss:$16 sps:$4 sm:$0xff]  }
 0x5a1   :  { %v3938_v56 = vpop.eup %3937 }
 0x5a2   :  { %v3940_v57 = vpop.eup %3939  ;;  %v1327_v10 = vadd.f32 1.0, %v3938_v56 }
 0x5a3   :  { %v1333_v15 = vadd.f32 1.0, %v3940_v57  ;;  %v3942_v14 = vpop.eup %3941 }
 0x5a4   :  { %3945 = vrcp.f32 %v1327_v10  ;;  %v3944_v16 = vpop.eup %3943  ;;  %v1340_v8 = vadd.f32 1.0, %v3942_v14 }
 0x5a5   :  { %3947 = vrcp.f32 %v1333_v15 }
 0x5a6   :  { %3949 = vrcp.f32 %v1340_v8 }
 0x5ae   :  { %v3946_v18 = vpop.eup %3945 }
 0x5af   :  { %v3948_v17 = vpop.eup %3947  ;;  %v1345_v19 = vmul.f32 %v3946_v18, %v3944_v16 }
 0x5b0   :  { %v1344_v9 = vmul.f32 %v3948_v17, %v4902_v24  ;;  %v3950_v6 = vpop.eup %3949  ;;  %v5017_v24 = vld [vmem:[#allocation12 + $0xa0] ss:$16 sps:$4 sm:$0xff]  }
 0x5b2   :  { %v4988_v20 = vadd.f32 %v1345_v19, %v1344_v9 }
 0x5b4   :  { %3951 = vtanh.f32 %v4988_v20 }
 0x5be   :  { %v3952_v21 = vpop.eup %3951 }
 0x5bf   :  { %v4991_v33 = vmul.f32 %v3952_v21, %v3950_v6 }
 0x5c1   :  { %v1361_v34 = vpack.c.bf16 %v4991_v33, %v4991_v33 }
 0x5c3   :  { %1395 = vmatmul.mubr.bf16.vlgmr.msra.gmra.mrb[36].mxu0 %v1361_v34  ;;  %1436 = vmatmul.mubr.bf16.vlgmr.msra.gmra.mrb[36].mxu1 %v1361_v34 }
 0x5c4   :  { %1487 = vmatpush1.bf16.msra.mxu0 %v4909_v32  ;;  %1528 = vmatpush1.bf16.msra.mxu1 %v4912_v44 }
 0x5c5   :  { %1488 = vmatprep.subr.bf16.mxu0 %v4915_v62  ;;  %1529 = vmatprep.subr.bf16.mxu1 %v4918_v25 }
 0x5c6   :  { %1518 = vmatprep.mubr.bf16.mxu0 %v5755_v11  ;;  %1559 = vmatprep.mubr.bf16.mxu1 %v5755_v11 }
 0x5c8   :  { %1489 = vmatpush1.bf16.msra.mxu0 %v4923_v29  ;;  %1530 = vmatpush1.bf16.msra.mxu1 %v4926_v35 }
 0x5c9   :  { %1490 = vmatprep.subr.bf16.mxu0 %v4929_v7  ;;  %1531 = vmatprep.subr.bf16.mxu1 %v4932_v12 }
 0x5cc   :  { %1491 = vmatpush1.bf16.msra.mxu0 %v4935_v31  ;;  %1532 = vmatpush1.bf16.msra.mxu1 %v4938_v0 }
 0x5cd   :  { %1492 = vmatprep.subr.bf16.mxu0 %v4941_v23  ;;  %1533 = vmatprep.subr.bf16.mxu1 %v4944_v30 }
 0x5d0   :  { %1493 = vmatpush1.bf16.msra.mxu0 %v4947_v53  ;;  %1534 = vmatpush1.bf16.msra.mxu1 %v4950_v38 }
 0x5d1   :  { %1494 = vmatprep.subr.bf16.mxu0 %v4953_v39  ;;  %1535 = vmatprep.subr.bf16.mxu1 %v4956_v40 }
 0x5d4   :  { %1495 = vmatpush1.bf16.msra.mxu0 %v4959_v41  ;;  %1536 = vmatpush1.bf16.msra.mxu1 %v4962_v42 }
 0x5d5   :  { %1496 = vmatprep.subr.bf16.mxu0 %v4965_v43  ;;  %1537 = vmatprep.subr.bf16.mxu1 %v4968_v45 }
 0x5d8   :  { %1497 = vmatpush1.bf16.msra.mxu0 %v5017_v24  ;;  %1538 = vmatpush1.bf16.msra.mxu1 %v5020_v28 }
 0x5d9   :  { %1498 = vmatprep.subr.bf16.mxu0 %v5023_v58  ;;  %1539 = vmatprep.subr.bf16.mxu1 %v5026_v59 }
 0x5dc   :  { %1499 = vmatpush1.bf16.msra.mxu0 %v5029_v60  ;;  %1540 = vmatpush1.bf16.msra.mxu1 %v5032_v61 }
 0x5dd   :  { %1500 = vmatprep.subr.bf16.mxu0 %v5035_v46  ;;  %1541 = vmatprep.subr.bf16.mxu1 %v5038_v63 }
 0x5e0   :  { %1501 = vmatpush1.bf16.msra.mxu0 %v5041_v47  ;;  %1542 = vmatpush1.bf16.msra.mxu1 %v5044_v1 }
 0x5e1   :  { %1610 = vmatprep.subr.bf16.mxu0 %v4891_v36  ;;  %1651 = vmatprep.subr.bf16.mxu1 %v4894_v37 }
 0x696   :  { %v1396_v48 = vpop.f32.mrb[36].mxu0  ;;  %v1437_v2 = vpop.f32.mrb[36].mxu1 }
 0x697   :  { %v1444_v3 = vadd.f32 %v1396_v48, %v5765_v49  ;;  %v1446_v4 = vadd.f32 %v1437_v2, %v5766_v50  ;;  %v1398_v51 = vpop.f32.mrb[37].mxu0  ;;  %v1439_v5 = vpop.f32.mrb[37].mxu1 }
 0x698   :  { %v1445_v54 = vadd.f32 %v1398_v51, %v5767_v52  ;;  %v1447_v56 = vadd.f32 %v1439_v5, %v5768_v55  ;;  %v1400_v57 = vpop.f32.mrb[38].mxu0  ;;  %v1441_v10 = vpop.f32.mrb[38].mxu1 }
 0x699   :  { %v3519_v15 = vmul.f32 -1.442695, %v1444_v3  ;;  %v1401_v14 = vpop.f32.mrb[39].mxu0  ;;  %v1442_v16 = vpop.f32.mrb[39].mxu1  ;;  %v3769_v10 = vld [vmem:[#allocation11] ss:$16 sps:$4 sm:$0xff]  }
 0x69a   :  { %v3520_v36 = vmul.f32 -1.442695, %v1445_v54  ;;  %v3521_v37 = vmul.f32 -1.442695, %v1447_v56  ;;  %v3777_v16 = vld [vmem:[#allocation11 + $0x24] ss:$16 sps:$4 sm:$0xff]  }
 0x69b   :  { %3953 = vpow2.f32 %v3519_v15  ;;  %v3772_v15 = vld [vmem:[#allocation11 + $0x8] ss:$16 sps:$4 sm:$0xff]  }
 0x69c   :  { %3955 = vpow2.f32 %v3520_v36  ;;  %v3780_v36 = vld [vmem:[#allocation11 + $0x2c] ss:$16 sps:$4 sm:$0xff]  }
 0x69d   :  { %3957 = vpow2.f32 %v3521_v37  ;;  %v3775_v37 = vld [vmem:[#allocation11 + $0x20] ss:$16 sps:$4 sm:$0xff]  }
 0x69e   :  { %3959 = vtanh.f32 %v1446_v4 }
 0x6a5   :  { %v3954_v18 = vpop.eup %3953 }
 0x6a6   :  { %v3956_v17 = vpop.eup %3955  ;;  %v1451_v19 = vadd.f32 1.0, %v3954_v18  ;;  %v3778_v18 = vld [vmem:[#allocation11 + $0x28] ss:$16 sps:$4 sm:$0xff]  }
 0x6a7   :  { %v1457_v8 = vadd.f32 1.0, %v3956_v17  ;;  %v3958_v9 = vpop.eup %3957  ;;  %v3783_v17 = vld [vmem:[#allocation11 + $0x44] ss:$16 sps:$4 sm:$0xff]  }
 0x6a8   :  { %3961 = vrcp.f32 %v1451_v19  ;;  %v3960_v6 = vpop.eup %3959  ;;  %v1464_v2 = vadd.f32 1.0, %v3958_v9  ;;  %v3786_v19 = vld [vmem:[#allocation11 + $0x4c] ss:$16 sps:$4 sm:$0xff]   ;;  %v3784_v9 = vld [vmem:[#allocation11 + $0x48] ss:$16 sps:$4 sm:$0xff]  }
 0x6a9   :  { %3963 = vrcp.f32 %v1457_v8  ;;  %v3781_v8 = vld [vmem:[#allocation11 + $0x40] ss:$16 sps:$4 sm:$0xff]  }
 0x6aa   :  { %3965 = vrcp.f32 %v1464_v2  ;;  %v3795_v2 = vld [vmem:[#allocation11 + $0x84] ss:$16 sps:$4 sm:$0xff]  }
 0x6b2   :  { %v3962_v21 = vpop.eup %3961 }
 0x6b3   :  { %v3964_v34 = vpop.eup %3963  ;;  %v1469_v48 = vmul.f32 %v3962_v21, %v3960_v6  ;;  %v3789_v6 = vld [vmem:[#allocation11 + $0x64] ss:$16 sps:$4 sm:$0xff]   ;;  %v3792_v21 = vld [vmem:[#allocation11 + $0x6c] ss:$16 sps:$4 sm:$0xff]  }
 0x6b4   :  { %v1468_v49 = vmul.f32 %v3964_v34, %v4988_v20  ;;  %v3966_v50 = vpop.eup %3965  ;;  %v3787_v34 = vld [vmem:[#allocation11 + $0x60] ss:$16 sps:$4 sm:$0xff]  }
 0x6b6   :  { %v5054_v3 = vadd.f32 %v1469_v48, %v1468_v49  ;;  %v3790_v48 = vld [vmem:[#allocation11 + $0x68] ss:$16 sps:$4 sm:$0xff]   ;;  %v3798_v49 = vld [vmem:[#allocation11 + $0x8c] ss:$16 sps:$4 sm:$0xff]  }
 0x6b8   :  { %3967 = vtanh.f32 %v5054_v3 }
 0x6c2   :  { %v3968_v51 = vpop.eup %3967 }
 0x6c3   :  { %v5057_v5 = vmul.f32 %v3968_v51, %v3966_v50  ;;  %v3796_v50 = vld [vmem:[#allocation11 + $0x88] ss:$16 sps:$4 sm:$0xff]   ;;  %v3801_v51 = vld [vmem:[#allocation11 + $0xa4] ss:$16 sps:$4 sm:$0xff]  }
 0x6c5   :  { %v1485_v4 = vpack.c.bf16 %v5057_v5, %v5057_v5 }
 0x6c7   :  { %1519 = vmatmul.mubr.bf16.vlgmr.msra.gmra.mrb[40].mxu0 %v1485_v4  ;;  %1560 = vmatmul.mubr.bf16.vlgmr.msra.gmra.mrb[40].mxu1 %v1485_v4  ;;  %v3804_v4 = vld [vmem:[#allocation11 + $0xac] ss:$16 sps:$4 sm:$0xff]  }
 0x6c8   :  { %1611 = vmatpush1.bf16.msra.mxu0 %v4909_v32  ;;  %1652 = vmatpush1.bf16.msra.mxu1 %v4912_v44  ;;  %v3771_v32 = vld [vmem:[#allocation11 + $0x4] ss:$16 sps:$4 sm:$0xff]   ;;  %v3774_v44 = vld [vmem:[#allocation11 + $0xc] ss:$16 sps:$4 sm:$0xff]  }
 0x6c9   :  { %1612 = vmatprep.subr.bf16.mxu0 %v4915_v62  ;;  %1653 = vmatprep.subr.bf16.mxu1 %v4918_v25 }
 0x6ca   :  { %1642 = vmatprep.mubr.bf16.mxu0 %v5755_v11  ;;  %1683 = vmatprep.mubr.bf16.mxu1 %v5755_v11 }
 0x6cc   :  { %1613 = vmatpush1.bf16.msra.mxu0 %v4923_v29  ;;  %1654 = vmatpush1.bf16.msra.mxu1 %v4926_v35  ;;  %v5769_v29 = vld [vmem:[#allocation37_spill] sm:$0xff] }
 0x6cd   :  { %1614 = vmatprep.subr.bf16.mxu0 %v4929_v7  ;;  %1655 = vmatprep.subr.bf16.mxu1 %v4932_v12  ;;  %v5770_v7 = vld [vmem:[#allocation38_spill] sm:$0xff] }
 0x6d0   :  { %1615 = vmatpush1.bf16.msra.mxu0 %v4935_v31  ;;  %1656 = vmatpush1.bf16.msra.mxu1 %v4938_v0 }
 0x6d1   :  { %1616 = vmatprep.subr.bf16.mxu0 %v4941_v23  ;;  %1657 = vmatprep.subr.bf16.mxu1 %v4944_v30  ;;  %v5771_v23 = vld [vmem:[#allocation39_spill] sm:$0xff] }
 0x6d4   :  { %1617 = vmatpush1.bf16.msra.mxu0 %v4947_v53  ;;  %1658 = vmatpush1.bf16.msra.mxu1 %v4950_v38  ;;  %v5772_v53 = vld [vmem:[#allocation40_spill] sm:$0xff] }
 0x6d5   :  { %1618 = vmatprep.subr.bf16.mxu0 %v4953_v39  ;;  %1659 = vmatprep.subr.bf16.mxu1 %v4956_v40 }
 0x6d8   :  { %1619 = vmatpush1.bf16.msra.mxu0 %v4959_v41  ;;  %1660 = vmatpush1.bf16.msra.mxu1 %v4962_v42 }
 0x6d9   :  { %1620 = vmatprep.subr.bf16.mxu0 %v4965_v43  ;;  %1661 = vmatprep.subr.bf16.mxu1 %v4968_v45 }
 0x6dc   :  { %1621 = vmatpush1.bf16.msra.mxu0 %v5017_v24  ;;  %1662 = vmatpush1.bf16.msra.mxu1 %v5020_v28 }
 0x6dd   :  { %1622 = vmatprep.subr.bf16.mxu0 %v5023_v58  ;;  %1663 = vmatprep.subr.bf16.mxu1 %v5026_v59 }
 0x6e0   :  { %1623 = vmatpush1.bf16.msra.mxu0 %v5029_v60  ;;  %1664 = vmatpush1.bf16.msra.mxu1 %v5032_v61 }
 0x6e1   :  { %1624 = vmatprep.subr.bf16.mxu0 %v5035_v46  ;;  %1665 = vmatprep.subr.bf16.mxu1 %v5038_v63 }
 0x6e4   :  { %1625 = vmatpush1.bf16.msra.mxu0 %v5041_v47  ;;  %1666 = vmatpush1.bf16.msra.mxu1 %v5044_v1 }
 0x6e5   :  { %1983 = vmatprep.subr.bf16.mxu0 %v3771_v32  ;;  %2056 = vmatprep.subr.bf16.mxu1 %v3774_v44  ;;  %v3799_v32 = vld [vmem:[#allocation11 + $0xa0] ss:$16 sps:$4 sm:$0xff]   ;;  %v3802_v44 = vld [vmem:[#allocation11 + $0xa8] ss:$16 sps:$4 sm:$0xff]  }
 0x79a   :  { %v1520_v62 = vpop.f32.mrb[40].mxu0  ;;  %v1561_v25 = vpop.f32.mrb[40].mxu1 }
 0x79b   :  { %v1568_v35 = vadd.f32 %v1520_v62, %v5769_v29  ;;  %v1570_v12 = vadd.f32 %v1561_v25, %v5770_v7  ;;  %v1522_v31 = vpop.f32.mrb[41].mxu0  ;;  %v1563_v0 = vpop.f32.mrb[41].mxu1  ;;  %v3807_v62 = vld [vmem:[#allocation11 + $0xc4] ss:$16 sps:$4 sm:$0xff]   ;;  %v3810_v25 = vld [vmem:[#allocation11 + $0xcc] ss:$16 sps:$4 sm:$0xff]  }
 0x79c   :  { %v1569_v30 = vadd.f32 %v1522_v31, %v5771_v23  ;;  %v1571_v38 = vadd.f32 %v1563_v0, %v5772_v53  ;;  %v1524_v39 = vpop.f32.mrb[42].mxu0  ;;  %v1565_v40 = vpop.f32.mrb[42].mxu1  ;;  %v3805_v29 = vld [vmem:[#allocation11 + $0xc0] ss:$16 sps:$4 sm:$0xff]   ;;  %v3813_v7 = vld [vmem:[#allocation11 + $0xe4] ss:$16 sps:$4 sm:$0xff]   ;;  %v1765_v23 = vpack.c.bf16 %v4809_v13, %v4763_v27  ;;  %v1767_v53 = vpack.c.bf16 %v5057_v5, %v4991_v33 }
 0x79d   :  { %v3522_v41 = vmul.f32 -1.442695, %v1568_v35  ;;  %v1525_v42 = vpop.f32.mrb[43].mxu0  ;;  %v1566_v43 = vpop.f32.mrb[43].mxu1  ;;  %v3808_v35 = vld [vmem:[#allocation11 + $0xc8] ss:$16 sps:$4 sm:$0xff]  }
 0x79e   :  { %v3523_v45 = vmul.f32 -1.442695, %v1569_v30  ;;  %v3524_v20 = vmul.f32 -1.442695, %v1571_v38  ;;  %v3811_v31 = vld [vmem:[#allocation11 + $0xe0] ss:$16 sps:$4 sm:$0xff]   ;;  %v1766_v30 = vpack.c.bf16 %v4905_v26, %v4855_v22 }
 0x79f   :  { %3969 = vpow2.f32 %v3522_v41  ;;  %v3814_v0 = vld [vmem:[#allocation11 + $0xe8] ss:$16 sps:$4 sm:$0xff]   ;;  %v5119_v27 = vld [vmem:[#allocation14 + $0x4] ss:$16 sps:$4 sm:$0xff]   ;;  %v5121_v13 = vld [vmem:[#allocation14 + $0xc] ss:$16 sps:$4 sm:$0xff]  }
 0x7a0   :  { %3971 = vpow2.f32 %v3523_v45  ;;  %v5123_v22 = vld [vmem:[#allocation14] ss:$16 sps:$4 sm:$0xff]   ;;  %v5125_v26 = vld [vmem:[#allocation14 + $0x8] ss:$16 sps:$4 sm:$0xff]   ;;  %v5131_v33 = vld [vmem:[#allocation14 + $0x24] ss:$16 sps:$4 sm:$0xff]  }
 0x7a1   :  { %3973 = vpow2.f32 %v3524_v20  ;;  %v5133_v5 = vld [vmem:[#allocation14 + $0x2c] ss:$16 sps:$4 sm:$0xff]   ;;  %v5135_v38 = vld [vmem:[#allocation14 + $0x20] ss:$16 sps:$4 sm:$0xff]   ;;  %v5137_v39 = vld [vmem:[#allocation14 + $0x28] ss:$16 sps:$4 sm:$0xff]  }
 0x7a2   :  { %3975 = vtanh.f32 %v1570_v12  ;;  %v3816_v12 = vld [vmem:[#allocation11 + $0xec] ss:$16 sps:$4 sm:$0xff]   ;;  %v5143_v40 = vld [vmem:[#allocation14 + $0x44] ss:$16 sps:$4 sm:$0xff]   ;;  %v5147_v42 = vld [vmem:[#allocation14 + $0x40] ss:$16 sps:$4 sm:$0xff]  }
 0x7a3   :  { %v5145_v41 = vld [vmem:[#allocation14 + $0x4c] ss:$16 sps:$4 sm:$0xff]   ;;  %v5149_v43 = vld [vmem:[#allocation14 + $0x48] ss:$16 sps:$4 sm:$0xff]   ;;  %v5155_v45 = vld [vmem:[#allocation14 + $0x64] ss:$16 sps:$4 sm:$0xff]  }
 0x7a4   :  { %v5157_v20 = vld [vmem:[#allocation14 + $0x6c] ss:$16 sps:$4 sm:$0xff]  }
 0x7a9   :  { %v3970_v24 = vpop.eup %3969 }
 0x7aa   :  { %v3972_v28 = vpop.eup %3971  ;;  %v1575_v58 = vadd.f32 1.0, %v3970_v24  ;;  %v5159_v24 = vld [vmem:[#allocation14 + $0x60] ss:$16 sps:$4 sm:$0xff]  }
 0x7ab   :  { %v1581_v59 = vadd.f32 1.0, %v3972_v28  ;;  %v3974_v60 = vpop.eup %3973  ;;  %v5161_v28 = vld [vmem:[#allocation14 + $0x68] ss:$16 sps:$4 sm:$0xff]  }
 0x7ac   :  { %3977 = vrcp.f32 %v1575_v58  ;;  %v3976_v61 = vpop.eup %3975  ;;  %v1588_v1 = vadd.f32 1.0, %v3974_v60  ;;  %v5167_v58 = vld [vmem:[#allocation14 + $0x84] ss:$16 sps:$4 sm:$0xff]   ;;  %v5171_v60 = vld [vmem:[#allocation14 + $0x80] ss:$16 sps:$4 sm:$0xff]  }
 0x7ad   :  { %3979 = vrcp.f32 %v1581_v59  ;;  %v5169_v59 = vld [vmem:[#allocation14 + $0x8c] ss:$16 sps:$4 sm:$0xff]  }
 0x7ae   :  { %3981 = vrcp.f32 %v1588_v1  ;;  %v5185_v1 = vld [vmem:[#allocation14 + $0xa8] ss:$16 sps:$4 sm:$0xff]  }
 0x7b6   :  { %v3978_v46 = vpop.eup %3977 }
 0x7b7   :  { %v3980_v63 = vpop.eup %3979  ;;  %v1593_v47 = vmul.f32 %v3978_v46, %v3976_v61  ;;  %v5173_v61 = vld [vmem:[#allocation14 + $0x88] ss:$16 sps:$4 sm:$0xff]   ;;  %v5179_v46 = vld [vmem:[#allocation14 + $0xa4] ss:$16 sps:$4 sm:$0xff]  }
 0x7b8   :  { %v1592_v52 = vmul.f32 %v3980_v63, %v5054_v3  ;;  %v3982_v55 = vpop.eup %3981  ;;  %v3793_v3 = vld [vmem:[#allocation11 + $0x80] ss:$16 sps:$4 sm:$0xff]   ;;  %v5181_v63 = vld [vmem:[#allocation14 + $0xac] ss:$16 sps:$4 sm:$0xff]  }
 0x7ba   :  { %v5098_v54 = vadd.f32 %v1593_v47, %v1592_v52  ;;  %v5183_v47 = vld [vmem:[#allocation14 + $0xa0] ss:$16 sps:$4 sm:$0xff]   ;;  %v5191_v52 = vld [vmem:[#allocation14 + $0xc4] ss:$16 sps:$4 sm:$0xff]  }
 0x7bc   :  { %3983 = vtanh.f32 %v5098_v54 }
 0x7c6   :  { %v3984_v56 = vpop.eup %3983 }
 0x7c7   :  { %v5101_v57 = vmul.f32 %v3984_v56, %v3982_v55  ;;  %v5193_v55 = vld [vmem:[#allocation14 + $0xcc] ss:$16 sps:$4 sm:$0xff]   ;;  %v5195_v56 = vld [vmem:[#allocation14 + $0xc0] ss:$16 sps:$4 sm:$0xff]  }
 0x7c9   :  { %v1609_v14 = vpack.c.bf16 %v5101_v57, %v5101_v57 }
 0x7cb   :  { %1643 = vmatmul.mubr.bf16.vlgmr.msra.gmra.mrb[44].mxu0 %v1609_v14  ;;  %1684 = vmatmul.mubr.bf16.vlgmr.msra.gmra.mrb[44].mxu1 %v1609_v14  ;;  %v5205_v14 = vld [vmem:[#allocation14 + $0xec] ss:$16 sps:$4 sm:$0xff]  }
 0x7cc   :  { %1984 = vmatpush1.bf16.msra.mxu0 %v3769_v10  ;;  %2057 = vmatpush1.bf16.msra.mxu1 %v3772_v15  ;;  %v5197_v10 = vld [vmem:[#allocation14 + $0xc8] ss:$16 sps:$4 sm:$0xff]   ;;  %v5203_v15 = vld [vmem:[#allocation14 + $0xe4] ss:$16 sps:$4 sm:$0xff]  }
 0x7cd   :  { %1985 = vmatprep.subr.bf16.mxu0 %v3777_v16  ;;  %2058 = vmatprep.subr.bf16.mxu1 %v3780_v36  ;;  %v5207_v16 = vld [vmem:[#allocation14 + $0xe0] ss:$16 sps:$4 sm:$0xff]   ;;  %v5209_v36 = vld [vmem:[#allocation14 + $0xe8] ss:$16 sps:$4 sm:$0xff]  }
 0x7ce   :  { %2015 = vmatprep.mubr.bf16.mxu0 %v5755_v11  ;;  %2088 = vmatprep.mubr.bf16.mxu1 %v5755_v11 }
 0x7d0   :  { %1986 = vmatpush1.bf16.msra.mxu0 %v3775_v37  ;;  %2059 = vmatpush1.bf16.msra.mxu1 %v3778_v18 }
 0x7d1   :  { %1987 = vmatprep.subr.bf16.mxu0 %v3783_v17  ;;  %2060 = vmatprep.subr.bf16.mxu1 %v3786_v19  ;;  %v5773_v17 = vld [vmem:[#allocation41_spill] sm:$0xff] }
 0x7d4   :  { %1988 = vmatpush1.bf16.msra.mxu0 %v3781_v8  ;;  %2061 = vmatpush1.bf16.msra.mxu1 %v3784_v9  ;;  %v5774_v8 = vld [vmem:[#allocation42_spill] sm:$0xff] }
 0x7d5   :  { %1989 = vmatprep.subr.bf16.mxu0 %v3789_v6  ;;  %2062 = vmatprep.subr.bf16.mxu1 %v3792_v21 }
 0x7d8   :  { %1990 = vmatpush1.bf16.msra.mxu0 %v3787_v34  ;;  %2063 = vmatpush1.bf16.msra.mxu1 %v3790_v48  ;;  %v5775_v34 = vld [vmem:[#allocation43_spill] sm:$0xff] }
 0x7d9   :  { %1991 = vmatprep.subr.bf16.mxu0 %v3795_v2  ;;  %2064 = vmatprep.subr.bf16.mxu1 %v3798_v49  ;;  %v5776_v2 = vld [vmem:[#allocation44_spill] sm:$0xff] }
 0x7dc   :  { %1992 = vmatpush1.bf16.msra.mxu0 %v3793_v3  ;;  %2065 = vmatpush1.bf16.msra.mxu1 %v3796_v50 }
 0x7dd   :  { %1993 = vmatprep.subr.bf16.mxu0 %v3801_v51  ;;  %2066 = vmatprep.subr.bf16.mxu1 %v3804_v4 }
 0x7e0   :  { %1994 = vmatpush1.bf16.msra.mxu0 %v3799_v32  ;;  %2067 = vmatpush1.bf16.msra.mxu1 %v3802_v44 }
 0x7e1   :  { %1995 = vmatprep.subr.bf16.mxu0 %v3807_v62  ;;  %2068 = vmatprep.subr.bf16.mxu1 %v3810_v25 }
 0x7e4   :  { %1996 = vmatpush1.bf16.msra.mxu0 %v3805_v29  ;;  %2069 = vmatpush1.bf16.msra.mxu1 %v3808_v35 }
 0x7e5   :  { %1997 = vmatprep.subr.bf16.mxu0 %v3813_v7  ;;  %2070 = vmatprep.subr.bf16.mxu1 %v3816_v12 }
 0x7e8   :  { %1998 = vmatpush1.bf16.msra.mxu0 %v3811_v31  ;;  %2071 = vmatpush1.bf16.msra.mxu1 %v3814_v0 }
 0x7e9   :  { %2329 = vmatprep.subr.bf16.mxu0 %v5119_v27  ;;  %2370 = vmatprep.subr.bf16.mxu1 %v5121_v13 }
 0x7eb   :  { %2016 = vmatmul.mubr.bf16.vlgmr.msra.gmra.mrb[48].mxu0 %v1765_v23  ;;  %2089 = vmatmul.mubr.bf16.vlgmr.msra.gmra.mrb[48].mxu1 %v1765_v23 }
 0x7ec   :  { %2025 = vmatprep.mubr.bf16.mxu0 %v5755_v11  ;;  %2098 = vmatprep.mubr.bf16.mxu1 %v5755_v11 }
 0x7ed   :  { %2330 = vmatpush1.bf16.msra.mxu0 %v5123_v22  ;;  %2371 = vmatpush1.bf16.msra.mxu1 %v5125_v26 }
 0x7ee   :  { %2331 = vmatprep.subr.bf16.mxu0 %v5131_v33  ;;  %2372 = vmatprep.subr.bf16.mxu1 %v5133_v5 }
 0x7f1   :  { %2332 = vmatpush1.bf16.msra.mxu0 %v5135_v38  ;;  %2373 = vmatpush1.bf16.msra.mxu1 %v5137_v39 }
 0x7f2   :  { %2333 = vmatprep.subr.bf16.mxu0 %v5143_v40  ;;  %2374 = vmatprep.subr.bf16.mxu1 %v5145_v41 }
 0x7f3   :  { %2026 = vmatmul.mubr.bf16.gmra.mrb[52].mxu0 %v1766_v30  ;;  %2099 = vmatmul.mubr.bf16.gmra.mrb[52].mxu1 %v1766_v30 }
 0x7f4   :  { %2035 = vmatprep.mubr.bf16.mxu0 %v5755_v11  ;;  %2108 = vmatprep.mubr.bf16.mxu1 %v5755_v11 }
 0x7f5   :  { %2334 = vmatpush1.bf16.msra.mxu0 %v5147_v42  ;;  %2375 = vmatpush1.bf16.msra.mxu1 %v5149_v43 }
 0x7f6   :  { %2335 = vmatprep.subr.bf16.mxu0 %v5155_v45  ;;  %2376 = vmatprep.subr.bf16.mxu1 %v5157_v20 }
 0x7f9   :  { %2336 = vmatpush1.bf16.msra.mxu0 %v5159_v24  ;;  %2377 = vmatpush1.bf16.msra.mxu1 %v5161_v28 }
 0x7fa   :  { %2337 = vmatprep.subr.bf16.mxu0 %v5167_v58  ;;  %2378 = vmatprep.subr.bf16.mxu1 %v5169_v59 }
 0x7fb   :  { %2036 = vmatmul.mubr.bf16.gmra.mrb[56].mxu0 %v1767_v53  ;;  %2109 = vmatmul.mubr.bf16.gmra.mrb[56].mxu1 %v1767_v53 }
 0x7fc   :  { %2045 = vmatprep.mubr.bf16.mxu0 %v5755_v11  ;;  %2118 = vmatprep.mubr.bf16.mxu1 %v5755_v11 }
 0x7fd   :  { %2338 = vmatpush1.bf16.msra.mxu0 %v5171_v60  ;;  %2379 = vmatpush1.bf16.msra.mxu1 %v5173_v61 }
 0x7fe   :  { %2339 = vmatprep.subr.bf16.mxu0 %v5179_v46  ;;  %2380 = vmatprep.subr.bf16.mxu1 %v5181_v63 }
 0x801   :  { %2340 = vmatpush1.bf16.msra.mxu0 %v5183_v47  ;;  %2381 = vmatpush1.bf16.msra.mxu1 %v5185_v1 }
 0x802   :  { %2341 = vmatprep.subr.bf16.mxu0 %v5191_v52  ;;  %2382 = vmatprep.subr.bf16.mxu1 %v5193_v55 }
 0x805   :  { %2342 = vmatpush1.bf16.msra.mxu0 %v5195_v56  ;;  %2383 = vmatpush1.bf16.msra.mxu1 %v5197_v10 }
 0x806   :  { %2343 = vmatprep.subr.bf16.mxu0 %v5203_v15  ;;  %2384 = vmatprep.subr.bf16.mxu1 %v5205_v14 }
 0x809   :  { %2344 = vmatpush1.bf16.msra.mxu0 %v5207_v16  ;;  %2385 = vmatpush1.bf16.msra.mxu1 %v5209_v36 }
 0x80a   :  { %2449 = vmatprep.subr.bf16.mxu0 %v5119_v27  ;;  %2490 = vmatprep.subr.bf16.mxu1 %v5121_v13 }
 0x89e   :  { %v1644_v37 = vpop.f32.mrb[44].mxu0  ;;  %v1685_v18 = vpop.f32.mrb[44].mxu1 }
 0x89f   :  { %v1692_v19 = vadd.f32 %v1644_v37, %v5773_v17  ;;  %v1694_v9 = vadd.f32 %v1685_v18, %v5774_v8  ;;  %v1646_v6 = vpop.f32.mrb[45].mxu0  ;;  %v1687_v21 = vpop.f32.mrb[45].mxu1 }
 0x8a0   :  { %v1693_v48 = vadd.f32 %v1646_v6, %v5775_v34  ;;  %v1695_v49 = vadd.f32 %v1687_v21, %v5776_v2  ;;  %v1648_v3 = vpop.f32.mrb[46].mxu0  ;;  %v1689_v50 = vpop.f32.mrb[46].mxu1 }
 0x8a1   :  { %v3525_v51 = vmul.f32 -1.442695, %v1692_v19  ;;  %v1649_v4 = vpop.f32.mrb[47].mxu0  ;;  %v1690_v32 = vpop.f32.mrb[47].mxu1 }
 0x8a2   :  { %v3526_v44 = vmul.f32 -1.442695, %v1693_v48  ;;  %v3527_v62 = vmul.f32 -1.442695, %v1695_v49 }
 0x8a3   :  { %3985 = vpow2.f32 %v3525_v51 }
 0x8a4   :  { %3987 = vpow2.f32 %v3526_v44 }
 0x8a5   :  { %3989 = vpow2.f32 %v3527_v62 }
 0x8a6   :  { %3991 = vtanh.f32 %v1694_v9 }
 0x8ad   :  { %v3986_v25 = vpop.eup %3985 }
 0x8ae   :  { %v3988_v29 = vpop.eup %3987  ;;  %v1699_v35 = vadd.f32 1.0, %v3986_v25 }
 0x8af   :  { %v1705_v7 = vadd.f32 1.0, %v3988_v29  ;;  %v3990_v12 = vpop.eup %3989 }
 0x8b0   :  { %3993 = vrcp.f32 %v1699_v35  ;;  %v3992_v31 = vpop.eup %3991  ;;  %v1712_v53 = vadd.f32 1.0, %v3990_v12 }
 0x8b1   :  { %3995 = vrcp.f32 %v1705_v7 }
 0x8b2   :  { %3997 = vrcp.f32 %v1712_v53  ;;  %v5792_v53 = vmov 0.0|0.0  }
 0x8ba   :  { %v3994_v0 = vpop.eup %3993 }
 0x8bb   :  { %v3996_v23 = vpop.eup %3995  ;;  %v1717_v30 = vmul.f32 %v3994_v0, %v3992_v31 }
 0x8bc   :  { %v1716_v37 = vmul.f32 %v3996_v23, %v5098_v54  ;;  %v3998_v4 = vpop.eup %3997 }
 0x8be   :  { %v5222_v18 = vpop.f32.mrb[48].mxu0  ;;  %v5224_v17 = vpop.f32.mrb[48].mxu1  ;;  %v1718_v19 = vadd.f32 %v1717_v30, %v1716_v37  ;;  %v1801_v37 = vld [vmem:[%s5718_s6] sm:$0xf] }
 0x8bf   :  { %v5226_v8 = vpop.f32.mrb[49].mxu0  ;;  %v5228_v9 = vpop.f32.mrb[49].mxu1 }
 0x8c0   :  { %v5230_v6 = vpop.f32.mrb[50].mxu0  ;;  %v5232_v21 = vpop.f32.mrb[50].mxu1  ;;  %3999 = vtanh.f32 %v1718_v19 }
 0x8c1   :  { %v5234_v34 = vpop.f32.mrb[51].mxu0  ;;  %v5236_v48 = vpop.f32.mrb[51].mxu1 }
 0x8c6   :  { %v5238_v54 = vpop.f32.mrb[52].mxu0  ;;  %v5240_v2 = vpop.f32.mrb[52].mxu1 }
 0x8c7   :  { %5777 = vst [vmem:[#allocation24_spill] sm:$0xff] %v5240_v2  ;;  %v5242_v49 = vpop.f32.mrb[53].mxu0  ;;  %v5244_v3 = vpop.f32.mrb[53].mxu1 }
 0x8c8   :  { %5778 = vst [vmem:[#allocation25_spill] sm:$0xff] %v5242_v49  ;;  %5779 = vst [vmem:[#allocation26_spill] sm:$0xff] %v5244_v3  ;;  %v5246_v50 = vpop.f32.mrb[54].mxu0  ;;  %v5248_v51 = vpop.f32.mrb[54].mxu1 }
 0x8c9   :  { %5780 = vst [vmem:[#allocation27_spill] sm:$0xff] %v5246_v50  ;;  %5781 = vst [vmem:[#allocation28_spill] sm:$0xff] %v5248_v51  ;;  %v5250_v32 = vpop.f32.mrb[55].mxu0  ;;  %v5252_v44 = vpop.f32.mrb[55].mxu1 }
 0x8ca   :  { %5782 = vst [vmem:[#allocation29_spill] sm:$0xff] %v5250_v32  ;;  %5783 = vst [vmem:[#allocation30_spill] sm:$0xff] %v5252_v44  ;;  %v4000_v62 = vpop.eup %3999 }
 0x8cb   :  { %v1720_v25 = vmul.f32 %v4000_v62, %v3998_v4 }
 0x8cd   :  { %v1768_v29 = vpack.c.bf16 %v1720_v25, %v5101_v57 }
 0x8ce   :  { %v5255_v35 = vpop.f32.mrb[56].mxu0  ;;  %v5257_v7 = vpop.f32.mrb[56].mxu1 }
 0x8cf   :  { %5784 = vst [vmem:[#allocation31_spill] sm:$0xff] %v5255_v35  ;;  %5785 = vst [vmem:[#allocation32_spill] sm:$0xff] %v5257_v7  ;;  %v5259_v12 = vpop.f32.mrb[57].mxu0  ;;  %v5261_v31 = vpop.f32.mrb[57].mxu1  ;;  %2046 = vmatmul.mubr.bf16.gmra.mrb[60].mxu0 %v1768_v29  ;;  %2119 = vmatmul.mubr.bf16.gmra.mrb[60].mxu1 %v1768_v29 }
 0x8d0   :  { %5786 = vst [vmem:[#allocation33_spill] sm:$0xff] %v5259_v12  ;;  %5787 = vst [vmem:[#allocation34_spill] sm:$0xff] %v5261_v31  ;;  %v5263_v0 = vpop.f32.mrb[58].mxu0  ;;  %v5265_v23 = vpop.f32.mrb[58].mxu1  ;;  %2361 = vmatprep.mubr.bf16.mxu0 %v5755_v11  ;;  %2402 = vmatprep.mubr.bf16.mxu1 %v5755_v11 }
 0x8d1   :  { %5788 = vst [vmem:[#allocation35_spill] sm:$0xff] %v5263_v0  ;;  %5789 = vst [vmem:[#allocation36_spill] sm:$0xff] %v5265_v23  ;;  %v5269_v30 = vpop.f32.mrb[59].mxu0  ;;  %v5271_v57 = vpop.f32.mrb[59].mxu1 }
 0x8d2   :  { %5790 = vst [vmem:[#allocation37_spill] sm:$0xff] %v5269_v30  ;;  %5791 = vst [vmem:[#allocation38_spill] sm:$0xff] %v5271_v57  ;;  %v5799_v57 = vld [vmem:[#allocation23_spill] sm:$0xff] }
 0x8d3   :  { %v5800_v30 = vsub.s32 0, %v5799_v57  ;;  %v5801_v0 = vsub.s32 2, %v5799_v57 }
 0x8d5   :  { %v5326_v23 = vrot.slane %v1801_v37, %v5800_v30  ;;  %v5330_v31 = vrot.slane %v1801_v37, %v5801_v0 }
 0x8d7   :  { %2362 = vmatmul.mubr.bf16.vlgmr.msra.gmra.mrb[64].mxu0 %v5792_v53  ;;  %2403 = vmatmul.mubr.bf16.vlgmr.msra.gmra.mrb[64].mxu1 %v5792_v53  ;;  %v2018_v30 = vadd.f32 %v5222_v18, %v5326_v23 }
 0x8d8   :  { %2450 = vmatpush1.bf16.msra.mxu0 %v5123_v22  ;;  %2491 = vmatpush1.bf16.msra.mxu1 %v5125_v26 }
 0x8d9   :  { %2451 = vmatprep.subr.bf16.mxu0 %v5131_v33  ;;  %2492 = vmatprep.subr.bf16.mxu1 %v5133_v5 }
 0x8da   :  { %2481 = vmatprep.mubr.bf16.mxu0 %v5755_v11  ;;  %2522 = vmatprep.mubr.bf16.mxu1 %v5755_v11 }
 0x8dc   :  { %2452 = vmatpush1.bf16.msra.mxu0 %v5135_v38  ;;  %2493 = vmatpush1.bf16.msra.mxu1 %v5137_v39 }
 0x8dd   :  { %2453 = vmatprep.subr.bf16.mxu0 %v5143_v40  ;;  %2494 = vmatprep.subr.bf16.mxu1 %v5145_v41 }
 0x8e0   :  { %2454 = vmatpush1.bf16.msra.mxu0 %v5147_v42  ;;  %2495 = vmatpush1.bf16.msra.mxu1 %v5149_v43 }
 0x8e1   :  { %2455 = vmatprep.subr.bf16.mxu0 %v5155_v45  ;;  %2496 = vmatprep.subr.bf16.mxu1 %v5157_v20 }
 0x8e4   :  { %2456 = vmatpush1.bf16.msra.mxu0 %v5159_v24  ;;  %2497 = vmatpush1.bf16.msra.mxu1 %v5161_v28 }
 0x8e5   :  { %2457 = vmatprep.subr.bf16.mxu0 %v5167_v58  ;;  %2498 = vmatprep.subr.bf16.mxu1 %v5169_v59 }
 0x8e8   :  { %2458 = vmatpush1.bf16.msra.mxu0 %v5171_v60  ;;  %2499 = vmatpush1.bf16.msra.mxu1 %v5173_v61 }
 0x8e9   :  { %2459 = vmatprep.subr.bf16.mxu0 %v5179_v46  ;;  %2500 = vmatprep.subr.bf16.mxu1 %v5181_v63 }
 0x8ec   :  { %2460 = vmatpush1.bf16.msra.mxu0 %v5183_v47  ;;  %2501 = vmatpush1.bf16.msra.mxu1 %v5185_v1 }
 0x8ed   :  { %2461 = vmatprep.subr.bf16.mxu0 %v5191_v52  ;;  %2502 = vmatprep.subr.bf16.mxu1 %v5193_v55 }
 0x8f0   :  { %2462 = vmatpush1.bf16.msra.mxu0 %v5195_v56  ;;  %2503 = vmatpush1.bf16.msra.mxu1 %v5197_v10 }
 0x8f1   :  { %2463 = vmatprep.subr.bf16.mxu0 %v5203_v15  ;;  %2504 = vmatprep.subr.bf16.mxu1 %v5205_v14 }
 0x8f4   :  { %2464 = vmatpush1.bf16.msra.mxu0 %v5207_v16  ;;  %2505 = vmatpush1.bf16.msra.mxu1 %v5209_v36 }
 0x8f5   :  { %2569 = vmatprep.subr.bf16.mxu0 %v5119_v27  ;;  %2610 = vmatprep.subr.bf16.mxu1 %v5121_v13 }
 0x9a2   :  { %v5312_v19 = vpop.f32.mrb[60].mxu0  ;;  %v5314_v4 = vpop.f32.mrb[60].mxu1 }
 0x9a3   :  { %5793 = vst [vmem:[#allocation39_spill] sm:$0xff] %v5312_v19  ;;  %5794 = vst [vmem:[#allocation40_spill] sm:$0xff] %v5314_v4  ;;  %v5316_v62 = vpop.f32.mrb[61].mxu0  ;;  %v5318_v25 = vpop.f32.mrb[61].mxu1 }
 0x9a4   :  { %5795 = vst [vmem:[#allocation41_spill] sm:$0xff] %v5316_v62  ;;  %5796 = vst [vmem:[#allocation42_spill] sm:$0xff] %v5318_v25  ;;  %v5320_v29 = vpop.f32.mrb[62].mxu0  ;;  %v5322_v53 = vpop.f32.mrb[62].mxu1  ;;  %v5804_v62 = vsub.s32 1, %v5799_v57 }
 0x9a5   :  { %5797 = vst [vmem:[#allocation43_spill] sm:$0xff] %v5320_v29  ;;  %5798 = vst [vmem:[#allocation44_spill] sm:$0xff] %v5322_v53  ;;  %v5332_v12 = vpop.f32.mrb[63].mxu0  ;;  %v5334_v19 = vpop.f32.mrb[63].mxu1  ;;  %v5805_v29 = vsub.s32 3, %v5799_v57  ;;  %v2091_v53 = vadd.f32 %v5224_v17, %v5330_v31 }
 0x9a6   :  { %5802 = vst [vmem:[#allocation23_spill] sm:$0xff] %v5332_v12  ;;  %5803 = vst [vmem:[#allocation45_spill] sm:$0xff] %v5334_v19  ;;  %v5338_v4 = vrot.slane %v1801_v37, %v5804_v62 }
 0x9a7   :  { %v5342_v25 = vrot.slane %v1801_v37, %v5805_v29 }
 0x9a8   :  { %v2020_v0 = vadd.f32 %v5226_v8, %v5338_v4 }
 0x9a9   :  { %v2093_v19 = vadd.f32 %v5228_v9, %v5342_v25 }
 0x9aa   :  { %v2363_v12 = vpop.f32.mrb[64].mxu0  ;;  %v2404_v7 = vpop.f32.mrb[64].mxu1 }
 0x9ab   :  { %v2411_v62 = vadd.f32 %v2363_v12, %v2018_v30  ;;  %v2413_v35 = vadd.f32 %v2404_v7, %v2091_v53  ;;  %v2365_v44 = vpop.f32.mrb[65].mxu0  ;;  %v2406_v57 = vpop.f32.mrb[65].mxu1 }
 0x9ac   :  { %v2412_v37 = vadd.f32 %v2365_v44, %v2020_v0  ;;  %v2414_v29 = vadd.f32 %v2406_v57, %v2093_v19  ;;  %v2367_v32 = vpop.f32.mrb[66].mxu0  ;;  %v2408_v51 = vpop.f32.mrb[66].mxu1  ;;  %v2024_v57 = vadd.f32 %v5234_v34, %v5338_v4 }
 0x9ad   :  { %v3592_v18 = vmul.f32 -1.442695, %v2411_v62  ;;  %v2368_v50 = vpop.f32.mrb[67].mxu0  ;;  %v2409_v3 = vpop.f32.mrb[67].mxu1 }
 0x9ae   :  { %v3593_v17 = vmul.f32 -1.442695, %v2412_v37  ;;  %v3594_v8 = vmul.f32 -1.442695, %v2414_v29  ;;  %v2097_v37 = vadd.f32 %v5236_v48, %v5342_v25 }
 0x9af   :  { %4001 = vpow2.f32 %v3592_v18 }
 0x9b0   :  { %4003 = vpow2.f32 %v3593_v17 }
 0x9b1   :  { %4005 = vpow2.f32 %v3594_v8 }
 0x9b2   :  { %4007 = vtanh.f32 %v2413_v35  ;;  %v2095_v35 = vadd.f32 %v5232_v21, %v5330_v31 }
 0x9b9   :  { %v4002_v49 = vpop.eup %4001 }
 0x9ba   :  { %v4004_v2 = vpop.eup %4003  ;;  %v2418_v9 = vadd.f32 1.0, %v4002_v49 }
 0x9bb   :  { %v2424_v12 = vadd.f32 1.0, %v4004_v2  ;;  %v4006_v7 = vpop.eup %4005  ;;  %v2022_v2 = vadd.f32 %v5230_v6, %v5326_v23 }
 0x9bc   :  { %4009 = vrcp.f32 %v2418_v9  ;;  %v4008_v44 = vpop.eup %4007  ;;  %v2431_v53 = vadd.f32 1.0, %v4006_v7 }
 0x9bd   :  { %4011 = vrcp.f32 %v2424_v12 }
 0x9be   :  { %4013 = vrcp.f32 %v2431_v53 }
 0x9c6   :  { %v4010_v19 = vpop.eup %4009 }
 0x9c7   :  { %v4012_v32 = vpop.eup %4011  ;;  %v2436_v51 = vmul.f32 %v4010_v19, %v4008_v44 }
 0x9c8   :  { %v2435_v50 = vmul.f32 0.0, %v4012_v32  ;;  %v4014_v30 = vpop.eup %4013 }
 0x9ca   :  { %v5352_v3 = vadd.f32 %v2436_v51, %v2435_v50 }
 0x9cc   :  { %4015 = vtanh.f32 %v5352_v3 }
 0x9d6   :  { %v4016_v0 = vpop.eup %4015 }
 0x9d7   :  { %v2439_v49 = vmul.f32 %v4016_v0, %v4014_v30 }
 0x9d9   :  { %v2448_v62 = vpack.c.bf16 %v2439_v49, %v2439_v49 }
 0x9db   :  { %2482 = vmatmul.mubr.bf16.vlgmr.msra.gmra.mrb[68].mxu0 %v2448_v62  ;;  %2523 = vmatmul.mubr.bf16.vlgmr.msra.gmra.mrb[68].mxu1 %v2448_v62 }
 0x9dc   :  { %2570 = vmatpush1.bf16.msra.mxu0 %v5123_v22  ;;  %2611 = vmatpush1.bf16.msra.mxu1 %v5125_v26 }
 0x9dd   :  { %2571 = vmatprep.subr.bf16.mxu0 %v5131_v33  ;;  %2612 = vmatprep.subr.bf16.mxu1 %v5133_v5 }
 0x9de   :  { %2601 = vmatprep.mubr.bf16.mxu0 %v5755_v11  ;;  %2642 = vmatprep.mubr.bf16.mxu1 %v5755_v11 }
 0x9e0   :  { %2572 = vmatpush1.bf16.msra.mxu0 %v5135_v38  ;;  %2613 = vmatpush1.bf16.msra.mxu1 %v5137_v39 }
 0x9e1   :  { %2573 = vmatprep.subr.bf16.mxu0 %v5143_v40  ;;  %2614 = vmatprep.subr.bf16.mxu1 %v5145_v41 }
 0x9e4   :  { %2574 = vmatpush1.bf16.msra.mxu0 %v5147_v42  ;;  %2615 = vmatpush1.bf16.msra.mxu1 %v5149_v43 }
 0x9e5   :  { %2575 = vmatprep.subr.bf16.mxu0 %v5155_v45  ;;  %2616 = vmatprep.subr.bf16.mxu1 %v5157_v20 }
 0x9e8   :  { %2576 = vmatpush1.bf16.msra.mxu0 %v5159_v24  ;;  %2617 = vmatpush1.bf16.msra.mxu1 %v5161_v28 }
 0x9e9   :  { %2577 = vmatprep.subr.bf16.mxu0 %v5167_v58  ;;  %2618 = vmatprep.subr.bf16.mxu1 %v5169_v59 }
 0x9ec   :  { %2578 = vmatpush1.bf16.msra.mxu0 %v5171_v60  ;;  %2619 = vmatpush1.bf16.msra.mxu1 %v5173_v61 }
 0x9ed   :  { %2579 = vmatprep.subr.bf16.mxu0 %v5179_v46  ;;  %2620 = vmatprep.subr.bf16.mxu1 %v5181_v63 }
 0x9f0   :  { %2580 = vmatpush1.bf16.msra.mxu0 %v5183_v47  ;;  %2621 = vmatpush1.bf16.msra.mxu1 %v5185_v1 }
 0x9f1   :  { %2581 = vmatprep.subr.bf16.mxu0 %v5191_v52  ;;  %2622 = vmatprep.subr.bf16.mxu1 %v5193_v55 }
 0x9f4   :  { %2582 = vmatpush1.bf16.msra.mxu0 %v5195_v56  ;;  %2623 = vmatpush1.bf16.msra.mxu1 %v5197_v10 }
 0x9f5   :  { %2583 = vmatprep.subr.bf16.mxu0 %v5203_v15  ;;  %2624 = vmatprep.subr.bf16.mxu1 %v5205_v14 }
 0x9f8   :  { %2584 = vmatpush1.bf16.msra.mxu0 %v5207_v16  ;;  %2625 = vmatpush1.bf16.msra.mxu1 %v5209_v36 }
 0x9f9   :  { %2689 = vmatprep.subr.bf16.mxu0 %v5119_v27  ;;  %2730 = vmatprep.subr.bf16.mxu1 %v5121_v13 }
 0xaae   :  { %v2483_v29 = vpop.f32.mrb[68].mxu0  ;;  %v2524_v18 = vpop.f32.mrb[68].mxu1 }
 0xaaf   :  { %v2531_v17 = vadd.f32 %v2483_v29, %v2022_v2  ;;  %v2533_v8 = vadd.f32 %v2524_v18, %v2095_v35  ;;  %v2485_v9 = vpop.f32.mrb[69].mxu0  ;;  %v2526_v12 = vpop.f32.mrb[69].mxu1 }
 0xab0   :  { %v2532_v7 = vadd.f32 %v2485_v9, %v2024_v57  ;;  %v2534_v44 = vadd.f32 %v2526_v12, %v2097_v37  ;;  %v2487_v19 = vpop.f32.mrb[70].mxu0  ;;  %v2528_v32 = vpop.f32.mrb[70].mxu1 }
 0xab1   :  { %v3595_v6 = vmul.f32 -1.442695, %v2531_v17  ;;  %v2488_v51 = vpop.f32.mrb[71].mxu0  ;;  %v2529_v53 = vpop.f32.mrb[71].mxu1  ;;  %v5807_v19 = vld [vmem:[#allocation25_spill] sm:$0xff] }
 0xab2   :  { %v3596_v21 = vmul.f32 -1.442695, %v2532_v7  ;;  %v3597_v34 = vmul.f32 -1.442695, %v2534_v44  ;;  %v5806_v7 = vld [vmem:[#allocation24_spill] sm:$0xff]  ;;  %v2030_v32 = vadd.f32 %v5807_v19, %v5338_v4 }
 0xab3   :  { %4017 = vpow2.f32 %v3595_v6  ;;  %v2101_v44 = vadd.f32 %v5806_v7, %v5330_v31  ;;  %v5808_v6 = vld [vmem:[#allocation26_spill] sm:$0xff] }
 0xab4   :  { %4019 = vpow2.f32 %v3596_v21  ;;  %v2103_v51 = vadd.f32 %v5808_v6, %v5342_v25 }
 0xab5   :  { %4021 = vpow2.f32 %v3597_v34 }
 0xab6   :  { %4023 = vtanh.f32 %v2533_v8 }
 0xabd   :  { %v4018_v50 = vpop.eup %4017 }
 0xabe   :  { %v4020_v30 = vpop.eup %4019  ;;  %v2538_v48 = vadd.f32 1.0, %v4018_v50 }
 0xabf   :  { %v2544_v0 = vadd.f32 1.0, %v4020_v30  ;;  %v4022_v49 = vpop.eup %4021 }
 0xac0   :  { %4025 = vrcp.f32 %v2538_v48  ;;  %v4024_v62 = vpop.eup %4023  ;;  %v2551_v37 = vadd.f32 1.0, %v4022_v49 }
 0xac1   :  { %4027 = vrcp.f32 %v2544_v0 }
 0xac2   :  { %4029 = vrcp.f32 %v2551_v37 }
 0xaca   :  { %v4026_v2 = vpop.eup %4025 }
 0xacb   :  { %v4028_v35 = vpop.eup %4027  ;;  %v2556_v57 = vmul.f32 %v4026_v2, %v4024_v62 }
 0xacc   :  { %v2555_v29 = vmul.f32 %v4028_v35, %v5352_v3  ;;  %v4030_v17 = vpop.eup %4029  ;;  %v2028_v3 = vadd.f32 %v5238_v54, %v5326_v23 }
 0xace   :  { %v5398_v18 = vadd.f32 %v2556_v57, %v2555_v29 }
 0xad0   :  { %4031 = vtanh.f32 %v5398_v18 }
 0xada   :  { %v4032_v9 = vpop.eup %4031 }
 0xadb   :  { %v2559_v12 = vmul.f32 %v4032_v9, %v4030_v17 }
 0xadd   :  { %v2568_v8 = vpack.c.bf16 %v2559_v12, %v2559_v12 }
 0xadf   :  { %2602 = vmatmul.mubr.bf16.vlgmr.msra.gmra.mrb[72].mxu0 %v2568_v8  ;;  %2643 = vmatmul.mubr.bf16.vlgmr.msra.gmra.mrb[72].mxu1 %v2568_v8 }
 0xae0   :  { %2690 = vmatpush1.bf16.msra.mxu0 %v5123_v22  ;;  %2731 = vmatpush1.bf16.msra.mxu1 %v5125_v26 }
 0xae1   :  { %2691 = vmatprep.subr.bf16.mxu0 %v5131_v33  ;;  %2732 = vmatprep.subr.bf16.mxu1 %v5133_v5 }
 0xae2   :  { %2721 = vmatprep.mubr.bf16.mxu0 %v5755_v11  ;;  %2762 = vmatprep.mubr.bf16.mxu1 %v5755_v11 }
 0xae4   :  { %2692 = vmatpush1.bf16.msra.mxu0 %v5135_v38  ;;  %2733 = vmatpush1.bf16.msra.mxu1 %v5137_v39 }
 0xae5   :  { %2693 = vmatprep.subr.bf16.mxu0 %v5143_v40  ;;  %2734 = vmatprep.subr.bf16.mxu1 %v5145_v41 }
 0xae8   :  { %2694 = vmatpush1.bf16.msra.mxu0 %v5147_v42  ;;  %2735 = vmatpush1.bf16.msra.mxu1 %v5149_v43 }
 0xae9   :  { %2695 = vmatprep.subr.bf16.mxu0 %v5155_v45  ;;  %2736 = vmatprep.subr.bf16.mxu1 %v5157_v20 }
 0xaec   :  { %2696 = vmatpush1.bf16.msra.mxu0 %v5159_v24  ;;  %2737 = vmatpush1.bf16.msra.mxu1 %v5161_v28 }
 0xaed   :  { %2697 = vmatprep.subr.bf16.mxu0 %v5167_v58  ;;  %2738 = vmatprep.subr.bf16.mxu1 %v5169_v59 }
 0xaf0   :  { %2698 = vmatpush1.bf16.msra.mxu0 %v5171_v60  ;;  %2739 = vmatpush1.bf16.msra.mxu1 %v5173_v61 }
 0xaf1   :  { %2699 = vmatprep.subr.bf16.mxu0 %v5179_v46  ;;  %2740 = vmatprep.subr.bf16.mxu1 %v5181_v63 }
 0xaf4   :  { %2700 = vmatpush1.bf16.msra.mxu0 %v5183_v47  ;;  %2741 = vmatpush1.bf16.msra.mxu1 %v5185_v1 }
 0xaf5   :  { %2701 = vmatprep.subr.bf16.mxu0 %v5191_v52  ;;  %2742 = vmatprep.subr.bf16.mxu1 %v5193_v55 }
 0xaf8   :  { %2702 = vmatpush1.bf16.msra.mxu0 %v5195_v56  ;;  %2743 = vmatpush1.bf16.msra.mxu1 %v5197_v10 }
 0xaf9   :  { %2703 = vmatprep.subr.bf16.mxu0 %v5203_v15  ;;  %2744 = vmatprep.subr.bf16.mxu1 %v5205_v14 }
 0xafc   :  { %2704 = vmatpush1.bf16.msra.mxu0 %v5207_v16  ;;  %2745 = vmatpush1.bf16.msra.mxu1 %v5209_v36 }
 0xafd   :  { %2809 = vmatprep.subr.bf16.mxu0 %v5119_v27  ;;  %2850 = vmatprep.subr.bf16.mxu1 %v5121_v13 }
 0xbb2   :  { %v2603_v53 = vpop.f32.mrb[72].mxu0  ;;  %v2644_v21 = vpop.f32.mrb[72].mxu1 }
 0xbb3   :  { %v2651_v34 = vadd.f32 %v2603_v53, %v2028_v3  ;;  %v2653_v50 = vadd.f32 %v2644_v21, %v2101_v44  ;;  %v2605_v30 = vpop.f32.mrb[73].mxu0  ;;  %v2646_v48 = vpop.f32.mrb[73].mxu1 }
 0xbb4   :  { %v2652_v0 = vadd.f32 %v2605_v30, %v2030_v32  ;;  %v2654_v49 = vadd.f32 %v2646_v48, %v2103_v51  ;;  %v2607_v62 = vpop.f32.mrb[74].mxu0  ;;  %v2648_v2 = vpop.f32.mrb[74].mxu1 }
 0xbb5   :  { %v3598_v54 = vmul.f32 -1.442695, %v2651_v34  ;;  %v2608_v35 = vpop.f32.mrb[75].mxu0  ;;  %v2649_v57 = vpop.f32.mrb[75].mxu1  ;;  %v5811_v62 = vld [vmem:[#allocation29_spill] sm:$0xff] }
 0xbb6   :  { %v3599_v37 = vmul.f32 -1.442695, %v2652_v0  ;;  %v3600_v29 = vmul.f32 -1.442695, %v2654_v49  ;;  %v5810_v0 = vld [vmem:[#allocation28_spill] sm:$0xff]  ;;  %v2034_v2 = vadd.f32 %v5811_v62, %v5338_v4 }
 0xbb7   :  { %4033 = vpow2.f32 %v3598_v54  ;;  %v2105_v49 = vadd.f32 %v5810_v0, %v5330_v31  ;;  %v5812_v54 = vld [vmem:[#allocation30_spill] sm:$0xff] }
 0xbb8   :  { %4035 = vpow2.f32 %v3599_v37  ;;  %v2107_v35 = vadd.f32 %v5812_v54, %v5342_v25 }
 0xbb9   :  { %4037 = vpow2.f32 %v3600_v29 }
 0xbba   :  { %4039 = vtanh.f32 %v2653_v50 }
 0xbc1   :  { %v4034_v17 = vpop.eup %4033 }
 0xbc2   :  { %v4036_v9 = vpop.eup %4035  ;;  %v2658_v12 = vadd.f32 1.0, %v4034_v17 }
 0xbc3   :  { %v2664_v8 = vadd.f32 1.0, %v4036_v9  ;;  %v4038_v3 = vpop.eup %4037 }
 0xbc4   :  { %4041 = vrcp.f32 %v2658_v12  ;;  %v4040_v7 = vpop.eup %4039  ;;  %v2671_v6 = vadd.f32 1.0, %v4038_v3 }
 0xbc5   :  { %4043 = vrcp.f32 %v2664_v8 }
 0xbc6   :  { %4045 = vrcp.f32 %v2671_v6 }
 0xbce   :  { %v4042_v44 = vpop.eup %4041 }
 0xbcf   :  { %v4044_v19 = vpop.eup %4043  ;;  %v2676_v32 = vmul.f32 %v4042_v44, %v4040_v7 }
 0xbd0   :  { %v2675_v51 = vmul.f32 %v4044_v19, %v5398_v18  ;;  %v4046_v21 = vpop.eup %4045  ;;  %v5809_v18 = vld [vmem:[#allocation27_spill] sm:$0xff] }
 0xbd1   :  { %v2032_v48 = vadd.f32 %v5809_v18, %v5326_v23 }
 0xbd2   :  { %v5444_v53 = vadd.f32 %v2676_v32, %v2675_v51 }
 0xbd4   :  { %4047 = vtanh.f32 %v5444_v53 }
 0xbde   :  { %v4048_v34 = vpop.eup %4047 }
 0xbdf   :  { %v2679_v30 = vmul.f32 %v4048_v34, %v4046_v21 }
 0xbe1   :  { %v2688_v50 = vpack.c.bf16 %v2679_v30, %v2679_v30 }
 0xbe3   :  { %2722 = vmatmul.mubr.bf16.vlgmr.msra.gmra.mrb[76].mxu0 %v2688_v50  ;;  %2763 = vmatmul.mubr.bf16.vlgmr.msra.gmra.mrb[76].mxu1 %v2688_v50 }
 0xbe4   :  { %2810 = vmatpush1.bf16.msra.mxu0 %v5123_v22  ;;  %2851 = vmatpush1.bf16.msra.mxu1 %v5125_v26 }
 0xbe5   :  { %2811 = vmatprep.subr.bf16.mxu0 %v5131_v33  ;;  %2852 = vmatprep.subr.bf16.mxu1 %v5133_v5 }
 0xbe6   :  { %2841 = vmatprep.mubr.bf16.mxu0 %v5755_v11  ;;  %2882 = vmatprep.mubr.bf16.mxu1 %v5755_v11 }
 0xbe8   :  { %2812 = vmatpush1.bf16.msra.mxu0 %v5135_v38  ;;  %2853 = vmatpush1.bf16.msra.mxu1 %v5137_v39 }
 0xbe9   :  { %2813 = vmatprep.subr.bf16.mxu0 %v5143_v40  ;;  %2854 = vmatprep.subr.bf16.mxu1 %v5145_v41 }
 0xbec   :  { %2814 = vmatpush1.bf16.msra.mxu0 %v5147_v42  ;;  %2855 = vmatpush1.bf16.msra.mxu1 %v5149_v43 }
 0xbed   :  { %2815 = vmatprep.subr.bf16.mxu0 %v5155_v45  ;;  %2856 = vmatprep.subr.bf16.mxu1 %v5157_v20 }
 0xbf0   :  { %2816 = vmatpush1.bf16.msra.mxu0 %v5159_v24  ;;  %2857 = vmatpush1.bf16.msra.mxu1 %v5161_v28 }
 0xbf1   :  { %2817 = vmatprep.subr.bf16.mxu0 %v5167_v58  ;;  %2858 = vmatprep.subr.bf16.mxu1 %v5169_v59 }
 0xbf4   :  { %2818 = vmatpush1.bf16.msra.mxu0 %v5171_v60  ;;  %2859 = vmatpush1.bf16.msra.mxu1 %v5173_v61 }
 0xbf5   :  { %2819 = vmatprep.subr.bf16.mxu0 %v5179_v46  ;;  %2860 = vmatprep.subr.bf16.mxu1 %v5181_v63 }
 0xbf8   :  { %2820 = vmatpush1.bf16.msra.mxu0 %v5183_v47  ;;  %2861 = vmatpush1.bf16.msra.mxu1 %v5185_v1 }
 0xbf9   :  { %2821 = vmatprep.subr.bf16.mxu0 %v5191_v52  ;;  %2862 = vmatprep.subr.bf16.mxu1 %v5193_v55 }
 0xbfc   :  { %2822 = vmatpush1.bf16.msra.mxu0 %v5195_v56  ;;  %2863 = vmatpush1.bf16.msra.mxu1 %v5197_v10 }
 0xbfd   :  { %2823 = vmatprep.subr.bf16.mxu0 %v5203_v15  ;;  %2864 = vmatprep.subr.bf16.mxu1 %v5205_v14 }
 0xc00   :  { %2824 = vmatpush1.bf16.msra.mxu0 %v5207_v16  ;;  %2865 = vmatpush1.bf16.msra.mxu1 %v5209_v36 }
 0xc01   :  { %2929 = vmatprep.subr.bf16.mxu0 %v5119_v27  ;;  %2970 = vmatprep.subr.bf16.mxu1 %v5121_v13 }
 0xcb6   :  { %v2723_v57 = vpop.f32.mrb[76].mxu0  ;;  %v2764_v37 = vpop.f32.mrb[76].mxu1 }
 0xcb7   :  { %v2771_v29 = vadd.f32 %v2723_v57, %v2032_v48  ;;  %v2773_v17 = vadd.f32 %v2764_v37, %v2105_v49  ;;  %v2725_v9 = vpop.f32.mrb[77].mxu0  ;;  %v2766_v12 = vpop.f32.mrb[77].mxu1 }
 0xcb8   :  { %v2772_v8 = vadd.f32 %v2725_v9, %v2034_v2  ;;  %v2774_v3 = vadd.f32 %v2766_v12, %v2107_v35  ;;  %v2727_v7 = vpop.f32.mrb[78].mxu0  ;;  %v2768_v44 = vpop.f32.mrb[78].mxu1 }
 0xcb9   :  { %v3601_v19 = vmul.f32 -1.442695, %v2771_v29  ;;  %v2728_v32 = vpop.f32.mrb[79].mxu0  ;;  %v2769_v6 = vpop.f32.mrb[79].mxu1 }
 0xcba   :  { %v3602_v51 = vmul.f32 -1.442695, %v2772_v8  ;;  %v3603_v21 = vmul.f32 -1.442695, %v2774_v3  ;;  %v5539_v32 = vld [vmem:[#allocation14] ss:$16 sps:$4 sm:$0xff]  }
 0xcbb   :  { %4049 = vpow2.f32 %v3601_v19  ;;  %v5542_v6 = vld [vmem:[#allocation14 + $0x8] ss:$16 sps:$4 sm:$0xff]  }
 0xcbc   :  { %4051 = vpow2.f32 %v3602_v51  ;;  %v5545_v51 = vld [vmem:[#allocation14 + $0x24] ss:$16 sps:$4 sm:$0xff]  }
 0xcbd   :  { %4053 = vpow2.f32 %v3603_v21  ;;  %v5548_v21 = vld [vmem:[#allocation14 + $0x2c] ss:$16 sps:$4 sm:$0xff]  }
 0xcbe   :  { %4055 = vtanh.f32 %v2773_v17 }
 0xcc5   :  { %v4050_v34 = vpop.eup %4049 }
 0xcc6   :  { %v4052_v30 = vpop.eup %4051  ;;  %v2778_v50 = vadd.f32 1.0, %v4050_v34  ;;  %v5553_v34 = vld [vmem:[#allocation14 + $0x20] ss:$16 sps:$4 sm:$0xff]  }
 0xcc7   :  { %v2784_v18 = vadd.f32 1.0, %v4052_v30  ;;  %v4054_v48 = vpop.eup %4053  ;;  %v5556_v30 = vld [vmem:[#allocation14 + $0x28] ss:$16 sps:$4 sm:$0xff]  }
 0xcc8   :  { %4057 = vrcp.f32 %v2778_v50  ;;  %v4056_v0 = vpop.eup %4055  ;;  %v2791_v54 = vadd.f32 1.0, %v4054_v48  ;;  %v5559_v50 = vld [vmem:[#allocation14 + $0x44] ss:$16 sps:$4 sm:$0xff]   ;;  %v5565_v48 = vld [vmem:[#allocation14 + $0x40] ss:$16 sps:$4 sm:$0xff]  }
 0xcc9   :  { %4059 = vrcp.f32 %v2784_v18  ;;  %v5562_v18 = vld [vmem:[#allocation14 + $0x4c] ss:$16 sps:$4 sm:$0xff]  }
 0xcca   :  { %4061 = vrcp.f32 %v2791_v54  ;;  %v5580_v54 = vld [vmem:[#allocation14 + $0x68] ss:$16 sps:$4 sm:$0xff]  }
 0xcd2   :  { %v4058_v49 = vpop.eup %4057 }
 0xcd3   :  { %v4060_v62 = vpop.eup %4059  ;;  %v2796_v2 = vmul.f32 %v4058_v49, %v4056_v0  ;;  %v5568_v0 = vld [vmem:[#allocation14 + $0x48] ss:$16 sps:$4 sm:$0xff]   ;;  %v5571_v49 = vld [vmem:[#allocation14 + $0x64] ss:$16 sps:$4 sm:$0xff]  }
 0xcd4   :  { %v2795_v35 = vmul.f32 %v4060_v62, %v5444_v53  ;;  %v4062_v37 = vpop.eup %4061  ;;  %v5574_v62 = vld [vmem:[#allocation14 + $0x6c] ss:$16 sps:$4 sm:$0xff]  }
 0xcd6   :  { %v5490_v57 = vadd.f32 %v2796_v2, %v2795_v35  ;;  %v5577_v2 = vld [vmem:[#allocation14 + $0x60] ss:$16 sps:$4 sm:$0xff]   ;;  %v5583_v35 = vld [vmem:[#allocation14 + $0x84] ss:$16 sps:$4 sm:$0xff]  }
 0xcd8   :  { %4063 = vtanh.f32 %v5490_v57 }
 0xce2   :  { %v4064_v29 = vpop.eup %4063 }
 0xce3   :  { %v2799_v9 = vmul.f32 %v4064_v29, %v4062_v37  ;;  %v5589_v37 = vld [vmem:[#allocation14 + $0x80] ss:$16 sps:$4 sm:$0xff]   ;;  %v5592_v29 = vld [vmem:[#allocation14 + $0x88] ss:$16 sps:$4 sm:$0xff]  }
 0xce5   :  { %v2808_v17 = vpack.c.bf16 %v2799_v9, %v2799_v9  ;;  %v5595_v9 = vld [vmem:[#allocation14 + $0xa4] ss:$16 sps:$4 sm:$0xff]  }
 0xce7   :  { %2842 = vmatmul.mubr.bf16.vlgmr.msra.gmra.mrb[80].mxu0 %v2808_v17  ;;  %2883 = vmatmul.mubr.bf16.vlgmr.msra.gmra.mrb[80].mxu1 %v2808_v17  ;;  %v5598_v17 = vld [vmem:[#allocation14 + $0xac] ss:$16 sps:$4 sm:$0xff]  }
 0xce8   :  { %2930 = vmatpush1.bf16.msra.mxu0 %v5123_v22  ;;  %2971 = vmatpush1.bf16.msra.mxu1 %v5125_v26  ;;  %v5813_v22 = vld [vmem:[#allocation31_spill] sm:$0xff] }
 0xce9   :  { %2931 = vmatprep.subr.bf16.mxu0 %v5131_v33  ;;  %2972 = vmatprep.subr.bf16.mxu1 %v5133_v5  ;;  %v2038_v26 = vadd.f32 %v5813_v22, %v5326_v23  ;;  %v5814_v33 = vld [vmem:[#allocation32_spill] sm:$0xff] }
 0xcea   :  { %2961 = vmatprep.mubr.bf16.mxu0 %v5755_v11  ;;  %3002 = vmatprep.mubr.bf16.mxu1 %v5755_v11  ;;  %v2111_v5 = vadd.f32 %v5814_v33, %v5330_v31  ;;  %v5601_v22 = vld [vmem:[#allocation14 + $0xa0] ss:$16 sps:$4 sm:$0xff]   ;;  %v5607_v33 = vld [vmem:[#allocation14 + $0xc4] ss:$16 sps:$4 sm:$0xff]  }
 0xcec   :  { %2932 = vmatpush1.bf16.msra.mxu0 %v5135_v38  ;;  %2973 = vmatpush1.bf16.msra.mxu1 %v5137_v39  ;;  %v5815_v38 = vld [vmem:[#allocation33_spill] sm:$0xff] }
 0xced   :  { %2933 = vmatprep.subr.bf16.mxu0 %v5143_v40  ;;  %2974 = vmatprep.subr.bf16.mxu1 %v5145_v41  ;;  %v2040_v39 = vadd.f32 %v5815_v38, %v5338_v4  ;;  %v5816_v40 = vld [vmem:[#allocation34_spill] sm:$0xff] }
 0xcee   :  { %v2113_v41 = vadd.f32 %v5816_v40, %v5342_v25  ;;  %v5613_v38 = vld [vmem:[#allocation14 + $0xc0] ss:$16 sps:$4 sm:$0xff]   ;;  %v5619_v40 = vld [vmem:[#allocation14 + $0xe4] ss:$16 sps:$4 sm:$0xff]  }
 0xcf0   :  { %2934 = vmatpush1.bf16.msra.mxu0 %v5147_v42  ;;  %2975 = vmatpush1.bf16.msra.mxu1 %v5149_v43 }
 0xcf1   :  { %2935 = vmatprep.subr.bf16.mxu0 %v5155_v45  ;;  %2976 = vmatprep.subr.bf16.mxu1 %v5157_v20 }
 0xcf4   :  { %2936 = vmatpush1.bf16.msra.mxu0 %v5159_v24  ;;  %2977 = vmatpush1.bf16.msra.mxu1 %v5161_v28 }
 0xcf5   :  { %2937 = vmatprep.subr.bf16.mxu0 %v5167_v58  ;;  %2978 = vmatprep.subr.bf16.mxu1 %v5169_v59 }
 0xcf8   :  { %2938 = vmatpush1.bf16.msra.mxu0 %v5171_v60  ;;  %2979 = vmatpush1.bf16.msra.mxu1 %v5173_v61 }
 0xcf9   :  { %2939 = vmatprep.subr.bf16.mxu0 %v5179_v46  ;;  %2980 = vmatprep.subr.bf16.mxu1 %v5181_v63 }
 0xcfc   :  { %2940 = vmatpush1.bf16.msra.mxu0 %v5183_v47  ;;  %2981 = vmatpush1.bf16.msra.mxu1 %v5185_v1 }
 0xcfd   :  { %2941 = vmatprep.subr.bf16.mxu0 %v5191_v52  ;;  %2982 = vmatprep.subr.bf16.mxu1 %v5193_v55 }
 0xd00   :  { %2942 = vmatpush1.bf16.msra.mxu0 %v5195_v56  ;;  %2983 = vmatpush1.bf16.msra.mxu1 %v5197_v10 }
 0xd01   :  { %2943 = vmatprep.subr.bf16.mxu0 %v5203_v15  ;;  %2984 = vmatprep.subr.bf16.mxu1 %v5205_v14 }
 0xd04   :  { %2944 = vmatpush1.bf16.msra.mxu0 %v5207_v16  ;;  %2985 = vmatpush1.bf16.msra.mxu1 %v5209_v36 }
 0xd05   :  { %3049 = vmatprep.subr.bf16.mxu0 %v5119_v27  ;;  %3090 = vmatprep.subr.bf16.mxu1 %v5121_v13 }
 0xdba   :  { %v2843_v42 = vpop.f32.mrb[80].mxu0  ;;  %v2884_v43 = vpop.f32.mrb[80].mxu1 }
 0xdbb   :  { %v2891_v45 = vadd.f32 %v2843_v42, %v2038_v26  ;;  %v2893_v20 = vadd.f32 %v2884_v43, %v2111_v5  ;;  %v2845_v24 = vpop.f32.mrb[81].mxu0  ;;  %v2886_v27 = vpop.f32.mrb[81].mxu1  ;;  %v5604_v26 = vld [vmem:[#allocation14 + $0xa8] ss:$16 sps:$4 sm:$0xff]   ;;  %v5610_v5 = vld [vmem:[#allocation14 + $0xcc] ss:$16 sps:$4 sm:$0xff]  }
 0xdbc   :  { %v2892_v28 = vadd.f32 %v2845_v24, %v2040_v39  ;;  %v2894_v13 = vadd.f32 %v2886_v27, %v2113_v41  ;;  %v2847_v58 = vpop.f32.mrb[82].mxu0  ;;  %v2888_v59 = vpop.f32.mrb[82].mxu1  ;;  %v5616_v39 = vld [vmem:[#allocation14 + $0xc8] ss:$16 sps:$4 sm:$0xff]   ;;  %v5622_v41 = vld [vmem:[#allocation14 + $0xec] ss:$16 sps:$4 sm:$0xff]  }
 0xdbd   :  { %v3604_v60 = vmul.f32 -1.442695, %v2891_v45  ;;  %v2848_v61 = vpop.f32.mrb[83].mxu0  ;;  %v2889_v46 = vpop.f32.mrb[83].mxu1  ;;  %v5625_v42 = vld [vmem:[#allocation14 + $0xe0] ss:$16 sps:$4 sm:$0xff]  }
 0xdbe   :  { %v3605_v63 = vmul.f32 -1.442695, %v2892_v28  ;;  %v3606_v47 = vmul.f32 -1.442695, %v2894_v13  ;;  %v5628_v43 = vld [vmem:[#allocation14 + $0xe8] ss:$16 sps:$4 sm:$0xff]  }
 0xdbf   :  { %4065 = vpow2.f32 %v3604_v60  ;;  %v4195_v45 = vld [vmem:[#allocation14 + $0x4] ss:$16 sps:$4 sm:$0xff]   ;;  %v5817_v24 = vld [vmem:[#allocation35_spill] sm:$0xff]  ;;  %v5819_v58 = vld [vmem:[#allocation37_spill] sm:$0xff] }
 0xdc0   :  { %4067 = vpow2.f32 %v3605_v63  ;;  %v2042_v27 = vadd.f32 %v5817_v24, %v5326_v23  ;;  %v5818_v28 = vld [vmem:[#allocation36_spill] sm:$0xff]  ;;  %v2044_v59 = vadd.f32 %v5819_v58, %v5338_v4  ;;  %v5820_v60 = vld [vmem:[#allocation38_spill] sm:$0xff] }
 0xdc1   :  { %4069 = vpow2.f32 %v3606_v47  ;;  %v2115_v13 = vadd.f32 %v5818_v28, %v5330_v31  ;;  %v2117_v61 = vadd.f32 %v5820_v60, %v5342_v25 }
 0xdc2   :  { %4071 = vtanh.f32 %v2893_v20  ;;  %v4196_v20 = vld [vmem:[#allocation14 + $0xc] ss:$16 sps:$4 sm:$0xff]  }
 0xdc9   :  { %v4066_v1 = vpop.eup %4065 }
 0xdca   :  { %v4068_v52 = vpop.eup %4067  ;;  %v2898_v55 = vadd.f32 1.0, %v4066_v1 }
 0xdcb   :  { %v2904_v56 = vadd.f32 1.0, %v4068_v52  ;;  %v4070_v10 = vpop.eup %4069 }
 0xdcc   :  { %4073 = vrcp.f32 %v2898_v55  ;;  %v4072_v15 = vpop.eup %4071  ;;  %v2911_v53 = vadd.f32 1.0, %v4070_v10 }
 0xdcd   :  { %4075 = vrcp.f32 %v2904_v56 }
 0xdce   :  { %4077 = vrcp.f32 %v2911_v53 }
 0xdd6   :  { %v4074_v14 = vpop.eup %4073 }
 0xdd7   :  { %v4076_v16 = vpop.eup %4075  ;;  %v2916_v36 = vmul.f32 %v4074_v14, %v4072_v15 }
 0xdd8   :  { %v2915_v12 = vmul.f32 %v4076_v16, %v5490_v57  ;;  %v4078_v3 = vpop.eup %4077  ;;  %v5586_v57 = vld [vmem:[#allocation14 + $0x8c] ss:$16 sps:$4 sm:$0xff]  }
 0xdda   :  { %v5536_v8 = vadd.f32 %v2916_v36, %v2915_v12 }
 0xddc   :  { %4079 = vtanh.f32 %v5536_v8 }
 0xde6   :  { %v4080_v7 = vpop.eup %4079 }
 0xde7   :  { %v2919_v44 = vmul.f32 %v4080_v7, %v4078_v3 }
 0xde9   :  { %v2928_v19 = vpack.c.bf16 %v2919_v44, %v2919_v44 }
 0xdeb   :  { %2962 = vmatmul.mubr.bf16.vlgmr.msra.gmra.mrb[84].mxu0 %v2928_v19  ;;  %3003 = vmatmul.mubr.bf16.vlgmr.msra.gmra.mrb[84].mxu1 %v2928_v19 }
 0xdec   :  { %3050 = vmatpush1.bf16.msra.mxu0 %v5539_v32  ;;  %3091 = vmatpush1.bf16.msra.mxu1 %v5542_v6 }
 0xded   :  { %3051 = vmatprep.subr.bf16.mxu0 %v5545_v51  ;;  %3092 = vmatprep.subr.bf16.mxu1 %v5548_v21 }
 0xdee   :  { %3081 = vmatprep.mubr.bf16.mxu0 %v5755_v11  ;;  %3122 = vmatprep.mubr.bf16.mxu1 %v5755_v11 }
 0xdf0   :  { %3052 = vmatpush1.bf16.msra.mxu0 %v5553_v34  ;;  %3093 = vmatpush1.bf16.msra.mxu1 %v5556_v30 }
 0xdf1   :  { %3053 = vmatprep.subr.bf16.mxu0 %v5559_v50  ;;  %3094 = vmatprep.subr.bf16.mxu1 %v5562_v18 }
 0xdf4   :  { %3054 = vmatpush1.bf16.msra.mxu0 %v5565_v48  ;;  %3095 = vmatpush1.bf16.msra.mxu1 %v5568_v0 }
 0xdf5   :  { %3055 = vmatprep.subr.bf16.mxu0 %v5571_v49  ;;  %3096 = vmatprep.subr.bf16.mxu1 %v5574_v62 }
 0xdf8   :  { %3056 = vmatpush1.bf16.msra.mxu0 %v5577_v2  ;;  %3097 = vmatpush1.bf16.msra.mxu1 %v5580_v54 }
 0xdf9   :  { %3057 = vmatprep.subr.bf16.mxu0 %v5583_v35  ;;  %3098 = vmatprep.subr.bf16.mxu1 %v5586_v57 }
 0xdfc   :  { %3058 = vmatpush1.bf16.msra.mxu0 %v5589_v37  ;;  %3099 = vmatpush1.bf16.msra.mxu1 %v5592_v29 }
 0xdfd   :  { %3059 = vmatprep.subr.bf16.mxu0 %v5595_v9  ;;  %3100 = vmatprep.subr.bf16.mxu1 %v5598_v17 }
 0xe00   :  { %3060 = vmatpush1.bf16.msra.mxu0 %v5601_v22  ;;  %3101 = vmatpush1.bf16.msra.mxu1 %v5604_v26 }
 0xe01   :  { %3061 = vmatprep.subr.bf16.mxu0 %v5607_v33  ;;  %3102 = vmatprep.subr.bf16.mxu1 %v5610_v5 }
 0xe04   :  { %3062 = vmatpush1.bf16.msra.mxu0 %v5613_v38  ;;  %3103 = vmatpush1.bf16.msra.mxu1 %v5616_v39 }
 0xe05   :  { %3063 = vmatprep.subr.bf16.mxu0 %v5619_v40  ;;  %3104 = vmatprep.subr.bf16.mxu1 %v5622_v41 }
 0xe08   :  { %3064 = vmatpush1.bf16.msra.mxu0 %v5625_v42  ;;  %3105 = vmatpush1.bf16.msra.mxu1 %v5628_v43 }
 0xe09   :  { %3169 = vmatprep.subr.bf16.mxu0 %v4195_v45  ;;  %3210 = vmatprep.subr.bf16.mxu1 %v4196_v20 }
 0xebe   :  { %v2963_v46 = vpop.f32.mrb[84].mxu0  ;;  %v3004_v63 = vpop.f32.mrb[84].mxu1 }
 0xebf   :  { %v3011_v47 = vadd.f32 %v2963_v46, %v2042_v27  ;;  %v3013_v1 = vadd.f32 %v3004_v63, %v2115_v13  ;;  %v2965_v52 = vpop.f32.mrb[85].mxu0  ;;  %v3006_v55 = vpop.f32.mrb[85].mxu1 }
 0xec0   :  { %v3012_v56 = vadd.f32 %v2965_v52, %v2044_v59  ;;  %v3014_v10 = vadd.f32 %v3006_v55, %v2117_v61  ;;  %v2967_v15 = vpop.f32.mrb[86].mxu0  ;;  %v3008_v14 = vpop.f32.mrb[86].mxu1 }
 0xec1   :  { %v3607_v16 = vmul.f32 -1.442695, %v3011_v47  ;;  %v2968_v36 = vpop.f32.mrb[87].mxu0  ;;  %v3009_v53 = vpop.f32.mrb[87].mxu1 }
 0xec2   :  { %v3608_v12 = vmul.f32 -1.442695, %v3012_v56  ;;  %v3609_v3 = vmul.f32 -1.442695, %v3014_v10  ;;  %v4373_v36 = vmov 0.0   ;;  %v3866_v53 = vld [vmem:[#allocation15 + $0x8] sm:$0xff]  }
 0xec3   :  { %4081 = vpow2.f32 %v3607_v16  ;;  %v3865_v16 = vld [vmem:[#allocation15] sm:$0xff]  }
 0xec4   :  { %4083 = vpow2.f32 %v3608_v12  ;;  %v3867_v12 = vld [vmem:[#allocation15 + $0x10] sm:$0xff]  }
 0xec5   :  { %4085 = vpow2.f32 %v3609_v3  ;;  %v3868_v3 = vld [vmem:[#allocation15 + $0x18] sm:$0xff]  }
 0xec6   :  { %4087 = vtanh.f32 %v3013_v1 }
 0xecd   :  { %v4082_v7 = vpop.eup %4081 }
 0xece   :  { %v4084_v44 = vpop.eup %4083  ;;  %v3018_v19 = vadd.f32 1.0, %v4082_v7  ;;  %v3869_v7 = vld [vmem:[#allocation15 + $0x20] sm:$0xff]  }
 0xecf   :  { %v3024_v45 = vadd.f32 1.0, %v4084_v44  ;;  %v4086_v20 = vpop.eup %4085  ;;  %v3870_v44 = vld [vmem:[#allocation15 + $0x28] sm:$0xff]  }
 0xed0   :  { %4089 = vrcp.f32 %v3018_v19  ;;  %v4088_v24 = vpop.eup %4087  ;;  %v3031_v58 = vadd.f32 1.0, %v4086_v20  ;;  %v3871_v19 = vld [vmem:[#allocation15 + $0x30] sm:$0xff]   ;;  %v5825_v20 = vld [vmem:[#allocation43_spill] sm:$0xff] }
 0xed1   :  { %4091 = vrcp.f32 %v3024_v45  ;;  %v3872_v45 = vld [vmem:[#allocation15 + $0x38] sm:$0xff]  }
 0xed2   :  { %4093 = vrcp.f32 %v3031_v58 }
 0xeda   :  { %v4090_v27 = vpop.eup %4089 }
 0xedb   :  { %v4092_v28 = vpop.eup %4091  ;;  %v3036_v13 = vmul.f32 %v4090_v27, %v4088_v24  ;;  %v2052_v24 = vadd.f32 %v5825_v20, %v5326_v23  ;;  %v5826_v27 = vld [vmem:[#allocation44_spill] sm:$0xff] }
 0xedc   :  { %v3035_v59 = vmul.f32 %v4092_v28, %v5536_v8  ;;  %v4094_v61 = vpop.eup %4093  ;;  %v2125_v28 = vadd.f32 %v5826_v27, %v5330_v31 }
 0xede   :  { %v5640_v60 = vadd.f32 %v3036_v13, %v3035_v59  ;;  %v5827_v13 = vld [vmem:[#allocation23_spill] sm:$0xff]  ;;  %v5828_v59 = vld [vmem:[#allocation45_spill] sm:$0xff] }
 0xedf   :  { %v2054_v58 = vadd.f32 %v5827_v13, %v5338_v4 }
 0xee0   :  { %4095 = vtanh.f32 %v5640_v60 }
 0xeea   :  { %v4096_v46 = vpop.eup %4095 }
 0xeeb   :  { %v3039_v63 = vmul.f32 %v4096_v46, %v4094_v61 }
 0xeed   :  { %v3048_v47 = vpack.c.bf16 %v3039_v63, %v3039_v63 }
 0xeef   :  { %3082 = vmatmul.mubr.bf16.vlgmr.msra.gmra.mrb[88].mxu0 %v3048_v47  ;;  %3123 = vmatmul.mubr.bf16.vlgmr.msra.gmra.mrb[88].mxu1 %v3048_v47 }
 0xef0   :  { %3170 = vmatpush1.bf16.msra.mxu0 %v5539_v32  ;;  %3211 = vmatpush1.bf16.msra.mxu1 %v5542_v6  ;;  %v5822_v32 = vld [vmem:[#allocation40_spill] sm:$0xff] }
 0xef1   :  { %3171 = vmatprep.subr.bf16.mxu0 %v5545_v51  ;;  %3212 = vmatprep.subr.bf16.mxu1 %v5548_v21  ;;  %v2121_v6 = vadd.f32 %v5822_v32, %v5330_v31  ;;  %v5823_v51 = vld [vmem:[#allocation41_spill] sm:$0xff] }
 0xef2   :  { %3201 = vmatprep.mubr.bf16.mxu0 %v5755_v11  ;;  %3242 = vmatprep.mubr.bf16.mxu1 %v5755_v11  ;;  %v5821_v11 = vld [vmem:[#allocation39_spill] sm:$0xff]  ;;  %v2050_v21 = vadd.f32 %v5823_v51, %v5338_v4 }
 0xef3   :  { %v2048_v8 = vadd.f32 %v5821_v11, %v5326_v23 }
 0xef4   :  { %3172 = vmatpush1.bf16.msra.mxu0 %v5553_v34  ;;  %3213 = vmatpush1.bf16.msra.mxu1 %v5556_v30  ;;  %v5824_v34 = vld [vmem:[#allocation42_spill] sm:$0xff] }
 0xef5   :  { %3173 = vmatprep.subr.bf16.mxu0 %v5559_v50  ;;  %3214 = vmatprep.subr.bf16.mxu1 %v5562_v18  ;;  %v2123_v30 = vadd.f32 %v5824_v34, %v5342_v25 }
 0xef8   :  { %3174 = vmatpush1.bf16.msra.mxu0 %v5565_v48  ;;  %3215 = vmatpush1.bf16.msra.mxu1 %v5568_v0 }
 0xef9   :  { %3175 = vmatprep.subr.bf16.mxu0 %v5571_v49  ;;  %3216 = vmatprep.subr.bf16.mxu1 %v5574_v62 }
 0xefc   :  { %3176 = vmatpush1.bf16.msra.mxu0 %v5577_v2  ;;  %3217 = vmatpush1.bf16.msra.mxu1 %v5580_v54 }
 0xefd   :  { %3177 = vmatprep.subr.bf16.mxu0 %v5583_v35  ;;  %3218 = vmatprep.subr.bf16.mxu1 %v5586_v57 }
 0xf00   :  { %3178 = vmatpush1.bf16.msra.mxu0 %v5589_v37  ;;  %3219 = vmatpush1.bf16.msra.mxu1 %v5592_v29 }
 0xf01   :  { %3179 = vmatprep.subr.bf16.mxu0 %v5595_v9  ;;  %3220 = vmatprep.subr.bf16.mxu1 %v5598_v17 }
 0xf04   :  { %3180 = vmatpush1.bf16.msra.mxu0 %v5601_v22  ;;  %3221 = vmatpush1.bf16.msra.mxu1 %v5604_v26 }
 0xf05   :  { %3181 = vmatprep.subr.bf16.mxu0 %v5607_v33  ;;  %3222 = vmatprep.subr.bf16.mxu1 %v5610_v5 }
 0xf08   :  { %3182 = vmatpush1.bf16.msra.mxu0 %v5613_v38  ;;  %3223 = vmatpush1.bf16.msra.mxu1 %v5616_v39 }
 0xf09   :  { %3183 = vmatprep.subr.bf16.mxu0 %v5619_v40  ;;  %3224 = vmatprep.subr.bf16.mxu1 %v5622_v41 }
 0xf0c   :  { %3184 = vmatpush1.bf16.msra.mxu0 %v5625_v42  ;;  %3225 = vmatpush1.bf16.msra.mxu1 %v5628_v43 }
 0xf0d   :  { %3634 = vmatprep.subr.bf16.mxu0 %v4373_v36 }
 0xfc2   :  { %v3083_v50 = vpop.f32.mrb[88].mxu0  ;;  %v3124_v18 = vpop.f32.mrb[88].mxu1 }
 0xfc3   :  { %v3131_v48 = vadd.f32 %v3083_v50, %v2048_v8  ;;  %v3133_v0 = vadd.f32 %v3124_v18, %v2121_v6  ;;  %v3085_v49 = vpop.f32.mrb[89].mxu0  ;;  %v3126_v62 = vpop.f32.mrb[89].mxu1 }
 0xfc4   :  { %v3132_v2 = vadd.f32 %v3085_v49, %v2050_v21  ;;  %v3134_v54 = vadd.f32 %v3126_v62, %v2123_v30  ;;  %v3087_v35 = vpop.f32.mrb[90].mxu0  ;;  %v3128_v57 = vpop.f32.mrb[90].mxu1 }
 0xfc5   :  { %v3610_v37 = vmul.f32 -1.442695, %v3131_v48  ;;  %v3088_v29 = vpop.f32.mrb[91].mxu0  ;;  %v3129_v9 = vpop.f32.mrb[91].mxu1 }
 0xfc6   :  { %v3611_v17 = vmul.f32 -1.442695, %v3132_v2  ;;  %v3612_v22 = vmul.f32 -1.442695, %v3134_v54 }
 0xfc7   :  { %4097 = vpow2.f32 %v3610_v37 }
 0xfc8   :  { %4099 = vpow2.f32 %v3611_v17 }
 0xfc9   :  { %4101 = vpow2.f32 %v3612_v22 }
 0xfca   :  { %4103 = vtanh.f32 %v3133_v0 }
 0xfd1   :  { %v4098_v26 = vpop.eup %4097 }
 0xfd2   :  { %v4100_v33 = vpop.eup %4099  ;;  %v3138_v5 = vadd.f32 1.0, %v4098_v26  ;;  %v5829_v26 = vlaneseq }
 0xfd3   :  { %v3144_v38 = vadd.f32 1.0, %v4100_v33  ;;  %v4102_v39 = vpop.eup %4101 }
 0xfd4   :  { %4105 = vrcp.f32 %v3138_v5  ;;  %v4104_v40 = vpop.eup %4103  ;;  %v3151_v1 = vadd.f32 1.0, %v4102_v39  ;;  %v3397_v33 = vand.u32 127, %v5829_v26  ;;  %v3616_v5 = vld [vmem:[%s5720_s8] ss:$0 sm:$0xff]  ;;  %s4329_s8 = scalar_lea.vmem %s3418_s21, 128 }
 0xfd5   :  { %4107 = vrcp.f32 %v3144_v38  ;;  %p4330_p6 = scmp.ne.s32.totalorder %s3418_s21, %s4329_s8  ;;  %p4335_p8 = scmp.lt.s32.totalorder %s4329_s8, %s4329_s8 }
 0xfd6   :  { %4109 = vrcp.f32 %v3151_v1  ;;  %vm3398_vm1 = vcmp.lt.s32.totalorder %v3397_v33, 10 }
 0xfd7   :  { %p4336_p9 = por %p4335_p8, %p4334_p7 }
 0xfd9   :  { %p4337_p10 = pnand %p4336_p9, %p4330_p6 }
 0xfde   :  { %v4106_v41 = vpop.eup %4105 }
 0xfdf   :  { %v4108_v42 = vpop.eup %4107  ;;  %v3156_v43 = vmul.f32 %v4106_v41, %v4104_v40 }
 0xfe0   :  { %v3155_v52 = vmul.f32 %v4108_v42, %v5640_v60  ;;  %v4110_v56 = vpop.eup %4109  ;;  %v2127_v60 = vadd.f32 %v5828_v59, %v5342_v25 }
 0xfe2   :  { %v5684_v55 = vadd.f32 %v3156_v43, %v3155_v52 }
 0xfe4   :  { %4111 = vtanh.f32 %v5684_v55 }
 0xfee   :  { %v4112_v10 = vpop.eup %4111 }
 0xfef   :  { %v3159_v15 = vmul.f32 %v4112_v10, %v4110_v56 }
 0xff1   :  { %v3168_v14 = vpack.c.bf16 %v3159_v15, %v3159_v15 }
 0xff3   :  { %3202 = vmatmul.mubr.bf16.vlgmr.msra.gmra.mrb[92].mxu0 %v3168_v14  ;;  %3243 = vmatmul.mubr.bf16.vlgmr.msra.gmra.mrb[92].mxu1 %v3168_v14 }
 0xff4   :  { %3635 = vmatpush3.bf16.msra.mxu0 %v3865_v16  ;;  %3650 = vmatprep.mubr.msk.bf16.mxu0 %vm4374_vm0, %v4373_v36 }
 0xff5   :  { %3636 = vmatprep.subr.bf16.mxu0 %v4373_v36 }
 0xff8   :  { %3637 = vmatpush3.bf16.msra.mxu0 %v3866_v53 }
 0xff9   :  { %3638 = vmatprep.subr.bf16.mxu0 %v4373_v36 }
 0xffc   :  { %3639 = vmatpush3.bf16.msra.mxu0 %v3867_v12 }
 0xffd   :  { %3640 = vmatprep.subr.bf16.mxu0 %v4373_v36 }
0x1000   :  { %3641 = vmatpush3.bf16.msra.mxu0 %v3868_v3 }
0x1001   :  { %3642 = vmatprep.subr.bf16.mxu0 %v4373_v36 }
0x1004   :  { %3643 = vmatpush3.bf16.msra.mxu0 %v3869_v7 }
0x1005   :  { %3644 = vmatprep.subr.bf16.mxu0 %v4373_v36 }
0x1008   :  { %3645 = vmatpush3.bf16.msra.mxu0 %v3870_v44 }
0x1009   :  { %3646 = vmatprep.subr.bf16.mxu0 %v4373_v36 }
0x100c   :  { %3647 = vmatpush3.bf16.msra.mxu0 %v3871_v19 }
0x100d   :  { %3648 = vmatprep.subr.bf16.mxu0 %v4373_v36 }
0x1010   :  { %3649 = vmatpush3.bf16.msra.mxu0 %v3872_v45 }
0x10c6   :  { %v3203_v61 = vpop.f32.mrb[92].mxu0  ;;  %v3244_v46 = vpop.f32.mrb[92].mxu1 }
0x10c7   :  { %v3251_v63 = vadd.f32 %v3203_v61, %v2052_v24  ;;  %v3253_v47 = vadd.f32 %v3244_v46, %v2125_v28  ;;  %v3205_v11 = vpop.f32.mrb[93].mxu0  ;;  %v3246_v8 = vpop.f32.mrb[93].mxu1 }
0x10c8   :  { %v3252_v32 = vadd.f32 %v3205_v11, %v2054_v58  ;;  %v3254_v6 = vadd.f32 %v3246_v8, %v2127_v60  ;;  %v3207_v51 = vpop.f32.mrb[94].mxu0  ;;  %v3248_v21 = vpop.f32.mrb[94].mxu1 }
0x10c9   :  { %v3613_v23 = vmul.f32 -1.442695, %v3251_v63  ;;  %v3208_v34 = vpop.f32.mrb[95].mxu0  ;;  %v3249_v30 = vpop.f32.mrb[95].mxu1 }
0x10ca   :  { %v3614_v31 = vmul.f32 -1.442695, %v3252_v32  ;;  %v3615_v4 = vmul.f32 -1.442695, %v3254_v6 }
0x10cb   :  { %4113 = vpow2.f32 %v3613_v23 }
0x10cc   :  { %4115 = vpow2.f32 %v3614_v31 }
0x10cd   :  { %4117 = vpow2.f32 %v3615_v4 }
0x10ce   :  { %4119 = vtanh.f32 %v3253_v47 }
0x10d5   :  { %v4114_v50 = vpop.eup %4113 }
0x10d6   :  { %v4116_v18 = vpop.eup %4115  ;;  %v3258_v25 = vadd.f32 1.0, %v4114_v50 }
0x10d7   :  { %v3264_v48 = vadd.f32 1.0, %v4116_v18  ;;  %v4118_v0 = vpop.eup %4117 }
0x10d8   :  { %4121 = vrcp.f32 %v3258_v25  ;;  %v4120_v49 = vpop.eup %4119  ;;  %v3271_v35 = vadd.f32 1.0, %v4118_v0 }
0x10d9   :  { %4123 = vrcp.f32 %v3264_v48 }
0x10da   :  { %4125 = vrcp.f32 %v3271_v35 }
0x10e2   :  { %v4122_v62 = vpop.eup %4121 }
0x10e3   :  { %v4124_v2 = vpop.eup %4123  ;;  %v3276_v54 = vmul.f32 %v4122_v62, %v4120_v49 }
0x10e4   :  { %v3275_v57 = vmul.f32 %v4124_v2, %v5684_v55  ;;  %v4126_v29 = vpop.eup %4125 }
0x10e6   :  { %v3277_v37 = vadd.f32 %v3276_v54, %v3275_v57 }
0x10e8   :  { %4127 = vtanh.f32 %v3277_v37 }
0x10f2   :  { %v4128_v9 = vpop.eup %4127 }
0x10f3   :  { %v3279_v17 = vmul.f32 %v4128_v9, %v4126_v29 }
0x10f5   :  { %v3284_v22 = vpack.c.bf16 %v3279_v17, %v3279_v17 }
0x10f7   :  { %3651 = vmatmul.mubr.bf16.vlgmr.msra.gmra.mrb[96].mxu0 %v3284_v22 }
0x11ca   :  { %v3390_v38 = vpop.f32.mrb[96].mxu0 }
0x11cb   :  { %v3391_v39 = vadd.f32 %v3616_v5, %v3390_v38  ;;  %v3652_v40 = vpop.f32.mrb[97].mxu0 }
0x11cc   :  { %v3393_v41 = vpop.f32.mrb[98].mxu0 }
0x11cd   :  { %v3653_v42 = vpop.f32.mrb[99].mxu0  ;;  %v3399_v43 = vsel %vm3398_vm1, %v3391_v39, -1e+30 }
0x11ce   :  { %3400 = vmax.xlane.f32.xlu0 %v3399_v43 }
0x125b   :  { %v3401_v1 = vpop.xlane.xlu0 %3400 }
0x125c   :  { %v3402_v52 = vsub.f32 %v3399_v43, %v3401_v1 }
0x125e   :  { %v3403_v55 = vmul.f32 1.442695, %v3402_v52 }
0x1260   :  { %4129 = vpow2.f32 %v3403_v55 }
0x126a   :  { %v4130_v56 = vpop.eup %4129 }
0x126b   :  { %3405 = vadd.xlane.f32.xlu0 %v4130_v56 }
0x12f8   :  { %v3406_v10 = vpop.xlane.xlu0 %3405 }
0x12f9   :  { %4131 = vlog2.f32 %v3406_v10 }
0x1303   :  { %v4132_v15 = vpop.eup %4131 }
0x1304   :  { %v3408_v14 = vmul.f32 0.6931472, %v4132_v15 }
0x1306   :  { %v3409_v16 = vsub.f32 %v3402_v52, %v3408_v14 }
0x1308   :  { %3410 = vst [vmem:[#allocation17] sm:$0xff] %v3409_v16 }
0x1309   :  { %4340 = shalt.err (!%p4337_p10)
}
0x130a   :  { %s4341_s25 = scalar_lea.hbm %s5721_s9, 128 }
0x130b   :  { %p4342_p11 = scmp.ne.s32.totalorder %s5721_s9, %s4341_s25  ;;  %p4345_p12 = scmp.lt.u32.totalorder %s4341_s25, %s5721_s9 }
0x130d   :  { %p4347_p13 = pnand %p4345_p12, %p4342_p11 }
0x130f   :  { %4350 = shalt.err (!%p4347_p13)
}
0x1310   :  { %3420 = dma.vmem_to_hbm [thread:$0]  %s3418_s21, 128, %s5721_s9, [#allocation8]  }
0x1311   :  { %4359 = dma.done.wait [#allocation8], 128  }
0x1312   :  { %4360 = vsyncadd [#allocation8], 4294967168 }
0x1313   :  { %3424 = vsyncpa [#allocation7], 1 }
0x1314   :  { %3425 = vsyncpa [#allocation10], 1 }
0x1315   :  { %3426 = vsyncpa [#allocation13], 1 }
0x1316   :  { %3427 = vsyncpa [#allocation16], 1 }
0x1317   :  { %3428 = vsyncpa [#allocation8], 1 }

</bundles_post_ra>
